<compile_context>
chip_gen: v7x
topology: tpu7x:2x2x1
jax: 0.10.0
libtpu: 0.0.40
codegen_flags: <defaults>
</compile_context>

<pallas_src>
import math
from functools import partial

import jax
import jax.numpy as jnp
from jax.experimental import pallas as pl
from jax.experimental.pallas import tpu as pltpu


def _layernorm(v, g, b, eps=1e-5):
    mu = jnp.mean(v, axis=-1, keepdims=True)
    var = jnp.mean((v - mu) ** 2, axis=-1, keepdims=True)
    return (v - mu) * jax.lax.rsqrt(var + eps) * g + b


def _gelu_exact(v):
    # matches torch.nn.GELU() default (erf formulation)
    return 0.5 * v * (1.0 + jax.lax.erf(v / math.sqrt(2.0)))


def decoder_layer_kernel(
    x_ref, cross_ref,
    wq_ref, wkv_ref, bkv_ref, woh_ref,
    w1_ref, b1_ref, w2_ref, vec_ref,
    out_ref,
    kself_ref, vself_ref, kcross_ref, vcross_ref,
    *, n_heads, tq):
    f32, bf16 = jnp.float32, jnp.bfloat16

    H = n_heads
    D = x_ref.shape[-1]
    Dh = D // H

    x2d = x_ref.at[0]            # (S,  D) bf16 ref-view: full decoder input, this batch
    c2d = cross_ref.at[0]        # (Sc, D) bf16 ref-view: encoder output, this batch

    wq = wq_ref[...]             # (D, D)      bf16, pre-scaled by 1/sqrt(Dh)
    wkv = wkv_ref[...]           # (D, 2D)     bf16, fused K/V projection
    bkv = bkv_ref[...]           # (1, 2D)     f32
    woh = woh_ref[...]           # (H, Dh, D)  bf16, per-head output projection
    w1 = w1_ref[...]             # (D, d_ff)   bf16
    b1 = b1_ref[...]             # (1, d_ff)   f32
    w2 = w2_ref[...]             # (d_ff, D)   bf16
    vecs = vec_ref[...]          # (9, D)      f32 packed bias / LayerNorm params
    bq, bo, b2 = vecs[0:1], vecs[1:2], vecs[2:3]     # bq is pre-scaled by 1/sqrt(Dh)
    g1, be1 = vecs[3:4], vecs[4:5]
    g2, be2 = vecs[5:6], vecs[6:7]
    g3, be3 = vecs[7:8], vecs[8:9]

    def split_heads(t):          # (N, D) bf16 -> (H, N, Dh) bf16
        # TODO(synk): pltpu.einshape("n(hd)->hnd") would avoid the H lane-slice copies.
        return jnp.stack([t[:, h * Dh:(h + 1) * Dh] for h in range(H)], axis=0)

    # ---- K/V projections hoisted out of the query-tile loop: once per batch.
    #      The q grid axis is "arbitrary" (sequential) and the scratch persists
    #      across grid steps, so q > 0 steps just reuse these buffers.
    @pl.when(pl.program_id(1) == 0)
    def _():
        kv_s = (jnp.dot(x2d[...], wkv, preferred_element_type=f32) + bkv).astype(bf16)
        kself_ref[...] = split_heads(kv_s[:, :D])
        vself_ref[...] = split_heads(kv_s[:, D:])
        kv_c = (jnp.dot(c2d[...], wkv, preferred_element_type=f32) + bkv).astype(bf16)
        kcross_ref[...] = split_heads(kv_c[:, :D])
        vcross_ref[...] = split_heads(kv_c[:, D:])

    def mha(q_src, kh, vh):
        # Q projection (attention scale folded into wq/bq); bf16 in, f32 accumulate.
        q = jnp.dot(q_src.astype(bf16), wq, preferred_element_type=f32) + bq    # (tq, D)
        qh = split_heads(q.astype(bf16))                                        # (H, tq, Dh)
        # Head-batched scores + softmax (f32; exp kept f32 for v5e portability).
        s = jnp.einsum('hqd,hkd->hqk', qh, kh, preferred_element_type=f32)      # (H, tq, Sk)
        s = s - jnp.max(s, axis=-1, keepdims=True)
        p = jnp.exp(s)   # TODO(synk): flash-style KV chunking for long Sk (v7x VMEM)
        p = p * pl.reciprocal(jnp.sum(p, axis=-1, keepdims=True), approx=True)
        o = jnp.einsum('hqk,hkd->hqd', p.astype(bf16), vh,
                       preferred_element_type=f32).astype(bf16)                 # (H, tq, Dh)
        # Fused head-summed output projection: acc = sum_h o[h] @ Wo[h].
        # Single (tq, D) f32 accumulator -- no (H, tq, D) intermediate, no H-way reduce.
        acc = jnp.dot(o[0], woh[0], preferred_element_type=f32)
        for h in range(1, H):
            acc = acc + jnp.dot(o[h], woh[h], preferred_element_type=f32)
        return acc + bo

    # Query tile sliced from the already-resident full block (no duplicate x stream).
    row0 = pl.multiple_of(pl.program_id(1) * tq, tq)
    xq_bf = x2d[pl.ds(row0, tq), :]                      # (tq, D) bf16
    xq = xq_bf.astype(f32)

    # x = norm1(x + dropout(self_attn(x, x, x)))          (dropout == identity)
    x1 = _layernorm(xq + mha(xq_bf, kself_ref[...], vself_ref[...]), g1, be1)
    # x = x + dropout(cross_attn(x, cross, cross)); decomp is None -> norm2(x)
    x2 = _layernorm(x1 + mha(x1, kcross_ref[...], vcross_ref[...]), g2, be2)
    # y = conv2(gelu(conv1(x^T)))^T  == per-position MLP over channels
    y = jnp.dot(x2.astype(bf16), w1, preferred_element_type=f32) + b1
    y = _gelu_exact(y)
    y = jnp.dot(y.astype(bf16), w2, preferred_element_type=f32) + b2
    # return norm3(x + y)
    out_ref[0] = _layernorm(x2 + y, g3, be3).astype(out_ref.dtype)


def decoder_layer(x, cross, params, *, n_heads, tq=None):
    B, S, D = x.shape
    Bc, Sc, Dc = cross.shape
    assert B == Bc and D == Dc
    assert D % n_heads == 0
    d_ff = params["w1"].shape[1]
    Dh = D // n_heads

    # Generation-aware VMEM budget: ~80% of physical (128 MiB on v5e/v6e, 64 MiB on
    # v7x) instead of a flat 64 MiB that equals v7x's entire VMEM.
    try:
        vmem_phys = int(pltpu.get_tpu_info().vmem_capacity_bytes)
    except Exception:
        vmem_phys = 128 * 1024 * 1024
    vmem_limit = int(vmem_phys * 0.8)

    # Query-tile size: weights and the hoisted K/V are grid-invariant, so a larger
    # tile only adds (tq, D)/(tq, d_ff) activation VMEM while amortizing per-step
    # overhead -- allow up to 512 on 128 MiB parts, 256 on 64 MiB parts.
    if tq is None:
        cap = 512 if vmem_phys >= 96 * 1024 * 1024 else 256
        tq = S if S <= cap else cap
    assert S % tq == 0 and (tq == S or tq % 8 == 0), \
        "S must divide into 8-aligned query tiles"   # TODO(synk): add a padding path
    nq = S // tq

    f32, bf16 = jnp.float32, jnp.bfloat16
    scale = 1.0 / math.sqrt(Dh)
    # Fold the 1/sqrt(Dh) attention scale into the Q projection; matmul weights in
    # bf16 (MXU-native, halves VMEM residency); biases / LN params stay f32.
    wq = (params["wq"].astype(f32) * scale).astype(bf16)
    wkv = jnp.concatenate([params["wk"], params["wv"]], axis=1).astype(bf16)
    bkv = jnp.concatenate([params["bk"], params["bv"]], axis=1).astype(f32)
    woh = params["wo"].reshape(n_heads, Dh, D).astype(bf16)
    w1 = params["w1"].astype(bf16)
    b1 = params["b1"].astype(f32)
    w2 = params["w2"].astype(bf16)
    # Pack the small (1, D) bias / LayerNorm vectors into one array (fewer DMA
    # streams / double-buffered VMEM buffers).
    vecs = jnp.concatenate([
        params["bq"].astype(f32) * scale, params["bo"].astype(f32),
        params["b2"].astype(f32),
        params["g1"], params["be1"], params["g2"], params["be2"],
        params["g3"], params["be3"],
    ], axis=0)                                       # (9, D) f32

    # Activations stream in bf16 (halves HBM traffic); residual/LN math stays f32
    # inside the kernel.
    x_bf = x.astype(bf16)
    cross_bf = cross.astype(bf16)

    def const(shape):
        return pl.BlockSpec(shape, lambda b, q: (0,) * len(shape))
    # TODO(synk): pipeline_mode=pl.Buffered(1) on these grid-invariant weight specs
    #             (plus a d_ff grid axis) to halve weight residency on v7x.

    in_specs = [
        pl.BlockSpec((1, S, D), lambda b, q: (b, 0, 0)),    # x     (full, per batch)
        pl.BlockSpec((1, Sc, D), lambda b, q: (b, 0, 0)),   # cross (full, per batch)
        const((D, D)),                                      # wq (pre-scaled)
        const((D, 2 * D)),                                  # wkv (fused K/V)
        const((1, 2 * D)),                                  # bkv
        const((n_heads, Dh, D)),                            # per-head output proj
        const((D, d_ff)),                                   # conv1 W
        const((1, d_ff)),                                   # conv1 b
        const((d_ff, D)),                                   # conv2 W
        const((9, D)),                                      # packed biases / LN params
    ]
    out_spec = pl.BlockSpec((1, tq, D), lambda b, q: (b, q, 0))

    kernel = partial(decoder_layer_kernel, n_heads=n_heads, tq=tq)
    return pl.pallas_call(
        kernel,
        out_shape=jax.ShapeDtypeStruct((B, S, D), x.dtype),
        grid_spec=pltpu.PrefetchScalarGridSpec(
            num_scalar_prefetch=0,
            grid=(B, nq),                        # b: parallel, q: sequential
            in_specs=in_specs,
            out_specs=out_spec,
            scratch_shapes=[                     # per-batch head-split K/V (bf16)
                pltpu.VMEM((n_heads, S, Dh), bf16),
                pltpu.VMEM((n_heads, S, Dh), bf16),
                pltpu.VMEM((n_heads, Sc, Dh), bf16),
                pltpu.VMEM((n_heads, Sc, Dh), bf16),
            ],
        ),
        compiler_params=pltpu.CompilerParams(
            # q must be "arbitrary": K/V scratch is written at q == 0 and reused.
            dimension_semantics=("parallel", "arbitrary"),
            vmem_limit_bytes=vmem_limit,
        ),
    )(x_bf, cross_bf, wq, wkv, bkv, woh, w1, b1, w2, vecs)


def init_params(key, d_model, d_ff):
    # Deterministic synthetic init. Weights are stored already transposed to
    # (in_features, out_features) so y = x @ W + b matches PyTorch's x @ W_pt.T + b.
    ks = jax.random.split(key, 10)

    def lin(k, fan_in, fan_out):
        return (jax.random.normal(k, (fan_in, fan_out), jnp.float32)
                / math.sqrt(fan_in))

    return {
        "wq": lin(ks[0], d_model, d_model),
        "wk": lin(ks[1], d_model, d_model),
        "wv": lin(ks[2], d_model, d_model),
        "wo": lin(ks[3], d_model, d_model),
        "bq": 0.01 * jax.random.normal(ks[4], (1, d_model), jnp.float32),
        "bk": 0.01 * jax.random.normal(ks[5], (1, d_model), jnp.float32),
        "bv": 0.01 * jax.random.normal(ks[6], (1, d_model), jnp.float32),
        "bo": 0.01 * jax.random.normal(ks[7], (1, d_model), jnp.float32),
        # Conv1d(d_model, d_ff, 1) -> (d_model, d_ff) transposed; Conv1d(d_ff, d_model, 1) likewise
        "w1": lin(ks[8], d_model, d_ff),
        "b1": jnp.zeros((1, d_ff), jnp.float32),
        "w2": lin(ks[9], d_ff, d_model),
        "b2": jnp.zeros((1, d_model), jnp.float32),
        "g1": jnp.ones((1, d_model), jnp.float32),
        "be1": jnp.zeros((1, d_model), jnp.float32),
        "g2": jnp.ones((1, d_model), jnp.float32),
        "be2": jnp.zeros((1, d_model), jnp.float32),
        "g3": jnp.ones((1, d_model), jnp.float32),
        "be3": jnp.zeros((1, d_model), jnp.float32),
    }


def reference_decoder_layer(x, cross, params, *, n_heads):
    # Pure-JAX f32 reference matching the PyTorch module's forward.
    def ln(v, g, b, eps=1e-5):
        mu = v.mean(-1, keepdims=True)
        var = ((v - mu) ** 2).mean(-1, keepdims=True)
        return (v - mu) / jnp.sqrt(var + eps) * g + b

    def mha(q_in, kv_in):
        B, Sq, D = q_in.shape
        Sk = kv_in.shape[1]
        H, Dh = n_heads, D // n_heads
        q = (q_in @ params["wq"] + params["bq"]).reshape(B, Sq, H, Dh)
        k = (kv_in @ params["wk"] + params["bk"]).reshape(B, Sk, H, Dh)
        v = (kv_in @ params["wv"] + params["bv"]).reshape(B, Sk, H, Dh)
        s = jnp.einsum('bqhd,bkhd->bhqk', q, k) / math.sqrt(Dh)
        p = jax.nn.softmax(s, axis=-1)
        o = jnp.einsum('bhqk,bkhd->bqhd', p, v).reshape(B, Sq, D)
        return o @ params["wo"] + params["bo"]

    x = ln(x + mha(x, x), params["g1"], params["be1"])
    x = ln(x + mha(x, cross), params["g2"], params["be2"])
    y = x @ params["w1"] + params["b1"]
    y = 0.5 * y * (1.0 + jax.lax.erf(y / math.sqrt(2.0)))
    y = y @ params["w2"] + params["b2"]
    return ln(x + y, params["g3"], params["be3"])


if __name__ == "__main__":
    # Lane/sublane aligned demo dims: D, d_ff multiples of 128; S, Sc, tq of 8.
    B, S, Sc, D, H, D_FF = 2, 64, 64, 128, 4, 256

    key = jax.random.PRNGKey(0)
    k_x, k_c, k_p = jax.random.split(key, 3)
    x = jax.random.normal(k_x, (B, S, D), jnp.float32)        # decoder input
    cross = jax.random.normal(k_c, (B, Sc, D), jnp.float32)   # encoder output
    params = init_params(k_p, D, D_FF)

    # tq=32 -> grid (B, 2): exercises the q>0 path that reuses the hoisted K/V scratch.
    out = decoder_layer(x, cross, params, n_heads=H, tq=32)
    out = jax.block_until_ready(out)
    assert out.shape == (B, S, D) and out.dtype == jnp.float32
    assert bool(jnp.all(jnp.isfinite(out)))

    ref = reference_decoder_layer(x, cross, params, n_heads=H)
    abs_err = float(jnp.max(jnp.abs(out - ref)))
    rel_err = float(jnp.linalg.norm(out - ref) / jnp.linalg.norm(ref))
    # bf16 activations/matmul inputs (f32 accumulation) + approx reciprocal -> small drift
    assert abs_err < 0.15, f"kernel/reference mismatch: max abs err {abs_err}"
    assert rel_err < 0.05, f"kernel/reference mismatch: rel fro err {rel_err}"
    print("KERNEL_OK")
</pallas_src>

<mosaic_0001>
module attributes {stable_mosaic.version = 11 : i64} {
  func.func @decoder_layer_kernel(%arg0: i32, %arg1: i32, %arg2: memref<1x64x128xbf16, #tpu.memory_space<vmem>>, %arg3: memref<1x64x128xbf16, #tpu.memory_space<vmem>>, %arg4: memref<128x128xbf16, #tpu.memory_space<vmem>>, %arg5: memref<128x256xbf16, #tpu.memory_space<vmem>>, %arg6: memref<1x256xf32, #tpu.memory_space<vmem>>, %arg7: memref<4x32x128xbf16, #tpu.memory_space<vmem>>, %arg8: memref<128x256xbf16, #tpu.memory_space<vmem>>, %arg9: memref<1x256xf32, #tpu.memory_space<vmem>>, %arg10: memref<256x128xbf16, #tpu.memory_space<vmem>>, %arg11: memref<9x128xf32, #tpu.memory_space<vmem>>, %arg12: memref<1x32x128xf32, #tpu.memory_space<vmem>>, %arg13: memref<4x64x32xbf16, #tpu.memory_space<vmem>>, %arg14: memref<4x64x32xbf16, #tpu.memory_space<vmem>>, %arg15: memref<4x64x32xbf16, #tpu.memory_space<vmem>>, %arg16: memref<4x64x32xbf16, #tpu.memory_space<vmem>>) attributes {dimension_semantics = [#tpu.dimension_semantics<parallel>, #tpu.dimension_semantics<arbitrary>], iteration_bounds = array<i64: 2, 2>, scalar_prefetch = 0 : i64, scratch_operands = 4 : i64, tpu.core_type = #tpu.core_type<tc>, window_params = [{transform_indices = @transform_0, window_bounds = array<i64: 1, 64, 128>}, {transform_indices = @transform_1, window_bounds = array<i64: 1, 64, 128>}, {pipeline_mode = #tpu.pipeline_mode<synchronous>, transform_indices = @transform_2, window_bounds = array<i64: 128, 128>}, {pipeline_mode = #tpu.pipeline_mode<synchronous>, transform_indices = @transform_3, window_bounds = array<i64: 128, 256>}, {pipeline_mode = #tpu.pipeline_mode<synchronous>, transform_indices = @transform_4, window_bounds = array<i64: 1, 256>}, {pipeline_mode = #tpu.pipeline_mode<synchronous>, transform_indices = @transform_5, window_bounds = array<i64: 4, 32, 128>}, {pipeline_mode = #tpu.pipeline_mode<synchronous>, transform_indices = @transform_6, window_bounds = array<i64: 128, 256>}, {pipeline_mode = #tpu.pipeline_mode<synchronous>, transform_indices = @transform_7, window_bounds = array<i64: 1, 256>}, {pipeline_mode = #tpu.pipeline_mode<synchronous>, transform_indices = @transform_8, window_bounds = array<i64: 256, 128>}, {pipeline_mode = #tpu.pipeline_mode<synchronous>, transform_indices = @transform_9, window_bounds = array<i64: 9, 128>}, {transform_indices = @transform_10, window_bounds = array<i64: 1, 32, 128>}]} {
    %c0 = arith.constant 0 : index
    %c0_0 = arith.constant 0 : index
    %0 = vector.load %arg4[%c0, %c0_0] : memref<128x128xbf16, #tpu.memory_space<vmem>>, vector<128x128xbf16>
    %c0_1 = arith.constant 0 : index
    %c0_2 = arith.constant 0 : index
    %1 = vector.load %arg5[%c0_1, %c0_2] : memref<128x256xbf16, #tpu.memory_space<vmem>>, vector<128x256xbf16>
    %c0_3 = arith.constant 0 : index
    %c0_4 = arith.constant 0 : index
    %2 = vector.load %arg6[%c0_3, %c0_4] : memref<1x256xf32, #tpu.memory_space<vmem>>, vector<1x256xf32>
    %c0_5 = arith.constant 0 : index
    %c0_6 = arith.constant 0 : index
    %c0_7 = arith.constant 0 : index
    %3 = vector.load %arg7[%c0_5, %c0_6, %c0_7] : memref<4x32x128xbf16, #tpu.memory_space<vmem>>, vector<4x32x128xbf16>
    %c0_8 = arith.constant 0 : index
    %c0_9 = arith.constant 0 : index
    %4 = vector.load %arg8[%c0_8, %c0_9] : memref<128x256xbf16, #tpu.memory_space<vmem>>, vector<128x256xbf16>
    %c0_10 = arith.constant 0 : index
    %c0_11 = arith.constant 0 : index
    %5 = vector.load %arg9[%c0_10, %c0_11] : memref<1x256xf32, #tpu.memory_space<vmem>>, vector<1x256xf32>
    %c0_12 = arith.constant 0 : index
    %c0_13 = arith.constant 0 : index
    %6 = vector.load %arg10[%c0_12, %c0_13] : memref<256x128xbf16, #tpu.memory_space<vmem>>, vector<256x128xbf16>
    %c0_14 = arith.constant 0 : index
    %c0_15 = arith.constant 0 : index
    %7 = vector.load %arg11[%c0_14, %c0_15] : memref<9x128xf32, #tpu.memory_space<vmem>>, vector<9x128xf32>
    %8 = vector.extract_strided_slice %7 {offsets = [0, 0], sizes = [1, 128], strides = [1, 1]} : vector<9x128xf32> to vector<1x128xf32>
    %9 = vector.extract_strided_slice %7 {offsets = [1, 0], sizes = [1, 128], strides = [1, 1]} : vector<9x128xf32> to vector<1x128xf32>
    %10 = vector.extract_strided_slice %7 {offsets = [2, 0], sizes = [1, 128], strides = [1, 1]} : vector<9x128xf32> to vector<1x128xf32>
    %11 = vector.extract_strided_slice %7 {offsets = [3, 0], sizes = [1, 128], strides = [1, 1]} : vector<9x128xf32> to vector<1x128xf32>
    %12 = vector.extract_strided_slice %7 {offsets = [4, 0], sizes = [1, 128], strides = [1, 1]} : vector<9x128xf32> to vector<1x128xf32>
    %13 = vector.extract_strided_slice %7 {offsets = [5, 0], sizes = [1, 128], strides = [1, 1]} : vector<9x128xf32> to vector<1x128xf32>
    %14 = vector.extract_strided_slice %7 {offsets = [6, 0], sizes = [1, 128], strides = [1, 1]} : vector<9x128xf32> to vector<1x128xf32>
    %15 = vector.extract_strided_slice %7 {offsets = [7, 0], sizes = [1, 128], strides = [1, 1]} : vector<9x128xf32> to vector<1x128xf32>
    %16 = vector.extract_strided_slice %7 {offsets = [8, 0], sizes = [1, 128], strides = [1, 1]} : vector<9x128xf32> to vector<1x128xf32>
    %c0_i32 = arith.constant 0 : i32
    %17 = arith.cmpi eq, %arg1, %c0_i32 : i32
    %18 = arith.extui %17 : i1 to i32
    %c0_i32_16 = arith.constant 0 : i32
    %c0_i32_17 = arith.constant 0 : i32
    %c0_i32_18 = arith.constant 0 : i32
    %19 = arith.cmpi ne, %18, %c0_i32_18 : i32
    scf.if %19 {
      %224 = arith.index_cast %c0_i32_16 : i32 to index
      %c0_75 = arith.constant 0 : index
      %c0_76 = arith.constant 0 : index
      %225 = vector.load %arg2[%224, %c0_75, %c0_76] : memref<1x64x128xbf16, #tpu.memory_space<vmem>>, vector<1x64x128xbf16>
      %226 = vector.shape_cast %225 : vector<1x64x128xbf16> to vector<64x128xbf16>
      %cst_77 = arith.constant dense<0.000000e+00> : vector<64x256xf32>
      %227 = tpu.matmul %226, %1, %cst_77 {dimension_numbers = #tpu.dot_dimension_numbers<[1], [0], [0], [1], [0, 0, 1, 1], [], []>} : vector<64x128xbf16>, vector<128x256xbf16>, vector<64x256xf32> -> vector<64x256xf32>
      %228 = vector.broadcast %2 : vector<1x256xf32> to vector<64x256xf32>
      %229 = arith.addf %227, %228 : vector<64x256xf32>
      %230 = arith.truncf %229 : vector<64x256xf32> to vector<64x256xbf16>
      %231 = vector.extract_strided_slice %230 {offsets = [0, 0], sizes = [64, 128], strides = [1, 1]} : vector<64x256xbf16> to vector<64x128xbf16>
      %232 = vector.extract_strided_slice %231 {offsets = [0, 0], sizes = [64, 32], strides = [1, 1]} : vector<64x128xbf16> to vector<64x32xbf16>
      %233 = vector.extract_strided_slice %231 {offsets = [0, 32], sizes = [64, 32], strides = [1, 1]} : vector<64x128xbf16> to vector<64x32xbf16>
      %234 = vector.extract_strided_slice %231 {offsets = [0, 64], sizes = [64, 32], strides = [1, 1]} : vector<64x128xbf16> to vector<64x32xbf16>
      %235 = vector.extract_strided_slice %231 {offsets = [0, 96], sizes = [64, 32], strides = [1, 1]} : vector<64x128xbf16> to vector<64x32xbf16>
      %236 = vector.shape_cast %232 : vector<64x32xbf16> to vector<1x64x32xbf16>
      %237 = vector.shape_cast %233 : vector<64x32xbf16> to vector<1x64x32xbf16>
      %238 = vector.shape_cast %234 : vector<64x32xbf16> to vector<1x64x32xbf16>
      %239 = vector.shape_cast %235 : vector<64x32xbf16> to vector<1x64x32xbf16>
      %240 = tpu.concatenate %236, %237, %238, %239 in 0 : vector<1x64x32xbf16>, vector<1x64x32xbf16>, vector<1x64x32xbf16>, vector<1x64x32xbf16> -> vector<4x64x32xbf16>
      %c0_78 = arith.constant 0 : index
      %c0_79 = arith.constant 0 : index
      %c0_80 = arith.constant 0 : index
      %241 = vector.load %arg13[%c0_78, %c0_79, %c0_80] : memref<4x64x32xbf16, #tpu.memory_space<vmem>>, vector<4x64x32xbf16>
      tpu.vector_store %arg13[%c0_78, %c0_79, %c0_80], %240 {strides = array<i32>} : memref<4x64x32xbf16, #tpu.memory_space<vmem>>, vector<4x64x32xbf16>,
      %242 = vector.extract_strided_slice %230 {offsets = [0, 128], sizes = [64, 128], strides = [1, 1]} : vector<64x256xbf16> to vector<64x128xbf16>
      %243 = vector.extract_strided_slice %242 {offsets = [0, 0], sizes = [64, 32], strides = [1, 1]} : vector<64x128xbf16> to vector<64x32xbf16>
      %244 = vector.extract_strided_slice %242 {offsets = [0, 32], sizes = [64, 32], strides = [1, 1]} : vector<64x128xbf16> to vector<64x32xbf16>
      %245 = vector.extract_strided_slice %242 {offsets = [0, 64], sizes = [64, 32], strides = [1, 1]} : vector<64x128xbf16> to vector<64x32xbf16>
      %246 = vector.extract_strided_slice %242 {offsets = [0, 96], sizes = [64, 32], strides = [1, 1]} : vector<64x128xbf16> to vector<64x32xbf16>
      %247 = vector.shape_cast %243 : vector<64x32xbf16> to vector<1x64x32xbf16>
      %248 = vector.shape_cast %244 : vector<64x32xbf16> to vector<1x64x32xbf16>
      %249 = vector.shape_cast %245 : vector<64x32xbf16> to vector<1x64x32xbf16>
      %250 = vector.shape_cast %246 : vector<64x32xbf16> to vector<1x64x32xbf16>
      %251 = tpu.concatenate %247, %248, %249, %250 in 0 : vector<1x64x32xbf16>, vector<1x64x32xbf16>, vector<1x64x32xbf16>, vector<1x64x32xbf16> -> vector<4x64x32xbf16>
      %c0_81 = arith.constant 0 : index
      %c0_82 = arith.constant 0 : index
      %c0_83 = arith.constant 0 : index
      %252 = vector.load %arg14[%c0_81, %c0_82, %c0_83] : memref<4x64x32xbf16, #tpu.memory_space<vmem>>, vector<4x64x32xbf16>
      tpu.vector_store %arg14[%c0_81, %c0_82, %c0_83], %251 {strides = array<i32>} : memref<4x64x32xbf16, #tpu.memory_space<vmem>>, vector<4x64x32xbf16>,
      %253 = arith.index_cast %c0_i32_17 : i32 to index
      %c0_84 = arith.constant 0 : index
      %c0_85 = arith.constant 0 : index
      %254 = vector.load %arg3[%253, %c0_84, %c0_85] : memref<1x64x128xbf16, #tpu.memory_space<vmem>>, vector<1x64x128xbf16>
      %255 = vector.shape_cast %254 : vector<1x64x128xbf16> to vector<64x128xbf16>
      %cst_86 = arith.constant dense<0.000000e+00> : vector<64x256xf32>
      %256 = tpu.matmul %255, %1, %cst_86 {dimension_numbers = #tpu.dot_dimension_numbers<[1], [0], [0], [1], [0, 0, 1, 1], [], []>} : vector<64x128xbf16>, vector<128x256xbf16>, vector<64x256xf32> -> vector<64x256xf32>
      %257 = vector.broadcast %2 : vector<1x256xf32> to vector<64x256xf32>
      %258 = arith.addf %256, %257 : vector<64x256xf32>
      %259 = arith.truncf %258 : vector<64x256xf32> to vector<64x256xbf16>
      %260 = vector.extract_strided_slice %259 {offsets = [0, 0], sizes = [64, 128], strides = [1, 1]} : vector<64x256xbf16> to vector<64x128xbf16>
      %261 = vector.extract_strided_slice %260 {offsets = [0, 0], sizes = [64, 32], strides = [1, 1]} : vector<64x128xbf16> to vector<64x32xbf16>
      %262 = vector.extract_strided_slice %260 {offsets = [0, 32], sizes = [64, 32], strides = [1, 1]} : vector<64x128xbf16> to vector<64x32xbf16>
      %263 = vector.extract_strided_slice %260 {offsets = [0, 64], sizes = [64, 32], strides = [1, 1]} : vector<64x128xbf16> to vector<64x32xbf16>
      %264 = vector.extract_strided_slice %260 {offsets = [0, 96], sizes = [64, 32], strides = [1, 1]} : vector<64x128xbf16> to vector<64x32xbf16>
      %265 = vector.shape_cast %261 : vector<64x32xbf16> to vector<1x64x32xbf16>
      %266 = vector.shape_cast %262 : vector<64x32xbf16> to vector<1x64x32xbf16>
      %267 = vector.shape_cast %263 : vector<64x32xbf16> to vector<1x64x32xbf16>
      %268 = vector.shape_cast %264 : vector<64x32xbf16> to vector<1x64x32xbf16>
      %269 = tpu.concatenate %265, %266, %267, %268 in 0 : vector<1x64x32xbf16>, vector<1x64x32xbf16>, vector<1x64x32xbf16>, vector<1x64x32xbf16> -> vector<4x64x32xbf16>
      %c0_87 = arith.constant 0 : index
      %c0_88 = arith.constant 0 : index
      %c0_89 = arith.constant 0 : index
      %270 = vector.load %arg15[%c0_87, %c0_88, %c0_89] : memref<4x64x32xbf16, #tpu.memory_space<vmem>>, vector<4x64x32xbf16>
      tpu.vector_store %arg15[%c0_87, %c0_88, %c0_89], %269 {strides = array<i32>} : memref<4x64x32xbf16, #tpu.memory_space<vmem>>, vector<4x64x32xbf16>,
      %271 = vector.extract_strided_slice %259 {offsets = [0, 128], sizes = [64, 128], strides = [1, 1]} : vector<64x256xbf16> to vector<64x128xbf16>
      %272 = vector.extract_strided_slice %271 {offsets = [0, 0], sizes = [64, 32], strides = [1, 1]} : vector<64x128xbf16> to vector<64x32xbf16>
      %273 = vector.extract_strided_slice %271 {offsets = [0, 32], sizes = [64, 32], strides = [1, 1]} : vector<64x128xbf16> to vector<64x32xbf16>
      %274 = vector.extract_strided_slice %271 {offsets = [0, 64], sizes = [64, 32], strides = [1, 1]} : vector<64x128xbf16> to vector<64x32xbf16>
      %275 = vector.extract_strided_slice %271 {offsets = [0, 96], sizes = [64, 32], strides = [1, 1]} : vector<64x128xbf16> to vector<64x32xbf16>
      %276 = vector.shape_cast %272 : vector<64x32xbf16> to vector<1x64x32xbf16>
      %277 = vector.shape_cast %273 : vector<64x32xbf16> to vector<1x64x32xbf16>
      %278 = vector.shape_cast %274 : vector<64x32xbf16> to vector<1x64x32xbf16>
      %279 = vector.shape_cast %275 : vector<64x32xbf16> to vector<1x64x32xbf16>
      %280 = tpu.concatenate %276, %277, %278, %279 in 0 : vector<1x64x32xbf16>, vector<1x64x32xbf16>, vector<1x64x32xbf16>, vector<1x64x32xbf16> -> vector<4x64x32xbf16>
      %c0_90 = arith.constant 0 : index
      %c0_91 = arith.constant 0 : index
      %c0_92 = arith.constant 0 : index
      %281 = vector.load %arg16[%c0_90, %c0_91, %c0_92] : memref<4x64x32xbf16, #tpu.memory_space<vmem>>, vector<4x64x32xbf16>
      tpu.vector_store %arg16[%c0_90, %c0_91, %c0_92], %280 {strides = array<i32>} : memref<4x64x32xbf16, #tpu.memory_space<vmem>>, vector<4x64x32xbf16>,
    } else {
    }
    %c32_i32 = arith.constant 32 : i32
    %20 = arith.muli %arg1, %c32_i32 : i32
    %21 = tpu.assume_multiple %20, 32 : i32
    %c0_i32_19 = arith.constant 0 : i32
    %c0_i32_20 = arith.constant 0 : i32
    %c0_i32_21 = arith.constant 0 : i32
    %22 = tpu.memref_slice %arg2[%c0_i32_19, %c0_i32_20, %c0_i32_21] : memref<1x64x128xbf16, #tpu.memory_space<vmem>> -> memref<1x64x128xbf16, #tpu.memory_space<vmem>>
    %23 = tpu.memref_squeeze %22 : memref<1x64x128xbf16, #tpu.memory_space<vmem>> -> memref<64x128xbf16, #tpu.memory_space<vmem>>
    %24 = arith.index_cast %21 : i32 to index
    %c0_22 = arith.constant 0 : index
    %25 = vector.load %23[%24, %c0_22] : memref<64x128xbf16, #tpu.memory_space<vmem>>, vector<32x128xbf16>
    %26 = arith.extf %25 : vector<32x128xbf16> to vector<32x128xf32>
    %c0_23 = arith.constant 0 : index
    %c0_24 = arith.constant 0 : index
    %c0_25 = arith.constant 0 : index
    %27 = vector.load %arg13[%c0_23, %c0_24, %c0_25] : memref<4x64x32xbf16, #tpu.memory_space<vmem>>, vector<4x64x32xbf16>
    %c0_26 = arith.constant 0 : index
    %c0_27 = arith.constant 0 : index
    %c0_28 = arith.constant 0 : index
    %28 = vector.load %arg14[%c0_26, %c0_27, %c0_28] : memref<4x64x32xbf16, #tpu.memory_space<vmem>>, vector<4x64x32xbf16>
    %cst = arith.constant dense<0.000000e+00> : vector<32x128xf32>
    %29 = tpu.matmul %25, %0, %cst {dimension_numbers = #tpu.dot_dimension_numbers<[1], [0], [0], [1], [0, 0, 1, 1], [], []>} : vector<32x128xbf16>, vector<128x128xbf16>, vector<32x128xf32> -> vector<32x128xf32>
    %30 = vector.broadcast %8 : vector<1x128xf32> to vector<32x128xf32>
    %31 = arith.addf %29, %30 : vector<32x128xf32>
    %32 = arith.truncf %31 : vector<32x128xf32> to vector<32x128xbf16>
    %33 = vector.extract_strided_slice %32 {offsets = [0, 0], sizes = [32, 32], strides = [1, 1]} : vector<32x128xbf16> to vector<32x32xbf16>
    %34 = vector.extract_strided_slice %32 {offsets = [0, 32], sizes = [32, 32], strides = [1, 1]} : vector<32x128xbf16> to vector<32x32xbf16>
    %35 = vector.extract_strided_slice %32 {offsets = [0, 64], sizes = [32, 32], strides = [1, 1]} : vector<32x128xbf16> to vector<32x32xbf16>
    %36 = vector.extract_strided_slice %32 {offsets = [0, 96], sizes = [32, 32], strides = [1, 1]} : vector<32x128xbf16> to vector<32x32xbf16>
    %37 = vector.shape_cast %33 : vector<32x32xbf16> to vector<1x32x32xbf16>
    %38 = vector.shape_cast %34 : vector<32x32xbf16> to vector<1x32x32xbf16>
    %39 = vector.shape_cast %35 : vector<32x32xbf16> to vector<1x32x32xbf16>
    %40 = vector.shape_cast %36 : vector<32x32xbf16> to vector<1x32x32xbf16>
    %41 = tpu.concatenate %37, %38, %39, %40 in 0 : vector<1x32x32xbf16>, vector<1x32x32xbf16>, vector<1x32x32xbf16>, vector<1x32x32xbf16> -> vector<4x32x32xbf16>
    "tpu.trace_start"() <{level = 10 : i32, message = "hqd,hkd->hqk"}> : () -> ()
    %cst_29 = arith.constant dense<0.000000e+00> : vector<4x32x64xf32>
    %42 = tpu.matmul %41, %27, %cst_29 {dimension_numbers = #tpu.dot_dimension_numbers<[2], [2], [1], [1], [0, 0, 0, 1, 1, 1], [0], [0]>} : vector<4x32x32xbf16>, vector<4x64x32xbf16>, vector<4x32x64xf32> -> vector<4x32x64xf32>
    "tpu.trace_stop"() : () -> ()
    %cst_30 = arith.constant dense<0xFF800000> : vector<4x32xf32>
    %43 = vector.multi_reduction <maximumf>, %42, %cst_30 [2] : vector<4x32x64xf32> to vector<4x32xf32>
    %44 = vector.shape_cast %43 : vector<4x32xf32> to vector<4x32x1xf32>
    %45 = vector.broadcast %44 : vector<4x32x1xf32> to vector<4x32x64xf32>
    %46 = arith.subf %42, %45 : vector<4x32x64xf32>
    %47 = math.exp %46 : vector<4x32x64xf32>
    %cst_31 = arith.constant dense<0.000000e+00> : vector<4x32xf32>
    %48 = vector.multi_reduction <add>, %47, %cst_31 [2] : vector<4x32x64xf32> to vector<4x32xf32>
    %49 = vector.shape_cast %48 : vector<4x32xf32> to vector<4x32x1xf32>
    %50 = tpu.reciprocal %49 {approx = true} : vector<4x32x1xf32> -> vector<4x32x1xf32>
    %51 = vector.broadcast %50 : vector<4x32x1xf32> to vector<4x32x64xf32>
    %52 = arith.mulf %47, %51 : vector<4x32x64xf32>
    %53 = arith.truncf %52 : vector<4x32x64xf32> to vector<4x32x64xbf16>
    "tpu.trace_start"() <{level = 10 : i32, message = "hqk,hkd->hqd"}> : () -> ()
    %cst_32 = arith.constant dense<0.000000e+00> : vector<4x32x32xf32>
    %54 = tpu.matmul %53, %28, %cst_32 {dimension_numbers = #tpu.dot_dimension_numbers<[2], [1], [1], [2], [0, 0, 0, 1, 1, 2], [0], [0]>} : vector<4x32x64xbf16>, vector<4x64x32xbf16>, vector<4x32x32xf32> -> vector<4x32x32xf32>
    "tpu.trace_stop"() : () -> ()
    %55 = arith.truncf %54 : vector<4x32x32xf32> to vector<4x32x32xbf16>
    %56 = vector.extract_strided_slice %55 {offsets = [0, 0, 0], sizes = [1, 32, 32], strides = [1, 1, 1]} : vector<4x32x32xbf16> to vector<1x32x32xbf16>
    %57 = vector.shape_cast %56 : vector<1x32x32xbf16> to vector<32x32xbf16>
    %58 = vector.extract_strided_slice %3 {offsets = [0, 0, 0], sizes = [1, 32, 128], strides = [1, 1, 1]} : vector<4x32x128xbf16> to vector<1x32x128xbf16>
    %59 = vector.shape_cast %58 : vector<1x32x128xbf16> to vector<32x128xbf16>
    %cst_33 = arith.constant dense<0.000000e+00> : vector<32x128xf32>
    %60 = tpu.matmul %57, %59, %cst_33 {dimension_numbers = #tpu.dot_dimension_numbers<[1], [0], [0], [1], [0, 0, 1, 1], [], []>} : vector<32x32xbf16>, vector<32x128xbf16>, vector<32x128xf32> -> vector<32x128xf32>
    %61 = vector.extract_strided_slice %55 {offsets = [1, 0, 0], sizes = [1, 32, 32], strides = [1, 1, 1]} : vector<4x32x32xbf16> to vector<1x32x32xbf16>
    %62 = vector.shape_cast %61 : vector<1x32x32xbf16> to vector<32x32xbf16>
    %63 = vector.extract_strided_slice %3 {offsets = [1, 0, 0], sizes = [1, 32, 128], strides = [1, 1, 1]} : vector<4x32x128xbf16> to vector<1x32x128xbf16>
    %64 = vector.shape_cast %63 : vector<1x32x128xbf16> to vector<32x128xbf16>
    %cst_34 = arith.constant dense<0.000000e+00> : vector<32x128xf32>
    %65 = tpu.matmul %62, %64, %cst_34 {dimension_numbers = #tpu.dot_dimension_numbers<[1], [0], [0], [1], [0, 0, 1, 1], [], []>} : vector<32x32xbf16>, vector<32x128xbf16>, vector<32x128xf32> -> vector<32x128xf32>
    %66 = arith.addf %60, %65 : vector<32x128xf32>
    %67 = vector.extract_strided_slice %55 {offsets = [2, 0, 0], sizes = [1, 32, 32], strides = [1, 1, 1]} : vector<4x32x32xbf16> to vector<1x32x32xbf16>
    %68 = vector.shape_cast %67 : vector<1x32x32xbf16> to vector<32x32xbf16>
    %69 = vector.extract_strided_slice %3 {offsets = [2, 0, 0], sizes = [1, 32, 128], strides = [1, 1, 1]} : vector<4x32x128xbf16> to vector<1x32x128xbf16>
    %70 = vector.shape_cast %69 : vector<1x32x128xbf16> to vector<32x128xbf16>
    %cst_35 = arith.constant dense<0.000000e+00> : vector<32x128xf32>
    %71 = tpu.matmul %68, %70, %cst_35 {dimension_numbers = #tpu.dot_dimension_numbers<[1], [0], [0], [1], [0, 0, 1, 1], [], []>} : vector<32x32xbf16>, vector<32x128xbf16>, vector<32x128xf32> -> vector<32x128xf32>
    %72 = arith.addf %66, %71 : vector<32x128xf32>
    %73 = vector.extract_strided_slice %55 {offsets = [3, 0, 0], sizes = [1, 32, 32], strides = [1, 1, 1]} : vector<4x32x32xbf16> to vector<1x32x32xbf16>
    %74 = vector.shape_cast %73 : vector<1x32x32xbf16> to vector<32x32xbf16>
    %75 = vector.extract_strided_slice %3 {offsets = [3, 0, 0], sizes = [1, 32, 128], strides = [1, 1, 1]} : vector<4x32x128xbf16> to vector<1x32x128xbf16>
    %76 = vector.shape_cast %75 : vector<1x32x128xbf16> to vector<32x128xbf16>
    %cst_36 = arith.constant dense<0.000000e+00> : vector<32x128xf32>
    %77 = tpu.matmul %74, %76, %cst_36 {dimension_numbers = #tpu.dot_dimension_numbers<[1], [0], [0], [1], [0, 0, 1, 1], [], []>} : vector<32x32xbf16>, vector<32x128xbf16>, vector<32x128xf32> -> vector<32x128xf32>
    %78 = arith.addf %72, %77 : vector<32x128xf32>
    %79 = vector.broadcast %9 : vector<1x128xf32> to vector<32x128xf32>
    %80 = arith.addf %78, %79 : vector<32x128xf32>
    %81 = arith.addf %26, %80 : vector<32x128xf32>
    %cst_37 = arith.constant dense<0.000000e+00> : vector<32xf32>
    %82 = vector.multi_reduction <add>, %81, %cst_37 [1] : vector<32x128xf32> to vector<32xf32>
    %83 = vector.shape_cast %82 : vector<32xf32> to vector<32x1xf32>
    %cst_38 = arith.constant 1.280000e+02 : f32
    %84 = vector.broadcast %cst_38 : f32 to vector<32x1xf32>
    %85 = arith.divf %83, %84 : vector<32x1xf32>
    %86 = vector.broadcast %85 : vector<32x1xf32> to vector<32x128xf32>
    %87 = arith.subf %81, %86 : vector<32x128xf32>
    %88 = arith.mulf %87, %87 : vector<32x128xf32>
    %cst_39 = arith.constant dense<0.000000e+00> : vector<32xf32>
    %89 = vector.multi_reduction <add>, %88, %cst_39 [1] : vector<32x128xf32> to vector<32xf32>
    %90 = vector.shape_cast %89 : vector<32xf32> to vector<32x1xf32>
    %cst_40 = arith.constant 1.280000e+02 : f32
    %91 = vector.broadcast %cst_40 : f32 to vector<32x1xf32>
    %92 = arith.divf %90, %91 : vector<32x1xf32>
    %93 = vector.broadcast %85 : vector<32x1xf32> to vector<32x128xf32>
    %94 = arith.subf %81, %93 : vector<32x128xf32>
    %cst_41 = arith.constant 9.99999974E-6 : f32
    %95 = vector.broadcast %cst_41 : f32 to vector<32x1xf32>
    %96 = arith.addf %92, %95 : vector<32x1xf32>
    %97 = math.rsqrt %96 : vector<32x1xf32>
    %98 = vector.broadcast %97 : vector<32x1xf32> to vector<32x128xf32>
    %99 = arith.mulf %94, %98 : vector<32x128xf32>
    %100 = vector.broadcast %11 : vector<1x128xf32> to vector<32x128xf32>
    %101 = arith.mulf %99, %100 : vector<32x128xf32>
    %102 = vector.broadcast %12 : vector<1x128xf32> to vector<32x128xf32>
    %103 = arith.addf %101, %102 : vector<32x128xf32>
    %c0_42 = arith.constant 0 : index
    %c0_43 = arith.constant 0 : index
    %c0_44 = arith.constant 0 : index
    %104 = vector.load %arg15[%c0_42, %c0_43, %c0_44] : memref<4x64x32xbf16, #tpu.memory_space<vmem>>, vector<4x64x32xbf16>
    %c0_45 = arith.constant 0 : index
    %c0_46 = arith.constant 0 : index
    %c0_47 = arith.constant 0 : index
    %105 = vector.load %arg16[%c0_45, %c0_46, %c0_47] : memref<4x64x32xbf16, #tpu.memory_space<vmem>>, vector<4x64x32xbf16>
    %106 = arith.truncf %103 : vector<32x128xf32> to vector<32x128xbf16>
    %cst_48 = arith.constant dense<0.000000e+00> : vector<32x128xf32>
    %107 = tpu.matmul %106, %0, %cst_48 {dimension_numbers = #tpu.dot_dimension_numbers<[1], [0], [0], [1], [0, 0, 1, 1], [], []>} : vector<32x128xbf16>, vector<128x128xbf16>, vector<32x128xf32> -> vector<32x128xf32>
    %108 = vector.broadcast %8 : vector<1x128xf32> to vector<32x128xf32>
    %109 = arith.addf %107, %108 : vector<32x128xf32>
    %110 = arith.truncf %109 : vector<32x128xf32> to vector<32x128xbf16>
    %111 = vector.extract_strided_slice %110 {offsets = [0, 0], sizes = [32, 32], strides = [1, 1]} : vector<32x128xbf16> to vector<32x32xbf16>
    %112 = vector.extract_strided_slice %110 {offsets = [0, 32], sizes = [32, 32], strides = [1, 1]} : vector<32x128xbf16> to vector<32x32xbf16>
    %113 = vector.extract_strided_slice %110 {offsets = [0, 64], sizes = [32, 32], strides = [1, 1]} : vector<32x128xbf16> to vector<32x32xbf16>
    %114 = vector.extract_strided_slice %110 {offsets = [0, 96], sizes = [32, 32], strides = [1, 1]} : vector<32x128xbf16> to vector<32x32xbf16>
    %115 = vector.shape_cast %111 : vector<32x32xbf16> to vector<1x32x32xbf16>
    %116 = vector.shape_cast %112 : vector<32x32xbf16> to vector<1x32x32xbf16>
    %117 = vector.shape_cast %113 : vector<32x32xbf16> to vector<1x32x32xbf16>
    %118 = vector.shape_cast %114 : vector<32x32xbf16> to vector<1x32x32xbf16>
    %119 = tpu.concatenate %115, %116, %117, %118 in 0 : vector<1x32x32xbf16>, vector<1x32x32xbf16>, vector<1x32x32xbf16>, vector<1x32x32xbf16> -> vector<4x32x32xbf16>
    "tpu.trace_start"() <{level = 10 : i32, message = "hqd,hkd->hqk"}> : () -> ()
    %cst_49 = arith.constant dense<0.000000e+00> : vector<4x32x64xf32>
    %120 = tpu.matmul %119, %104, %cst_49 {dimension_numbers = #tpu.dot_dimension_numbers<[2], [2], [1], [1], [0, 0, 0, 1, 1, 1], [0], [0]>} : vector<4x32x32xbf16>, vector<4x64x32xbf16>, vector<4x32x64xf32> -> vector<4x32x64xf32>
    "tpu.trace_stop"() : () -> ()
    %cst_50 = arith.constant dense<0xFF800000> : vector<4x32xf32>
    %121 = vector.multi_reduction <maximumf>, %120, %cst_50 [2] : vector<4x32x64xf32> to vector<4x32xf32>
    %122 = vector.shape_cast %121 : vector<4x32xf32> to vector<4x32x1xf32>
    %123 = vector.broadcast %122 : vector<4x32x1xf32> to vector<4x32x64xf32>
    %124 = arith.subf %120, %123 : vector<4x32x64xf32>
    %125 = math.exp %124 : vector<4x32x64xf32>
    %cst_51 = arith.constant dense<0.000000e+00> : vector<4x32xf32>
    %126 = vector.multi_reduction <add>, %125, %cst_51 [2] : vector<4x32x64xf32> to vector<4x32xf32>
    %127 = vector.shape_cast %126 : vector<4x32xf32> to vector<4x32x1xf32>
    %128 = tpu.reciprocal %127 {approx = true} : vector<4x32x1xf32> -> vector<4x32x1xf32>
    %129 = vector.broadcast %128 : vector<4x32x1xf32> to vector<4x32x64xf32>
    %130 = arith.mulf %125, %129 : vector<4x32x64xf32>
    %131 = arith.truncf %130 : vector<4x32x64xf32> to vector<4x32x64xbf16>
    "tpu.trace_start"() <{level = 10 : i32, message = "hqk,hkd->hqd"}> : () -> ()
    %cst_52 = arith.constant dense<0.000000e+00> : vector<4x32x32xf32>
    %132 = tpu.matmul %131, %105, %cst_52 {dimension_numbers = #tpu.dot_dimension_numbers<[2], [1], [1], [2], [0, 0, 0, 1, 1, 2], [0], [0]>} : vector<4x32x64xbf16>, vector<4x64x32xbf16>, vector<4x32x32xf32> -> vector<4x32x32xf32>
    "tpu.trace_stop"() : () -> ()
    %133 = arith.truncf %132 : vector<4x32x32xf32> to vector<4x32x32xbf16>
    %134 = vector.extract_strided_slice %133 {offsets = [0, 0, 0], sizes = [1, 32, 32], strides = [1, 1, 1]} : vector<4x32x32xbf16> to vector<1x32x32xbf16>
    %135 = vector.shape_cast %134 : vector<1x32x32xbf16> to vector<32x32xbf16>
    %136 = vector.extract_strided_slice %3 {offsets = [0, 0, 0], sizes = [1, 32, 128], strides = [1, 1, 1]} : vector<4x32x128xbf16> to vector<1x32x128xbf16>
    %137 = vector.shape_cast %136 : vector<1x32x128xbf16> to vector<32x128xbf16>
    %cst_53 = arith.constant dense<0.000000e+00> : vector<32x128xf32>
    %138 = tpu.matmul %135, %137, %cst_53 {dimension_numbers = #tpu.dot_dimension_numbers<[1], [0], [0], [1], [0, 0, 1, 1], [], []>} : vector<32x32xbf16>, vector<32x128xbf16>, vector<32x128xf32> -> vector<32x128xf32>
    %139 = vector.extract_strided_slice %133 {offsets = [1, 0, 0], sizes = [1, 32, 32], strides = [1, 1, 1]} : vector<4x32x32xbf16> to vector<1x32x32xbf16>
    %140 = vector.shape_cast %139 : vector<1x32x32xbf16> to vector<32x32xbf16>
    %141 = vector.extract_strided_slice %3 {offsets = [1, 0, 0], sizes = [1, 32, 128], strides = [1, 1, 1]} : vector<4x32x128xbf16> to vector<1x32x128xbf16>
    %142 = vector.shape_cast %141 : vector<1x32x128xbf16> to vector<32x128xbf16>
    %cst_54 = arith.constant dense<0.000000e+00> : vector<32x128xf32>
    %143 = tpu.matmul %140, %142, %cst_54 {dimension_numbers = #tpu.dot_dimension_numbers<[1], [0], [0], [1], [0, 0, 1, 1], [], []>} : vector<32x32xbf16>, vector<32x128xbf16>, vector<32x128xf32> -> vector<32x128xf32>
    %144 = arith.addf %138, %143 : vector<32x128xf32>
    %145 = vector.extract_strided_slice %133 {offsets = [2, 0, 0], sizes = [1, 32, 32], strides = [1, 1, 1]} : vector<4x32x32xbf16> to vector<1x32x32xbf16>
    %146 = vector.shape_cast %145 : vector<1x32x32xbf16> to vector<32x32xbf16>
    %147 = vector.extract_strided_slice %3 {offsets = [2, 0, 0], sizes = [1, 32, 128], strides = [1, 1, 1]} : vector<4x32x128xbf16> to vector<1x32x128xbf16>
    %148 = vector.shape_cast %147 : vector<1x32x128xbf16> to vector<32x128xbf16>
    %cst_55 = arith.constant dense<0.000000e+00> : vector<32x128xf32>
    %149 = tpu.matmul %146, %148, %cst_55 {dimension_numbers = #tpu.dot_dimension_numbers<[1], [0], [0], [1], [0, 0, 1, 1], [], []>} : vector<32x32xbf16>, vector<32x128xbf16>, vector<32x128xf32> -> vector<32x128xf32>
    %150 = arith.addf %144, %149 : vector<32x128xf32>
    %151 = vector.extract_strided_slice %133 {offsets = [3, 0, 0], sizes = [1, 32, 32], strides = [1, 1, 1]} : vector<4x32x32xbf16> to vector<1x32x32xbf16>
    %152 = vector.shape_cast %151 : vector<1x32x32xbf16> to vector<32x32xbf16>
    %153 = vector.extract_strided_slice %3 {offsets = [3, 0, 0], sizes = [1, 32, 128], strides = [1, 1, 1]} : vector<4x32x128xbf16> to vector<1x32x128xbf16>
    %154 = vector.shape_cast %153 : vector<1x32x128xbf16> to vector<32x128xbf16>
    %cst_56 = arith.constant dense<0.000000e+00> : vector<32x128xf32>
    %155 = tpu.matmul %152, %154, %cst_56 {dimension_numbers = #tpu.dot_dimension_numbers<[1], [0], [0], [1], [0, 0, 1, 1], [], []>} : vector<32x32xbf16>, vector<32x128xbf16>, vector<32x128xf32> -> vector<32x128xf32>
    %156 = arith.addf %150, %155 : vector<32x128xf32>
    %157 = vector.broadcast %9 : vector<1x128xf32> to vector<32x128xf32>
    %158 = arith.addf %156, %157 : vector<32x128xf32>
    %159 = arith.addf %103, %158 : vector<32x128xf32>
    %cst_57 = arith.constant dense<0.000000e+00> : vector<32xf32>
    %160 = vector.multi_reduction <add>, %159, %cst_57 [1] : vector<32x128xf32> to vector<32xf32>
    %161 = vector.shape_cast %160 : vector<32xf32> to vector<32x1xf32>
    %cst_58 = arith.constant 1.280000e+02 : f32
    %162 = vector.broadcast %cst_58 : f32 to vector<32x1xf32>
    %163 = arith.divf %161, %162 : vector<32x1xf32>
    %164 = vector.broadcast %163 : vector<32x1xf32> to vector<32x128xf32>
    %165 = arith.subf %159, %164 : vector<32x128xf32>
    %166 = arith.mulf %165, %165 : vector<32x128xf32>
    %cst_59 = arith.constant dense<0.000000e+00> : vector<32xf32>
    %167 = vector.multi_reduction <add>, %166, %cst_59 [1] : vector<32x128xf32> to vector<32xf32>
    %168 = vector.shape_cast %167 : vector<32xf32> to vector<32x1xf32>
    %cst_60 = arith.constant 1.280000e+02 : f32
    %169 = vector.broadcast %cst_60 : f32 to vector<32x1xf32>
    %170 = arith.divf %168, %169 : vector<32x1xf32>
    %171 = vector.broadcast %163 : vector<32x1xf32> to vector<32x128xf32>
    %172 = arith.subf %159, %171 : vector<32x128xf32>
    %cst_61 = arith.constant 9.99999974E-6 : f32
    %173 = vector.broadcast %cst_61 : f32 to vector<32x1xf32>
    %174 = arith.addf %170, %173 : vector<32x1xf32>
    %175 = math.rsqrt %174 : vector<32x1xf32>
    %176 = vector.broadcast %175 : vector<32x1xf32> to vector<32x128xf32>
    %177 = arith.mulf %172, %176 : vector<32x128xf32>
    %178 = vector.broadcast %13 : vector<1x128xf32> to vector<32x128xf32>
    %179 = arith.mulf %177, %178 : vector<32x128xf32>
    %180 = vector.broadcast %14 : vector<1x128xf32> to vector<32x128xf32>
    %181 = arith.addf %179, %180 : vector<32x128xf32>
    %182 = arith.truncf %181 : vector<32x128xf32> to vector<32x128xbf16>
    %cst_62 = arith.constant dense<0.000000e+00> : vector<32x256xf32>
    %183 = tpu.matmul %182, %4, %cst_62 {dimension_numbers = #tpu.dot_dimension_numbers<[1], [0], [0], [1], [0, 0, 1, 1], [], []>} : vector<32x128xbf16>, vector<128x256xbf16>, vector<32x256xf32> -> vector<32x256xf32>
    %184 = vector.broadcast %5 : vector<1x256xf32> to vector<32x256xf32>
    %185 = arith.addf %183, %184 : vector<32x256xf32>
    %cst_63 = arith.constant 5.000000e-01 : f32
    %186 = vector.broadcast %cst_63 : f32 to vector<32x256xf32>
    %187 = arith.mulf %186, %185 : vector<32x256xf32>
    %cst_64 = arith.constant 1.41421354 : f32
    %188 = vector.broadcast %cst_64 : f32 to vector<32x256xf32>
    %189 = arith.divf %185, %188 : vector<32x256xf32>
    %190 = math.erf %189 : vector<32x256xf32>
    %cst_65 = arith.constant 1.000000e+00 : f32
    %191 = vector.broadcast %cst_65 : f32 to vector<32x256xf32>
    %192 = arith.addf %191, %190 : vector<32x256xf32>
    %193 = arith.mulf %187, %192 : vector<32x256xf32>
    %194 = arith.truncf %193 : vector<32x256xf32> to vector<32x256xbf16>
    %cst_66 = arith.constant dense<0.000000e+00> : vector<32x128xf32>
    %195 = tpu.matmul %194, %6, %cst_66 {dimension_numbers = #tpu.dot_dimension_numbers<[1], [0], [0], [1], [0, 0, 1, 1], [], []>} : vector<32x256xbf16>, vector<256x128xbf16>, vector<32x128xf32> -> vector<32x128xf32>
    %196 = vector.broadcast %10 : vector<1x128xf32> to vector<32x128xf32>
    %197 = arith.addf %195, %196 : vector<32x128xf32>
    %198 = arith.addf %181, %197 : vector<32x128xf32>
    %cst_67 = arith.constant dense<0.000000e+00> : vector<32xf32>
    %199 = vector.multi_reduction <add>, %198, %cst_67 [1] : vector<32x128xf32> to vector<32xf32>
    %200 = vector.shape_cast %199 : vector<32xf32> to vector<32x1xf32>
    %cst_68 = arith.constant 1.280000e+02 : f32
    %201 = vector.broadcast %cst_68 : f32 to vector<32x1xf32>
    %202 = arith.divf %200, %201 : vector<32x1xf32>
    %203 = vector.broadcast %202 : vector<32x1xf32> to vector<32x128xf32>
    %204 = arith.subf %198, %203 : vector<32x128xf32>
    %205 = arith.mulf %204, %204 : vector<32x128xf32>
    %cst_69 = arith.constant dense<0.000000e+00> : vector<32xf32>
    %206 = vector.multi_reduction <add>, %205, %cst_69 [1] : vector<32x128xf32> to vector<32xf32>
    %207 = vector.shape_cast %206 : vector<32xf32> to vector<32x1xf32>
    %cst_70 = arith.constant 1.280000e+02 : f32
    %208 = vector.broadcast %cst_70 : f32 to vector<32x1xf32>
    %209 = arith.divf %207, %208 : vector<32x1xf32>
    %210 = vector.broadcast %202 : vector<32x1xf32> to vector<32x128xf32>
    %211 = arith.subf %198, %210 : vector<32x128xf32>
    %cst_71 = arith.constant 9.99999974E-6 : f32
    %212 = vector.broadcast %cst_71 : f32 to vector<32x1xf32>
    %213 = arith.addf %209, %212 : vector<32x1xf32>
    %214 = math.rsqrt %213 : vector<32x1xf32>
    %215 = vector.broadcast %214 : vector<32x1xf32> to vector<32x128xf32>
    %216 = arith.mulf %211, %215 : vector<32x128xf32>
    %217 = vector.broadcast %15 : vector<1x128xf32> to vector<32x128xf32>
    %218 = arith.mulf %216, %217 : vector<32x128xf32>
    %219 = vector.broadcast %16 : vector<1x128xf32> to vector<32x128xf32>
    %220 = arith.addf %218, %219 : vector<32x128xf32>
    %c0_72 = arith.constant 0 : index
    %c0_73 = arith.constant 0 : index
    %c0_74 = arith.constant 0 : index
    %221 = vector.load %arg12[%c0_72, %c0_73, %c0_74] : memref<1x32x128xf32, #tpu.memory_space<vmem>>, vector<1x32x128xf32>
    %222 = vector.shape_cast %221 : vector<1x32x128xf32> to vector<32x128xf32>
    %223 = vector.shape_cast %220 : vector<32x128xf32> to vector<1x32x128xf32>
    tpu.vector_store %arg12[%c0_72, %c0_73, %c0_74], %223 {strides = array<i32>} : memref<1x32x128xf32, #tpu.memory_space<vmem>>, vector<1x32x128xf32>,
    return
  }
  func.func @transform_0(%arg0: i32, %arg1: i32) -> (i32, i32, i32) {
    %c0_i32 = arith.constant 0 : i32
    %c0_i32_0 = arith.constant 0 : i32
    %c0_i32_1 = arith.constant 0 : i32
    return %arg0, %c0_i32, %c0_i32_0 : i32, i32, i32
  }
  func.func @transform_1(%arg0: i32, %arg1: i32) -> (i32, i32, i32) {
    %c0_i32 = arith.constant 0 : i32
    %c0_i32_0 = arith.constant 0 : i32
    %c0_i32_1 = arith.constant 0 : i32
    return %arg0, %c0_i32, %c0_i32_0 : i32, i32, i32
  }
  func.func @transform_2(%arg0: i32, %arg1: i32) -> (i32, i32) {
    %c0_i32 = arith.constant 0 : i32
    %c0_i32_0 = arith.constant 0 : i32
    %c0_i32_1 = arith.constant 0 : i32
    return %c0_i32, %c0_i32_0 : i32, i32
  }
  func.func @transform_3(%arg0: i32, %arg1: i32) -> (i32, i32) {
    %c0_i32 = arith.constant 0 : i32
    %c0_i32_0 = arith.constant 0 : i32
    %c0_i32_1 = arith.constant 0 : i32
    return %c0_i32, %c0_i32_0 : i32, i32
  }
  func.func @transform_4(%arg0: i32, %arg1: i32) -> (i32, i32) {
    %c0_i32 = arith.constant 0 : i32
    %c0_i32_0 = arith.constant 0 : i32
    %c0_i32_1 = arith.constant 0 : i32
    return %c0_i32, %c0_i32_0 : i32, i32
  }
  func.func @transform_5(%arg0: i32, %arg1: i32) -> (i32, i32, i32) {
    %c0_i32 = arith.constant 0 : i32
    %c0_i32_0 = arith.constant 0 : i32
    %c0_i32_1 = arith.constant 0 : i32
    %c0_i32_2 = arith.constant 0 : i32
    return %c0_i32, %c0_i32_0, %c0_i32_1 : i32, i32, i32
  }
  func.func @transform_6(%arg0: i32, %arg1: i32) -> (i32, i32) {
    %c0_i32 = arith.constant 0 : i32
    %c0_i32_0 = arith.constant 0 : i32
    %c0_i32_1 = arith.constant 0 : i32
    return %c0_i32, %c0_i32_0 : i32, i32
  }
  func.func @transform_7(%arg0: i32, %arg1: i32) -> (i32, i32) {
    %c0_i32 = arith.constant 0 : i32
    %c0_i32_0 = arith.constant 0 : i32
    %c0_i32_1 = arith.constant 0 : i32
    return %c0_i32, %c0_i32_0 : i32, i32
  }
  func.func @transform_8(%arg0: i32, %arg1: i32) -> (i32, i32) {
    %c0_i32 = arith.constant 0 : i32
    %c0_i32_0 = arith.constant 0 : i32
    %c0_i32_1 = arith.constant 0 : i32
    return %c0_i32, %c0_i32_0 : i32, i32
  }
  func.func @transform_9(%arg0: i32, %arg1: i32) -> (i32, i32) {
    %c0_i32 = arith.constant 0 : i32
    %c0_i32_0 = arith.constant 0 : i32
    %c0_i32_1 = arith.constant 0 : i32
    return %c0_i32, %c0_i32_0 : i32, i32
  }
  func.func @transform_10(%arg0: i32, %arg1: i32) -> (i32, i32, i32) {
    %c0_i32 = arith.constant 0 : i32
    %c0_i32_0 = arith.constant 0 : i32
    return %arg0, %arg1, %c0_i32 : i32, i32, i32
  }
}

</mosaic_0001>

<bundles_post_ra>
// kernel: tpu_custom_call.1
= control target key start
LH: loop header
LB: loop body
LE: loop exit
PB: predicated region body
PF: predicated region fallthrough
CT: control target
= control target key end

     0   :  { %s7353_s0 = inlined_call_operand.hbm [shape: bf16[2,64,128], index: 0, kind: input, shape index: {}]   ;;  %s7354_s1 = inlined_call_operand.hbm [shape: bf16[2,64,128], index: 1, kind: input, shape index: {}]   ;;  %s7355_s2 = inlined_call_operand.hbm [shape: bf16[128,128], index: 2, kind: input, shape index: {}]   ;;  %s7356_s3 = inlined_call_operand.hbm [shape: bf16[128,256], index: 3, kind: input, shape index: {}]   ;;  %s7357_s4 = inlined_call_operand.hbm [shape: f32[1,256], index: 4, kind: input, shape index: {}]   ;;  %s7358_s5 = inlined_call_operand.hbm [shape: bf16[4,32,128], index: 5, kind: input, shape index: {}]   ;;  %s7359_s6 = inlined_call_operand.hbm [shape: bf16[128,256], index: 6, kind: input, shape index: {}]   ;;  %s7360_s7 = inlined_call_operand.hbm [shape: f32[1,256], index: 7, kind: input, shape index: {}]   ;;  %s7361_s8 = inlined_call_operand.hbm [shape: bf16[256,128], index: 8, kind: input, shape index: {}]   ;;  %s7362_s9 = inlined_call_operand.hbm [shape: f32[9,128], index: 9, kind: input, shape index: {}]   ;;  %s7363_s10 = inlined_call_operand.hbm [shape: f32[2,64,128], index: 10, kind: output, shape index: {}]  }
   0x1   :  { %7402 = sst [smem:[#allocation89_spill]] %s7353_s0 }
   0x2   :  { %7403 = sst [smem:[#allocation90_spill]] %s7354_s1 }
   0x3   :  { %7404 = sst [smem:[#allocation91_spill]] %s7355_s2 }
   0x4   :  { %7405 = sst [smem:[#allocation92_spill]] %s7356_s3 }
   0x5   :  { %7406 = sst [smem:[#allocation93_spill]] %s7357_s4 }
   0x6   :  { %7407 = sst [smem:[#allocation94_spill]] %s7358_s5 }
   0x7   :  { %7408 = sst [smem:[#allocation95_spill]] %s7359_s6 }
   0x8   :  { %7409 = sst [smem:[#allocation96_spill]] %s7360_s7 }
   0x9   :  { %7410 = sst [smem:[#allocation97_spill]] %s7361_s8 }
   0xa   :  { %7411 = sst [smem:[#allocation98_spill]] %s7362_s9 }
   0xb   :  { %7412 = sst [smem:[#allocation99_spill]] %s7363_s10 }
   0xc   :  { %15 = vsyncpa [#allocation7], 0 }
   0xd   :  { %17 = vsyncpa [#allocation7 + $0x1], 0 }
   0xe   :  { %18 = vsyncpa [#allocation10], 0 }
   0xf   :  { %20 = vsyncpa [#allocation10 + $0x1], 0 }
  0x10   :  { %21 = vsyncpa [#allocation13], 0 }
  0x11   :  { %22 = vsyncpa [#allocation16], 0 }
  0x12   :  { %23 = vsyncpa [#allocation19], 0 }
  0x13   :  { %24 = vsyncpa [#allocation22], 0 }
  0x14   :  { %25 = vsyncpa [#allocation8], 0 }
  0x15   :  { %27 = vsyncpa [#allocation8 + $0x1], 0  ;;  %s5670_s13 = smov 0   ;;  %s5672_s14 = smov 0  }
  0x16   :  { %s5674_s15 = smov 0   ;;  %s5676_s16 = smov 0  }
  0x17   :  { %s5678_s17 = smov 0   ;;  %s5680_s18 = smov 0  }
  0x18   :  { %s5682_s19 = smov 0   ;;  %s5684_s20 = smov 0  }
  0x19   :  { %s5686_s21 = smov 0   ;;  %s5688_s22 = smov 0  }
  0x1a   :  { %s5690_s23 = smov 0  }
  0x1b LB: > { %7413 = sst [smem:[#allocation32_spill]] %s5548_s13  ;;  %s5726_s24 = sadd.s32 4294967295, %s5588_s23   ;;  %s5588_s23 = sphi %s5690_s23, %s33_s23   ;;  %s5584_s22 = sphi %s5688_s22, %s7569_s22   ;;  %s5580_s21 = sphi %s5686_s21, %s7568_s21   ;;  %s5576_s20 = sphi %s5684_s20, %s7567_s20   ;;  %s5572_s19 = sphi %s5682_s19, %s7566_s19   ;;  %s5568_s18 = sphi %s5680_s18, %s7574_s18   ;;  %s5564_s17 = sphi %s5678_s17, %s7573_s17   ;;  %s5560_s16 = sphi %s5676_s16, %s7572_s16   ;;  %s5556_s15 = sphi %s5674_s15, %s7571_s15   ;;  %s5552_s14 = sphi %s5672_s14, %s7570_s14   ;;  %s5548_s13 = sphi %s5670_s13, %s7565_s13  }
  0x1c   : > { %7414 = sst [smem:[#allocation33_spill]] %s5552_s14  ;;  %p4086_p0 = scmp.ge.s32.totalorder %s5588_s23, 1 }
  0x1d   : > { %7415 = sst [smem:[#allocation34_spill]] %s5572_s19  ;;  %p7367_p1 = scmp.eq.s32.totalorder %s5726_s24, 0 }
  0x1e   : > { %7416 = sst [smem:[#allocation35_spill]] %s5576_s20  ;;  %p298_p2 = scmp.lt.s32.totalorder %s5588_s23, 5 }
  0x1f   : > { %7417 = sst [smem:[#allocation36_spill]] %s5580_s21  ;;  %s5590_s26 = smov [#allocation11]  }
  0x20   : > { %7418 = sst [smem:[#allocation37_spill]] %s5584_s22  ;;  %p5731_p3 = pnand %p4086_p0, %p298_p2 }
  0x21   : > { %s310_s27 = sshll.u32 %s5590_s26, 4  ;;  %s5591_s29 = smov [#allocation12]   ;;  %s311_s27 = int_to_ptr.vmem [resolvable:$true] %s310_s27 }
  0x22   : > { %s7419_s25 = scalar_select %p5731_p3, 1, 0 }
  0x23   : > { %p4814_p4 = pneg %p5731_p3  ;;  %s323_s30 = sshll.u32 %s5591_s29, 4  ;;  %s5743_s30 = int_to_ptr.vmem [resolvable:$true] %s323_s30 }
  0x24   : > { %7420 = sst [smem:[#allocation38_spill]] %s7419_s25  ;;  %s7422_s2 = sld [smem:[#allocation91_spill]] }
  0x25   : > { %p5739_p5 = pnand %p4814_p4, %p7367_p1 }
  0x27   : > { %p5753_p7 = pneg %p5739_p5 }
  0x2a   : > { %s5158_s10 = scalar_lea.hbm %s7422_s2, 1024 }
  0x2b   : > { %p5159_p6 = scmp.ne.s32.totalorder %s7422_s2, %s5158_s10  ;;  %p5165_p10 = scmp.lt.u32.totalorder %s5158_s10, %s7422_s2 }
  0x2d   : > { %p5161_p8 = pnand %p5753_p7, %p5159_p6 }
  0x2f   : > { %p5162_p9 = pneg %p5161_p8 }
  0x31   : > { %p5167_p11 = pnand %p5165_p10, %p5162_p9 }
  0x33   : > { %5170 = shalt.err (!%p5167_p11)
}
  0x34   : > { %s5171_s11 = scalar_lea.vmem %s311_s27, 1024  ;;  %p5179_p2 = scmp.lt.s32.totalorder %s311_s27, %s311_s27 }
  0x35   : > { %p5172_p12 = scmp.ne.s32.totalorder %s311_s27, %s5171_s11  ;;  %p5180_p4 = scmp.lt.s32.totalorder %s5171_s11, %s5171_s11 }
  0x37   : > { %p5174_p13 = pnand %p5172_p12, %p5753_p7  ;;  %p5181_p1 = por %p5180_p4, %p5179_p2 }
  0x39   : > { %p5175_p0 = pneg %p5174_p13 }
  0x3b   : > { %p5182_p3 = pnand %p5181_p1, %p5175_p0 }
  0x3d   : > { %5185 = shalt.err (!%p5182_p3)
}
  0x3e   : > { %s7373_s19 = smov 64   ;;  %s7375_s20 = smov 4  }
  0x3f   : > { %4817 = dma.hbm_to_vmem [thread:$0]  (!%p5739_p5), %s7422_s2, 1024, %s311_s27, [#allocation10], %s7373_s19, %s7373_s19, %s7375_s20  }
  0x40   : > { %s7424_s3 = sld [smem:[#allocation92_spill]] }
  0x46   : > { %s5186_s1 = scalar_lea.hbm %s7424_s3, 2048 }
  0x47   : > { %p5187_p1 = scmp.ne.s32.totalorder %s7424_s3, %s5186_s1  ;;  %p5193_p8 = scmp.lt.u32.totalorder %s5186_s1, %s7424_s3 }
  0x49   : > { %p5189_p3 = pnand %p5187_p1, %p5753_p7 }
  0x4b   : > { %p5190_p6 = pneg %p5189_p3 }
  0x4d   : > { %p5195_p9 = pnand %p5193_p8, %p5190_p6 }
  0x4f   : > { %5198 = shalt.err (!%p5195_p9)
}
  0x50   : > { %s5199_s27 = scalar_lea.vmem %s5743_s30, 2048  ;;  %p5207_p13 = scmp.lt.s32.totalorder %s5743_s30, %s5743_s30 }
  0x51   : > { %p5200_p10 = scmp.ne.s32.totalorder %s5743_s30, %s5199_s27  ;;  %p5208_p0 = scmp.lt.s32.totalorder %s5199_s27, %s5199_s27 }
  0x53   : > { %p5202_p11 = pnand %p5200_p10, %p5753_p7  ;;  %p5209_p2 = por %p5208_p0, %p5207_p13 }
  0x55   : > { %p5203_p12 = pneg %p5202_p11 }
  0x57   : > { %p5210_p4 = pnand %p5209_p2, %p5203_p12 }
  0x59   : > { %5213 = shalt.err (!%p5210_p4)
}
  0x5a   : > { %s7377_s0 = smov 128   ;;  %s7379_s1 = smov 8  }
  0x5b   : > { %4820 = dma.hbm_to_vmem [thread:$0]  (!%p5739_p5), %s7424_s3, 2048, %s5743_s30, [#allocation13], %s7377_s0, %s7377_s0, %s7379_s1  }
  0x5c   : > { %s5596_s10 = smov [#allocation15]   ;;  %s5597_s12 = smov [#allocation18]  }
  0x5d   : > { %s347_s25 = sshll.u32 %s5596_s10, 4  ;;  %s374_s29 = sshll.u32 %s5597_s12, 4  ;;  %s348_s25 = int_to_ptr.vmem [resolvable:$true] %s347_s25  ;;  %s5798_s29 = int_to_ptr.vmem [resolvable:$true] %s374_s29 }
  0x5e   : > { %s7425_s5 = sld [smem:[#allocation94_spill]] }
  0x64   : > { %s5214_s19 = scalar_lea.hbm %s7425_s5, 1024 }
  0x65   : > { %p5215_p1 = scmp.ne.s32.totalorder %s7425_s5, %s5214_s19  ;;  %p5221_p8 = scmp.lt.u32.totalorder %s5214_s19, %s7425_s5 }
  0x67   : > { %p5217_p3 = pnand %p5215_p1, %p5753_p7 }
  0x69   : > { %p5218_p6 = pneg %p5217_p3 }
  0x6b   : > { %p5223_p9 = pnand %p5221_p8, %p5218_p6 }
  0x6d   : > { %5226 = shalt.err (!%p5223_p9)
}
  0x6e   : > { %s5227_s14 = scalar_lea.vmem %s348_s25, 1024  ;;  %p5235_p13 = scmp.lt.s32.totalorder %s348_s25, %s348_s25 }
  0x6f   : > { %p5228_p10 = scmp.ne.s32.totalorder %s348_s25, %s5227_s14  ;;  %p5236_p0 = scmp.lt.s32.totalorder %s5227_s14, %s5227_s14 }
  0x71   : > { %p5230_p11 = pnand %p5228_p10, %p5753_p7  ;;  %p5237_p2 = por %p5236_p0, %p5235_p13 }
  0x73   : > { %p5231_p12 = pneg %p5230_p11 }
  0x75   : > { %p5238_p4 = pnand %p5237_p2, %p5231_p12 }
  0x77   : > { %5241 = shalt.err (!%p5238_p4)
}
  0x78   : > { %s7426_s2 = smov 4   ;;  %s7427_s20 = smov 64  }
  0x79   : > { %4826 = dma.hbm_to_vmem [thread:$0]  (!%p5739_p5), %s7425_s5, 1024, %s348_s25, [#allocation16], %s7427_s20, %s7427_s20, %s7426_s2  }
  0x7a   : > { %s7428_s7 = sld [smem:[#allocation96_spill]] }
  0x80   : > { %s5242_s27 = scalar_lea.hbm %s7428_s7, 32 }
  0x81   : > { %p5243_p1 = scmp.ne.s32.totalorder %s7428_s7, %s5242_s27  ;;  %p5249_p8 = scmp.lt.u32.totalorder %s5242_s27, %s7428_s7 }
  0x83   : > { %p5245_p3 = pnand %p5243_p1, %p5753_p7 }
  0x85   : > { %p5246_p6 = pneg %p5245_p3 }
  0x87   : > { %p5251_p9 = pnand %p5249_p8, %p5246_p6 }
  0x89   : > { %5254 = shalt.err (!%p5251_p9)
}
  0x8a   : > { %s5255_s25 = scalar_lea.vmem %s5798_s29, 32  ;;  %p5263_p13 = scmp.lt.s32.totalorder %s5798_s29, %s5798_s29 }
  0x8b   : > { %p5256_p10 = scmp.ne.s32.totalorder %s5798_s29, %s5255_s25  ;;  %p5264_p0 = scmp.lt.s32.totalorder %s5255_s25, %s5255_s25 }
  0x8d   : > { %p5258_p11 = pnand %p5256_p10, %p5753_p7  ;;  %p5265_p2 = por %p5264_p0, %p5263_p13 }
  0x8f   : > { %p5259_p12 = pneg %p5258_p11 }
  0x91   : > { %p5266_p4 = pnand %p5265_p2, %p5259_p12 }
  0x93   : > { %5269 = shalt.err (!%p5266_p4)
}
  0x94   : > { %4832 = dma.hbm_to_vmem [thread:$0]  (!%p5739_p5), %s7428_s7, 32, %s5798_s29, [#allocation19]  }
  0x95   : > { %s5598_s19 = smov [#allocation14]   ;;  %s5599_s11 = smov [#allocation17]  }
  0x96   : > { %s337_s12 = sshll.u32 %s5598_s19, 4  ;;  %s360_s27 = sshll.u32 %s5599_s11, 4  ;;  %s338_s12 = int_to_ptr.vmem [resolvable:$true] %s337_s12  ;;  %s5844_s27 = int_to_ptr.vmem [resolvable:$true] %s360_s27 }
  0x97   : > { %s7429_s4 = sld [smem:[#allocation93_spill]] }
  0x9d   : > { %s5270_s14 = scalar_lea.hbm %s7429_s4, 32 }
  0x9e   : > { %p5271_p1 = scmp.ne.s32.totalorder %s7429_s4, %s5270_s14  ;;  %p5277_p8 = scmp.lt.u32.totalorder %s5270_s14, %s7429_s4 }
  0xa0   : > { %p5273_p3 = pnand %p5271_p1, %p5753_p7 }
  0xa2   : > { %p5274_p6 = pneg %p5273_p3 }
  0xa4   : > { %p5279_p9 = pnand %p5277_p8, %p5274_p6 }
  0xa6   : > { %5282 = shalt.err (!%p5279_p9)
}
  0xa7   : > { %s5283_s10 = scalar_lea.vmem %s338_s12, 32  ;;  %p5291_p13 = scmp.lt.s32.totalorder %s338_s12, %s338_s12 }
  0xa8   : > { %p5284_p10 = scmp.ne.s32.totalorder %s338_s12, %s5283_s10  ;;  %p5292_p0 = scmp.lt.s32.totalorder %s5283_s10, %s5283_s10 }
  0xaa   : > { %p5286_p11 = pnand %p5284_p10, %p5753_p7  ;;  %p5293_p2 = por %p5292_p0, %p5291_p13 }
  0xac   : > { %p5287_p12 = pneg %p5286_p11 }
  0xae   : > { %p5294_p4 = pnand %p5293_p2, %p5287_p12 }
  0xb0   : > { %5297 = shalt.err (!%p5294_p4)
}
  0xb1   : > { %4823 = dma.hbm_to_vmem [thread:$0]  (!%p5739_p5), %s7429_s4, 32, %s338_s12, [#allocation13]  }
  0xb2   : > { %s7430_s6 = sld [smem:[#allocation95_spill]] }
  0xb8   : > { %s5298_s30 = scalar_lea.hbm %s7430_s6, 2048 }
  0xb9   : > { %p5299_p1 = scmp.ne.s32.totalorder %s7430_s6, %s5298_s30  ;;  %p5305_p8 = scmp.lt.u32.totalorder %s5298_s30, %s7430_s6 }
  0xbb   : > { %p5301_p3 = pnand %p5299_p1, %p5753_p7 }
  0xbd   : > { %p5302_p6 = pneg %p5301_p3 }
  0xbf   : > { %p5307_p9 = pnand %p5305_p8, %p5302_p6 }
  0xc1   : > { %5310 = shalt.err (!%p5307_p9)
}
  0xc2   : > { %s5311_s12 = scalar_lea.vmem %s5844_s27, 2048  ;;  %p5319_p13 = scmp.lt.s32.totalorder %s5844_s27, %s5844_s27 }
  0xc3   : > { %p5312_p10 = scmp.ne.s32.totalorder %s5844_s27, %s5311_s12  ;;  %p5320_p0 = scmp.lt.s32.totalorder %s5311_s12, %s5311_s12 }
  0xc5   : > { %p5314_p11 = pnand %p5312_p10, %p5753_p7  ;;  %p5321_p2 = por %p5320_p0, %p5319_p13 }
  0xc7   : > { %p5315_p12 = pneg %p5314_p11 }
  0xc9   : > { %p5322_p4 = pnand %p5321_p2, %p5315_p12 }
  0xcb   : > { %5325 = shalt.err (!%p5322_p4)
}
  0xcc   : > { %s7431_s10 = smov 8   ;;  %s7432_s1 = smov 128  }
  0xcd   : > { %4829 = dma.hbm_to_vmem [thread:$0]  (!%p5739_p5), %s7430_s6, 2048, %s5844_s27, [#allocation16], %s7432_s1, %s7432_s1, %s7431_s10  }
  0xce   : > { %s5600_s13 = smov [#allocation20]   ;;  %s5601_s14 = smov [#allocation21]  }
  0xcf   : > { %s384_s30 = sshll.u32 %s5600_s13, 4  ;;  %s397_s25 = sshll.u32 %s5601_s14, 4  ;;  %s385_s30 = int_to_ptr.vmem [resolvable:$true] %s384_s30  ;;  %s5890_s25 = int_to_ptr.vmem [resolvable:$true] %s397_s25 }
  0xd0   : > { %s7433_s8 = sld [smem:[#allocation97_spill]] }
  0xd6   : > { %s5326_s12 = scalar_lea.hbm %s7433_s8, 2048 }
  0xd7   : > { %p5327_p1 = scmp.ne.s32.totalorder %s7433_s8, %s5326_s12  ;;  %p5333_p8 = scmp.lt.u32.totalorder %s5326_s12, %s7433_s8 }
  0xd9   : > { %p5329_p3 = pnand %p5327_p1, %p5753_p7 }
  0xdb   : > { %p5330_p6 = pneg %p5329_p3 }
  0xdd   : > { %p5335_p9 = pnand %p5333_p8, %p5330_p6 }
  0xdf   : > { %5338 = shalt.err (!%p5335_p9)
}
  0xe0   : > { %s5339_s11 = scalar_lea.vmem %s385_s30, 2048  ;;  %p5347_p13 = scmp.lt.s32.totalorder %s385_s30, %s385_s30 }
  0xe1   : > { %p5340_p10 = scmp.ne.s32.totalorder %s385_s30, %s5339_s11  ;;  %p5348_p0 = scmp.lt.s32.totalorder %s5339_s11, %s5339_s11 }
  0xe3   : > { %p5342_p11 = pnand %p5340_p10, %p5753_p7  ;;  %p5349_p2 = por %p5348_p0, %p5347_p13 }
  0xe5   : > { %p5343_p12 = pneg %p5342_p11 }
  0xe7   : > { %p5350_p4 = pnand %p5349_p2, %p5343_p12 }
  0xe9   : > { %5353 = shalt.err (!%p5350_p4)
}
  0xea   : > { %4835 = dma.hbm_to_vmem [thread:$0]  (!%p5739_p5), %s7433_s8, 2048, %s385_s30, [#allocation19], %s7427_s20, %s7427_s20, %s7426_s2  }
  0xeb   : > { %s7434_s9 = sld [smem:[#allocation98_spill]] }
  0xf1   : > { %s5354_s0 = scalar_lea.hbm %s7434_s9, 256 }
  0xf2   : > { %p5355_p1 = scmp.ne.s32.totalorder %s7434_s9, %s5354_s0  ;;  %p5361_p8 = scmp.lt.u32.totalorder %s5354_s0, %s7434_s9 }
  0xf4   : > { %p5357_p3 = pnand %p5355_p1, %p5753_p7 }
  0xf6   : > { %p5358_p6 = pneg %p5357_p3 }
  0xf8   : > { %p5363_p9 = pnand %p5361_p8, %p5358_p6 }
  0xfa   : > { %5366 = shalt.err (!%p5363_p9)
}
  0xfb   : > { %s5367_s30 = scalar_lea.vmem %s5890_s25, 256  ;;  %p5375_p13 = scmp.lt.s32.totalorder %s5890_s25, %s5890_s25 }
  0xfc   : > { %p5368_p10 = scmp.ne.s32.totalorder %s5890_s25, %s5367_s30  ;;  %p5376_p0 = scmp.lt.s32.totalorder %s5367_s30, %s5367_s30 }
  0xfe   : > { %p5370_p11 = pnand %p5368_p10, %p5753_p7  ;;  %p5377_p2 = por %p5376_p0, %p5375_p13 }
 0x100   : > { %p5371_p12 = pneg %p5370_p11 }
 0x102   : > { %p5378_p4 = pnand %p5377_p2, %p5371_p12 }
 0x104   : > { %5381 = shalt.err (!%p5378_p4)
}
 0x105   : > { %4838 = dma.hbm_to_vmem [thread:$0]  (!%p5739_p5), %s7434_s9, 256, %s5890_s25, [#allocation22], %s7432_s1, %s7432_s1, %s7431_s10  }
 0x106   : > { %s4085_s28 = sadd.s32 4294967294, %s5588_s23   ;;  %s7435_s26 = sld [smem:[#allocation33_spill]] }
 0x107   : > { %s42_s4 = sadd.s32 1, %s5580_s21  ;;  %s45_s13 = sadd.s32 1, %s5584_s22 }
 0x108   : > { %p43_p7 = scmp.ge.s32.totalorder %s42_s4, 2  ;;  %s52_s14 = sadd.s32 1, %s5568_s18 }
 0x109   : > { %p59_p1 = scmp.ne.s32.totalorder %s5568_s18, %s5564_s17  ;;  %p60_p3 = scmp.eq.s32.totalorder %s5588_s23, 0 }
 0x10a   : > { %s7576_s4 = smov (%p43_p7, %s42_s4), 0  ;;  %s7578_s13 = smov (!%p43_p7, %s45_s13), %s5584_s22 }
 0x10b   : > { %7436 = sst [smem:[#allocation39_spill]] %s7576_s4  ;;  %p65_p6 = scmp.ne.s32.totalorder %s5564_s17, %s5560_s16 }
 0x10c   : > { %s7437_s10 = sld [smem:[#allocation32_spill]]  ;;  %p47_p5 = scmp.ge.s32.totalorder %s7578_s13, 2 }
 0x10d   : > { %s270_s1 = ssub.s32 %s5580_s21, %s7576_s4  ;;  %p5953_p8 = por %p60_p3, %p59_p1 }
 0x10e   : > { %p7439_p9 = scmp.eq.s32.totalorder %s5726_s24, 0  ;;  %s7580_s13 = smov (%p47_p5, %s7578_s13), 0 }
 0x10f   : > { %7441 = sst [smem:[#allocation40_spill]] %s7580_s13  ;;  %s274_s29 = sadd.s32 1, %s5556_s15 }
 0x110   : > { %p5959_p10 = por %p7439_p9, %p65_p6  ;;  %p284_p11 = scmp.ne.s32.totalorder %s5556_s15, %s7435_s26 }
 0x111   : > { %s49_s16 = ssub.s32 %s5584_s22, %s7580_s13  ;;  %p285_p12 = scmp.eq.s32.totalorder %s5726_s24, 3 }
 0x112   : > { %p50_p13 = scmp.eq.s32.totalorder %s49_s16, 0  ;;  %s271_s12 = sor.u32 %s270_s1, %s49_s16 }
 0x113   : > { %p272_p0 = scmp.eq.s32.totalorder %s271_s12, 0  ;;  %p5971_p2 = por %p285_p12, %p284_p11 }
 0x114   : > { %s5976_s27 = scalar_select %p50_p13, %s5568_s18, %s52_s14  }
 0x115   : > { %s7442_s19 = scalar_select %p5971_p2, 1, 0 }
 0x116   : > { %s5979_s30 = scalar_select %p272_p0, %s5556_s15, %s274_s29  }
 0x117   : > { %p290_p4 = scmp.ne.s32.totalorder %s7435_s26, %s7437_s10  ;;  %p291_p7 = scmp.eq.s32.totalorder %s4085_s28, 3 }
 0x118   : > { %p4858_p1 = scmp.lt.s32.totalorder %s5588_s23, 4  ;;  %s411_s11 = sand.u32 1, %s5568_s18  }
 0x119   : > { %p5985_p3 = por %p291_p7, %p290_p4  ;;  %s5989_s5 = sshll.u32 %s411_s11, 5 }
 0x11a   : > { %s4246_s1 = sshll.u32 %s5584_s22, 9  ;;  %s7444_s6 = sld [smem:[#allocation89_spill]] }
 0x11b   : > { %s7443_s3 = scalar_select %p5985_p3, 1, 0 }
 0x11c   : > { %s415_s28 = scalar_lea.vmem [#allocation6], %s5989_s5  ;;  %p6000_p6 = pnand %p4858_p1, %p5953_p8 }
 0x11d   : > { %s422_s26 = sshll.u32 %s415_s28, 4  ;;  %s7446_s16 = sld [smem:[#allocation90_spill]]  ;;  %s6004_s26 = int_to_ptr.vmem [resolvable:$true] %s422_s26 }
 0x11e   : > { %s6011_s9 = scalar_lea.sflag [#allocation7], %s411_s11  ;;  %p5384_p9 = pneg %p6000_p6 }
 0x120   : > { %s5995_s7 = scalar_lea.hbm %s7444_s6, %s4246_s1  ;;  %s5387_s4 = scalar_lea.hbm %s7444_s6, 1024 }
 0x121   : > { %s5382_s13 = scalar_lea.hbm %s5995_s7, 512  ;;  %p5388_p12 = scmp.lt.u32.totalorder %s5995_s7, %s7444_s6 }
 0x122   : > { %p5383_p5 = scmp.ne.s32.totalorder %s5995_s7, %s5382_s13  ;;  %p5389_p13 = scmp.lt.u32.totalorder %s5387_s4, %s5382_s13 }
 0x123   : > { %s7447_s12 = smov %s7446_s16  ;;  %s6009_s8 = scalar_lea.hbm %s7446_s16, %s4246_s1 }
 0x124   : > { %p5385_p8 = pnand %p5384_p9, %p5383_p5  ;;  %p5390_p0 = por %p5389_p13, %p5388_p12 }
 0x125   : > { %p5391_p4 = scmp.lt.u32.totalorder %s5382_s13, %s5995_s7 }
 0x126   : > { %p5386_p11 = pneg %p5385_p8 }
 0x127   : > { %p5392_p7 = por %p5391_p4, %p5390_p0 }
 0x129   : > { %p5393_p1 = pnand %p5392_p7, %p5386_p11 }
 0x12b   : > { %5396 = shalt.err (!%p5393_p1)
}
 0x12c   : > { %s5397_s11 = scalar_lea.vmem %s6004_s26, 512  ;;  %s5602_s1 = smov [#allocation6]  }
 0x12d   : > { %p5398_p5 = scmp.ne.s32.totalorder %s6004_s26, %s5397_s11  ;;  %s5402_s10 = sshll.u32 %s5602_s1, 4  ;;  %s5403_s10 = int_to_ptr.vmem [resolvable:$false] %s5402_s10 }
 0x12e   : > { %s5404_s21 = scalar_lea.vmem %s5403_s10, 1024  ;;  %p5405_p2 = scmp.lt.s32.totalorder %s6004_s26, %s5403_s10 }
 0x12f   : > { %p5400_p8 = pnand %p5398_p5, %p5384_p9  ;;  %p5406_p12 = scmp.lt.s32.totalorder %s5404_s21, %s5397_s11 }
 0x131   : > { %p5401_p3 = pneg %p5400_p8  ;;  %p5407_p13 = por %p5406_p12, %p5405_p2 }
 0x133   : > { %p5408_p0 = pnand %p5407_p13, %p5401_p3 }
 0x135   : > { %5411 = shalt.err (!%p5408_p0)
}
 0x136   : > { %4842 = dma.hbm_to_vmem [thread:$0]  (!%p6000_p6), %s5995_s7, 512, %s6004_s26, %s6011_s9, %s7427_s20, %s7427_s20, %s7426_s2  }
 0x137   : > { %s436_s22 = scalar_lea.vmem [#allocation9], %s5989_s5  ;;  %s432_s13 = sand.u32 1, %s5588_s23  }
 0x138   : > { %s443_s4 = sshll.u32 %s436_s22, 4  ;;  %s6046_s29 = scalar_lea.sflag [#allocation10], %s432_s13  ;;  %s6044_s4 = int_to_ptr.vmem [resolvable:$true] %s443_s4 }
 0x139   : > { %s5412_s16 = scalar_lea.hbm %s6009_s8, 512  ;;  %s5417_s11 = scalar_lea.hbm %s7447_s12, 1024 }
 0x13a   : > { %p5413_p2 = scmp.ne.s32.totalorder %s6009_s8, %s5412_s16  ;;  %p5418_p4 = scmp.lt.u32.totalorder %s6009_s8, %s7447_s12 }
 0x13b   : > { %p5419_p7 = scmp.lt.u32.totalorder %s5417_s11, %s5412_s16  ;;  %p5421_p5 = scmp.lt.u32.totalorder %s5412_s16, %s6009_s8 }
 0x13c   : > { %p5415_p3 = pnand %p5413_p2, %p5384_p9 }
 0x13d   : > { %p5420_p1 = por %p5419_p7, %p5418_p4 }
 0x13e   : > { %p5416_p11 = pneg %p5415_p3 }
 0x13f   : > { %p5422_p8 = por %p5421_p5, %p5420_p1 }
 0x141   : > { %p5423_p12 = pnand %p5422_p8, %p5416_p11 }
 0x143   : > { %5426 = shalt.err (!%p5423_p12)
}
 0x144   : > { %s5427_s5 = scalar_lea.vmem %s6044_s4, 512  ;;  %s5603_s7 = smov [#allocation9]  }
 0x145   : > { %p5428_p13 = scmp.ne.s32.totalorder %s6044_s4, %s5427_s5  ;;  %s5432_s9 = sshll.u32 %s5603_s7, 4  ;;  %s5433_s9 = int_to_ptr.vmem [resolvable:$false] %s5432_s9 }
 0x146   : > { %s5434_s26 = scalar_lea.vmem %s5433_s9, 1024  ;;  %p5435_p3 = scmp.lt.s32.totalorder %s6044_s4, %s5433_s9 }
 0x147   : > { %p5430_p0 = pnand %p5428_p13, %p5384_p9  ;;  %p5436_p4 = scmp.lt.s32.totalorder %s5434_s26, %s5427_s5 }
 0x149   : > { %p5431_p2 = pneg %p5430_p0  ;;  %p5437_p7 = por %p5436_p4, %p5435_p3 }
 0x14b   : > { %p5438_p1 = pnand %p5437_p7, %p5431_p2 }
 0x14d   : > { %5441 = shalt.err (!%p5438_p1)
}
 0x14e   : > { %4845 = dma.hbm_to_vmem [thread:$0]  (!%p6000_p6), %s6009_s8, 512, %s6044_s4, %s6046_s29, %s7427_s20, %s7427_s20, %s7426_s2  }
 0x14f   : > { %s7448_s21 = sld [smem:[#allocation38_spill]] }
 0x155   : > { %p7449_p9 = scmp.ne.s32.totalorder %s7448_s21, 0 }
 0x157   : > { %455 = sbr.rel (%p7449_p9) target bundleno = 5026 (0x13a2), region = 60 }
 0x15e   : > { %s457_s22 = sand.u32 1, %s5564_s17  }
 0x15f   : > { %s4103_s13 = sshll.u32 %s457_s22, 5  ;;  %s458_s16 = scalar_lea.sflag [#allocation7], %s457_s22 }
 0x160   : > { %s6078_s25 = scalar_lea.vmem [#allocation6], %s4103_s13 }
 0x161   : > { %5515 = dma.done.wait (%p5959_p10), %s458_s16, 512  }
 0x162   : > { %5517 = vsyncadd (%p5959_p10), %s458_s16, 4294966784  ;;  %s466_s14 = sand.u32 1, %s5726_s24   ;;  %s6085_s8 = scalar_lea.vmem [#allocation9], %s4103_s13 }
 0x163   : > { %s467_s28 = scalar_lea.sflag [#allocation10], %s466_s14 }
 0x164   : > { %5519 = dma.done.wait (%p5959_p10), %s467_s28, 512  }
 0x165   : > { %5521 = vsyncadd (%p5959_p10), %s467_s28, 4294966784  ;;  %p7450_p6 = scmp.eq.s32.totalorder %s5726_s24, 0 }
 0x167   : > { %5523 = dma.done.wait (%p7450_p6), [#allocation10], 1024   ;;  %p7451_p11 = pmov %p7450_p6 }
 0x168   : > { %p7452_p5 = pmov %p7450_p6 }
 0x169   : > { %5525 = vsyncadd (%p7451_p11), [#allocation10], 4294966272 }
 0x16a   : > { %5527 = dma.done.wait (%p7452_p5), [#allocation13], 2080   ;;  %p7453_p8 = pmov %p7452_p5 }
 0x16b   : > { %p7454_p12 = pmov %p7452_p5 }
 0x16c   : > { %5529 = vsyncadd (%p7453_p8), [#allocation13], 4294965216 }
 0x16d   : > { %5531 = dma.done.wait (%p7454_p12), [#allocation16], 3072   ;;  %p7455_p13 = pmov %p7452_p5 }
 0x16e   : > { %p7456_p10 = pmov %p7452_p5 }
 0x16f   : > { %5533 = vsyncadd (%p7455_p13), [#allocation16], 4294964224 }
 0x170   : > { %5535 = dma.done.wait (%p7456_p10), [#allocation19], 2080   ;;  %p7457_p0 = pmov %p7452_p5 }
 0x172   : > { %5537 = vsyncadd (%p7457_p0), [#allocation19], 4294965216  ;;  %p7458_p2 = pmov %p7457_p0 }
 0x173   : > { %p7459_p3 = pmov %p7457_p0 }
 0x174   : > { %5539 = dma.done.wait (%p7458_p2), [#allocation22], 256  }
 0x175   : > { %5541 = vsyncadd (%p7459_p3), [#allocation22], 4294967040  ;;  %s7460_s2 = sld [smem:[#allocation33_spill]]  ;;  %v6116_v0 = vld [vmem:[#allocation11] sm:$0xf]  ;;  %v6150_v17 = vld [vmem:[#allocation12 + $0x8] sm:$0xff] }
 0x176   : > { %v6118_v1 = vld [vmem:[#allocation11 + $0x4] sm:$0xf]  ;;  %v6120_v2 = vld [vmem:[#allocation11 + $0x8] sm:$0xf]  ;;  %v6122_v3 = vld [vmem:[#allocation11 + $0xc] sm:$0xf] }
 0x177   : > { %v6124_v4 = vld [vmem:[#allocation11 + $0x10] sm:$0xf]  ;;  %v6126_v5 = vld [vmem:[#allocation11 + $0x14] sm:$0xf]  ;;  %v6128_v6 = vld [vmem:[#allocation11 + $0x18] sm:$0xf] }
 0x178   : > { %v6130_v7 = vld [vmem:[#allocation11 + $0x1c] sm:$0xf]  ;;  %v6132_v8 = vld [vmem:[#allocation11 + $0x20] sm:$0xf]  ;;  %v6134_v9 = vld [vmem:[#allocation11 + $0x24] sm:$0xf] }
 0x179   : > { %v6136_v10 = vld [vmem:[#allocation11 + $0x28] sm:$0xf]  ;;  %v6138_v11 = vld [vmem:[#allocation11 + $0x2c] sm:$0xf]  ;;  %v6140_v12 = vld [vmem:[#allocation11 + $0x30] sm:$0xf] }
 0x17a   : > { %v6142_v13 = vld [vmem:[#allocation11 + $0x34] sm:$0xf]  ;;  %v6144_v14 = vld [vmem:[#allocation11 + $0x38] sm:$0xf]  ;;  %v6146_v15 = vld [vmem:[#allocation11 + $0x3c] sm:$0xf] }
 0x17b   : > { %s541_s20 = sand.u32 1, %s7460_s2   ;;  %v6148_v16 = vld [vmem:[#allocation12] sm:$0xff]  ;;  %v6152_v18 = vld [vmem:[#allocation12 + $0x10] sm:$0xff]  ;;  %v6154_v19 = vld [vmem:[#allocation12 + $0x18] sm:$0xff]  ;;  %s7509_s4 = sld [smem:[#allocation34_spill]] }
 0x17c   : > { %s6114_s0 = sshll.u32 %s541_s20, 5  ;;  %v6156_v20 = vld [vmem:[#allocation12 + $0x20] sm:$0xff]  ;;  %v6158_v21 = vld [vmem:[#allocation12 + $0x28] sm:$0xff]  ;;  %v6160_v22 = vld [vmem:[#allocation12 + $0x30] sm:$0xff] }
 0x17d   : > { %v6162_v23 = vld [vmem:[#allocation12 + $0x38] sm:$0xff]  ;;  %v6164_v24 = vld [vmem:[#allocation12 + $0x40] sm:$0xff]  ;;  %v6166_v25 = vld [vmem:[#allocation12 + $0x48] sm:$0xff]  ;;  %s6317_s24 = scalar_lea.vmem [#allocation23], %s6114_s0 }
 0x17e   : > { %v6168_v26 = vld [vmem:[#allocation12 + $0x50] sm:$0xff]  ;;  %v6170_v27 = vld [vmem:[#allocation12 + $0x58] sm:$0xff]  ;;  %v6172_v28 = vld [vmem:[#allocation12 + $0x60] sm:$0xff] }
 0x17f   : > { %v6174_v29 = vld [vmem:[#allocation12 + $0x68] sm:$0xff]  ;;  %v6176_v30 = vld [vmem:[#allocation12 + $0x70] sm:$0xff]  ;;  %v6178_v31 = vld [vmem:[#allocation12 + $0x78] sm:$0xff] }
 0x180   : > { %v6180_v32 = vld [vmem:[#allocation14] sm:$0x3]  ;;  %v6182_v33 = vld [vmem:[#allocation15] sm:$0xf]  ;;  %v6184_v34 = vld [vmem:[#allocation15 + $0x4] sm:$0xf] }
 0x181   : > { %v6186_v35 = vld [vmem:[#allocation15 + $0x8] sm:$0xf]  ;;  %v6188_v36 = vld [vmem:[#allocation15 + $0xc] sm:$0xf]  ;;  %v6190_v37 = vld [vmem:[#allocation15 + $0x10] sm:$0xf] }
 0x182   : > { %v6192_v38 = vld [vmem:[#allocation15 + $0x14] sm:$0xf]  ;;  %v6194_v39 = vld [vmem:[#allocation15 + $0x18] sm:$0xf]  ;;  %v6196_v40 = vld [vmem:[#allocation15 + $0x1c] sm:$0xf] }
 0x183   : > { %v6198_v41 = vld [vmem:[#allocation15 + $0x20] sm:$0xf]  ;;  %v6200_v42 = vld [vmem:[#allocation15 + $0x24] sm:$0xf]  ;;  %v6202_v43 = vld [vmem:[#allocation15 + $0x28] sm:$0xf] }
 0x184   : > { %v6204_v44 = vld [vmem:[#allocation15 + $0x2c] sm:$0xf]  ;;  %v6206_v45 = vld [vmem:[#allocation15 + $0x30] sm:$0xf]  ;;  %v6208_v46 = vld [vmem:[#allocation15 + $0x34] sm:$0xf] }
 0x185   : > { %v6210_v47 = vld [vmem:[#allocation15 + $0x38] sm:$0xf]  ;;  %v6212_v48 = vld [vmem:[#allocation15 + $0x3c] sm:$0xf]  ;;  %v6214_v49 = vld [vmem:[#allocation17] sm:$0xff]  ;;  %p4114_p4 = scmp.ne.s32.totalorder %s7509_s4, 0 }
 0x186   : > { %v6216_v50 = vld [vmem:[#allocation17 + $0x8] sm:$0xff]  ;;  %v6218_v51 = vld [vmem:[#allocation17 + $0x10] sm:$0xff]  ;;  %v6220_v52 = vld [vmem:[#allocation17 + $0x18] sm:$0xff]  ;;  %vm894_vm0 = vcmask (!%p4114_p4), 261120   ;;  %s5605_s29 = smov (!%p4114_p4), 96   ;;  %s5606_s11 = smov (!%p4114_p4), 64  }
 0x187   : > { %7461 = vst [vmem:[#allocation41_spill] sm:$0xff] %v6218_v51  ;;  %7462 = vst [vmem:[#allocation42_spill] sm:$0xff] %v6220_v52  ;;  %v6222_v53 = vld [vmem:[#allocation17 + $0x20] sm:$0xff]  ;;  %v6224_v54 = vld [vmem:[#allocation17 + $0x28] sm:$0xff]  ;;  %s5607_s1 = smov (!%p4114_p4), 32  }
 0x188   : > { %7463 = vst [vmem:[#allocation43_spill] sm:$0xff] %v6222_v53  ;;  %7464 = vst [vmem:[#allocation44_spill] sm:$0xff] %v6224_v54  ;;  %v6226_v55 = vld [vmem:[#allocation17 + $0x30] sm:$0xff]  ;;  %v6228_v56 = vld [vmem:[#allocation17 + $0x38] sm:$0xff] }
 0x189   : > { %7465 = vst [vmem:[#allocation45_spill] sm:$0xff] %v6226_v55  ;;  %7466 = vst [vmem:[#allocation46_spill] sm:$0xff] %v6228_v56  ;;  %v6230_v57 = vld [vmem:[#allocation17 + $0x40] sm:$0xff]  ;;  %v6232_v58 = vld [vmem:[#allocation17 + $0x48] sm:$0xff] }
 0x18a   : > { %7467 = vst [vmem:[#allocation47_spill] sm:$0xff] %v6230_v57  ;;  %7468 = vst [vmem:[#allocation48_spill] sm:$0xff] %v6232_v58  ;;  %v6234_v59 = vld [vmem:[#allocation17 + $0x50] sm:$0xff]  ;;  %v6236_v60 = vld [vmem:[#allocation17 + $0x58] sm:$0xff] }
 0x18b   : > { %7469 = vst [vmem:[#allocation49_spill] sm:$0xff] %v6234_v59  ;;  %7470 = vst [vmem:[#allocation50_spill] sm:$0xff] %v6236_v60  ;;  %v6238_v61 = vld [vmem:[#allocation17 + $0x60] sm:$0xff]  ;;  %v6240_v62 = vld [vmem:[#allocation17 + $0x68] sm:$0xff] }
 0x18c   : > { %7471 = vst [vmem:[#allocation51_spill] sm:$0xff] %v6238_v61  ;;  %7472 = vst [vmem:[#allocation52_spill] sm:$0xff] %v6240_v62  ;;  %v6242_v63 = vld [vmem:[#allocation17 + $0x70] sm:$0xff]  ;;  %v6244_v53 = vld [vmem:[#allocation17 + $0x78] sm:$0xff] }
 0x18d   : > { %7473 = vst [vmem:[#allocation53_spill] sm:$0xff] %v6242_v63  ;;  %7474 = vst [vmem:[#allocation54_spill] sm:$0xff] %v6244_v53  ;;  %v6246_v54 = vld [vmem:[#allocation18] sm:$0x3]  ;;  %v6248_v55 = vld [vmem:[#allocation20] sm:$0xf] }
 0x18e   : > { %7475 = vst [vmem:[#allocation55_spill] sm:$0xff] %v6246_v54  ;;  %7476 = vst [vmem:[#allocation56_spill] sm:$0xff] %v6248_v55  ;;  %v6250_v56 = vld [vmem:[#allocation20 + $0x4] sm:$0xf]  ;;  %v6252_v57 = vld [vmem:[#allocation20 + $0x8] sm:$0xf] }
 0x18f   : > { %7477 = vst [vmem:[#allocation57_spill] sm:$0xff] %v6250_v56  ;;  %7478 = vst [vmem:[#allocation58_spill] sm:$0xff] %v6252_v57  ;;  %v6254_v58 = vld [vmem:[#allocation20 + $0xc] sm:$0xf]  ;;  %v6256_v59 = vld [vmem:[#allocation20 + $0x10] sm:$0xf] }
 0x190   : > { %7479 = vst [vmem:[#allocation59_spill] sm:$0xff] %v6254_v58  ;;  %7480 = vst [vmem:[#allocation60_spill] sm:$0xff] %v6256_v59  ;;  %v6258_v60 = vld [vmem:[#allocation20 + $0x14] sm:$0xf]  ;;  %v6260_v61 = vld [vmem:[#allocation20 + $0x18] sm:$0xf] }
 0x191   : > { %7481 = vst [vmem:[#allocation61_spill] sm:$0xff] %v6258_v60  ;;  %7482 = vst [vmem:[#allocation62_spill] sm:$0xff] %v6260_v61  ;;  %v6262_v62 = vld [vmem:[#allocation20 + $0x1c] sm:$0xf]  ;;  %v6264_v63 = vld [vmem:[#allocation20 + $0x20] sm:$0xf] }
 0x192   : > { %7483 = vst [vmem:[#allocation63_spill] sm:$0xff] %v6262_v62  ;;  %7484 = vst [vmem:[#allocation64_spill] sm:$0xff] %v6264_v63  ;;  %v6266_v53 = vld [vmem:[#allocation20 + $0x24] sm:$0xf]  ;;  %v6268_v54 = vld [vmem:[#allocation20 + $0x28] sm:$0xf] }
 0x193   : > { %7485 = vst [vmem:[#allocation65_spill] sm:$0xff] %v6266_v53  ;;  %7486 = vst [vmem:[#allocation66_spill] sm:$0xff] %v6268_v54  ;;  %v6270_v55 = vld [vmem:[#allocation20 + $0x2c] sm:$0xf]  ;;  %v6272_v56 = vld [vmem:[#allocation20 + $0x30] sm:$0xf] }
 0x194   : > { %7487 = vst [vmem:[#allocation67_spill] sm:$0xff] %v6270_v55  ;;  %7488 = vst [vmem:[#allocation68_spill] sm:$0xff] %v6272_v56  ;;  %v6274_v57 = vld [vmem:[#allocation20 + $0x34] sm:$0xf]  ;;  %v6276_v58 = vld [vmem:[#allocation20 + $0x38] sm:$0xf] }
 0x195   : > { %7489 = vst [vmem:[#allocation69_spill] sm:$0xff] %v6274_v57  ;;  %7490 = vst [vmem:[#allocation70_spill] sm:$0xff] %v6276_v58  ;;  %v6278_v59 = vld [vmem:[#allocation20 + $0x3c] sm:$0xf]  ;;  %v6280_v60 = vld [vmem:[#allocation20 + $0x40] sm:$0xf] }
 0x196   : > { %7491 = vst [vmem:[#allocation71_spill] sm:$0xff] %v6278_v59  ;;  %7492 = vst [vmem:[#allocation72_spill] sm:$0xff] %v6280_v60  ;;  %v6282_v61 = vld [vmem:[#allocation20 + $0x44] sm:$0xf]  ;;  %v6284_v62 = vld [vmem:[#allocation20 + $0x48] sm:$0xf] }
 0x197   : > { %7493 = vst [vmem:[#allocation73_spill] sm:$0xff] %v6282_v61  ;;  %7494 = vst [vmem:[#allocation74_spill] sm:$0xff] %v6284_v62  ;;  %v6286_v63 = vld [vmem:[#allocation20 + $0x4c] sm:$0xf]  ;;  %v6288_v54 = vld [vmem:[#allocation20 + $0x50] sm:$0xf] }
 0x198   : > { %7495 = vst [vmem:[#allocation75_spill] sm:$0xff] %v6286_v63  ;;  %7496 = vst [vmem:[#allocation76_spill] sm:$0xff] %v6288_v54  ;;  %v6290_v55 = vld [vmem:[#allocation20 + $0x54] sm:$0xf]  ;;  %v6292_v56 = vld [vmem:[#allocation20 + $0x58] sm:$0xf] }
 0x199   : > { %7497 = vst [vmem:[#allocation77_spill] sm:$0xff] %v6290_v55  ;;  %7498 = vst [vmem:[#allocation78_spill] sm:$0xff] %v6292_v56  ;;  %v6294_v57 = vld [vmem:[#allocation20 + $0x5c] sm:$0xf]  ;;  %v6296_v58 = vld [vmem:[#allocation20 + $0x60] sm:$0xf] }
 0x19a   : > { %7499 = vst [vmem:[#allocation79_spill] sm:$0xff] %v6294_v57  ;;  %7500 = vst [vmem:[#allocation80_spill] sm:$0xff] %v6296_v58  ;;  %v6298_v59 = vld [vmem:[#allocation20 + $0x64] sm:$0xf]  ;;  %v6300_v53 = vld [vmem:[#allocation20 + $0x68] sm:$0xf] }
 0x19b   : > { %7501 = vst [vmem:[#allocation81_spill] sm:$0xff] %v6298_v59  ;;  %7502 = vst [vmem:[#allocation82_spill] sm:$0xff] %v6300_v53  ;;  %v6302_v60 = vld [vmem:[#allocation20 + $0x6c] sm:$0xf]  ;;  %v6304_v62 = vld [vmem:[#allocation20 + $0x70] sm:$0xf]  ;;  %v4120_v53 = vcombine.high (!%p4114_p4), %v6148_v16, %v6150_v17 }
 0x19c   : > { %7503 = vst [vmem:[#allocation83_spill] sm:$0xff] %v6302_v60  ;;  %7504 = vst [vmem:[#allocation84_spill] sm:$0xff] %v6304_v62  ;;  %v6306_v61 = vld [vmem:[#allocation20 + $0x74] sm:$0xf]  ;;  %v6308_v63 = vld [vmem:[#allocation20 + $0x78] sm:$0xf]  ;;  %v4119_v62 = vcombine.low (!%p4114_p4), %v6148_v16, %v6150_v17  ;;  %v4123_v16 = vcombine.low (!%p4114_p4), %v6156_v20, %v6158_v21  ;;  %v4126_v17 = vcombine.high (!%p4114_p4), %v6160_v22, %v6162_v23 }
 0x19d   : > { %7505 = vst [vmem:[#allocation85_spill] sm:$0xff] %v6306_v61  ;;  %7506 = vst [vmem:[#allocation86_spill] sm:$0xff] %v6308_v63  ;;  %v6310_v54 = vld [vmem:[#allocation20 + $0x7c] sm:$0xf]  ;;  %v6312_v55 = vld [vmem:[#allocation21] sm:$0xff]  ;;  %649 = sbr.rel (%p4114_p4) target bundleno = 879 (0x36f), region = 104  ;;  %v4122_v63 = vcombine.high (!%p4114_p4), %v6152_v18, %v6154_v19  ;;  %773 = vmatprep.subr.bf16.mxu0 (!%p4114_p4), %v4120_v53  ;;  %999 = vmatprep.subr.bf16.mxu1 (!%p4114_p4), %v4120_v53 }
 0x19e   : > { %7507 = vst [vmem:[#allocation87_spill] sm:$0xff] %v6310_v54  ;;  %v6314_v56 = vld [vmem:[#allocation21 + $0x8] ss:$0 sm:$0xff]  ;;  %774 = vmatpush1.bf16.msra.mxu0 (!%p4114_p4), %v4119_v62  ;;  %1000 = vmatpush1.bf16.msra.mxu1 (!%p4114_p4), %v4119_v62  ;;  %v4124_v54 = vcombine.high (!%p4114_p4), %v6156_v20, %v6158_v21  ;;  %v5604_v61 = vmov (!%p4114_p4), 0   ;;  %v4127_v20 = vcombine.low (!%p4114_p4), %v6164_v24, %v6166_v25  ;;  %v4979_v53 = vld [vmem:[%s6085_s8] sm:$0xff] (!%p4114_p4)   ;;  %v659_v62 = vlaneseq (!%p4114_p4) }
 0x19f   : > { %7508 = vst [vmem:[#allocation88_spill] sm:$0xff] %v6314_v56  ;;  %v4121_v56 = vcombine.low (!%p4114_p4), %v6152_v18, %v6154_v19  ;;  %775 = vmatprep.subr.bf16.mxu0 (!%p4114_p4), %v4122_v63  ;;  %1001 = vmatprep.subr.bf16.mxu1 (!%p4114_p4), %v4122_v63  ;;  %v4125_v18 = vcombine.low (!%p4114_p4), %v6160_v22, %v6162_v23 }
 0x1a0   : > { %805 = vmatprep.mubr.bf16.mxu0 (!%p4114_p4), %v5604_v61  ;;  %1031 = vmatprep.mubr.bf16.mxu1 (!%p4114_p4), %v5604_v61  ;;  %v4128_v19 = vcombine.high (!%p4114_p4), %v6164_v24, %v6166_v25  ;;  %v4130_v21 = vcombine.high (!%p4114_p4), %v6168_v26, %v6170_v27  ;;  %v4129_v22 = vcombine.low (!%p4114_p4), %v6168_v26, %v6170_v27  ;;  %v4978_v27 = vld [vmem:[%s6078_s25] sm:$0xff] (!%p4114_p4)   ;;  %v660_v63 = vshrl.u32 (!%p4114_p4), %v659_v62, 7 }
 0x1a1   : > { %v4132_v23 = vcombine.high (!%p4114_p4), %v6172_v28, %v6174_v29  ;;  %v4131_v24 = vcombine.low (!%p4114_p4), %v6172_v28, %v6174_v29  ;;  %v4134_v25 = vcombine.high (!%p4114_p4), %v6176_v30, %v6178_v31  ;;  %v4133_v26 = vcombine.low (!%p4114_p4), %v6176_v30, %v6178_v31  ;;  %v4980_v28 = vld [vmem:[%s6078_s25 + $0x8] sm:$0xff] (!%p4114_p4)   ;;  %v4982_v30 = vld [vmem:[%s6078_s25 + $0x10] sm:$0xff] (!%p4114_p4)  }
 0x1a2   : > { %776 = vmatpush1.bf16.msra.mxu0 (!%p4114_p4), %v4121_v56  ;;  %1002 = vmatpush1.bf16.msra.mxu1 (!%p4114_p4), %v4121_v56  ;;  %v4981_v29 = vld [vmem:[%s6085_s8 + $0x8] sm:$0xff] (!%p4114_p4)   ;;  %v4984_v31 = vld [vmem:[%s6085_s8 + $0x10] sm:$0xff] (!%p4114_p4)   ;;  %v4985_v56 = vld [vmem:[%s6085_s8 + $0x18] sm:$0xff] (!%p4114_p4)  }
 0x1a3   : > { %777 = vmatprep.subr.bf16.mxu0 (!%p4114_p4), %v4124_v54  ;;  %1003 = vmatprep.subr.bf16.mxu1 (!%p4114_p4), %v4124_v54  ;;  %v4983_v54 = vld [vmem:[%s6078_s25 + $0x18] sm:$0xff] (!%p4114_p4)  }
 0x1a6   : > { %778 = vmatpush1.bf16.msra.mxu0 %v4123_v16  ;;  %1004 = vmatpush1.bf16.msra.mxu1 %v4123_v16  ;;  %v661_v16 = vsub.s32 0, %v660_v63 }
 0x1a7   : > { %779 = vmatprep.subr.bf16.mxu0 %v4126_v17  ;;  %1005 = vmatprep.subr.bf16.mxu1 %v4126_v17  ;;  %v665_v17 = vsub.s32 1, %v660_v63 }
 0x1aa   : > { %780 = vmatpush1.bf16.msra.mxu0 %v4125_v18  ;;  %1006 = vmatpush1.bf16.msra.mxu1 %v4125_v18  ;;  %v6361_v18 = vrot.slane %v6180_v32, %v661_v16 }
 0x1ab   : > { %781 = vmatprep.subr.bf16.mxu0 %v4128_v19  ;;  %1007 = vmatprep.subr.bf16.mxu1 %v4128_v19 }
 0x1ae   : > { %782 = vmatpush1.bf16.msra.mxu0 %v4127_v20  ;;  %1008 = vmatpush1.bf16.msra.mxu1 %v4127_v20  ;;  %v6364_v20 = vrot.slane %v6180_v32, %v665_v17 }
 0x1af   : > { %783 = vmatprep.subr.bf16.mxu0 %v4130_v21  ;;  %1009 = vmatprep.subr.bf16.mxu1 %v4130_v21 }
 0x1b2   : > { %784 = vmatpush1.bf16.msra.mxu0 %v4129_v22  ;;  %1010 = vmatpush1.bf16.msra.mxu1 %v4129_v22 }
 0x1b3   : > { %785 = vmatprep.subr.bf16.mxu0 %v4132_v23  ;;  %1011 = vmatprep.subr.bf16.mxu1 %v4132_v23 }
 0x1b6   : > { %786 = vmatpush1.bf16.msra.mxu0 %v4131_v24  ;;  %1012 = vmatpush1.bf16.msra.mxu1 %v4131_v24 }
 0x1b7   : > { %787 = vmatprep.subr.bf16.mxu0 %v4134_v25  ;;  %1013 = vmatprep.subr.bf16.mxu1 %v4134_v25 }
 0x1ba   : > { %788 = vmatpush1.bf16.msra.mxu0 %v4133_v26  ;;  %1014 = vmatpush1.bf16.msra.mxu1 %v4133_v26 }
 0x1bd   : > { %806 = vmatmul.mubr.bf16.vlgmr.msra.gmra.mrb[0].mxu0 %v4978_v27  ;;  %1032 = vmatmul.mubr.bf16.vlgmr.msra.gmra.mrb[0].mxu1 %v4979_v53 }
 0x1be   : > { %815 = vmatprep.mubr.bf16.mxu0 %v5604_v61  ;;  %1041 = vmatprep.mubr.bf16.mxu1 %v5604_v61 }
 0x1c5   : > { %816 = vmatmul.mubr.bf16.gmra.mrb[4].mxu0 %v4980_v28  ;;  %1042 = vmatmul.mubr.bf16.gmra.mrb[4].mxu1 %v4981_v29 }
 0x1c6   : > { %825 = vmatprep.mubr.bf16.mxu0 %v5604_v61  ;;  %1051 = vmatprep.mubr.bf16.mxu1 %v5604_v61 }
 0x1cd   : > { %826 = vmatmul.mubr.bf16.gmra.mrb[8].mxu0 %v4982_v30  ;;  %1052 = vmatmul.mubr.bf16.gmra.mrb[8].mxu1 %v4984_v31 }
 0x1ce   : > { %835 = vmatprep.mubr.bf16.mxu0 %v5604_v61  ;;  %1061 = vmatprep.mubr.bf16.mxu1 %v5604_v61 }
 0x1d5   : > { %836 = vmatmul.mubr.bf16.gmra.mrb[12].mxu0 %v4983_v54  ;;  %1062 = vmatmul.mubr.bf16.gmra.mrb[12].mxu1 %v4985_v56 }
 0x290   : > { %v807_v19 = vpop.f32.mrb[0].mxu0  ;;  %v1033_v21 = vpop.f32.mrb[0].mxu1 }
 0x291   : > { %v809_v22 = vpop.f32.mrb[1].mxu0  ;;  %v1034_v23 = vadd.f32 %v1033_v21, %v6361_v18  ;;  %v1035_v61 = vpop.f32.mrb[1].mxu1  ;;  %v808_v27 = vadd.f32 %v807_v19, %v6361_v18 }
 0x292   : > { %v811_v24 = vpop.f32.mrb[2].mxu0  ;;  %v1036_v25 = vadd.f32 %v1035_v61, %v6364_v20  ;;  %v1037_v26 = vpop.f32.mrb[2].mxu1  ;;  %v810_v32 = vadd.f32 %v809_v22, %v6364_v20 }
 0x293   : > { %v812_v53 = vadd.f32 %v811_v24, %v6361_v18  ;;  %v813_v28 = vpop.f32.mrb[3].mxu0  ;;  %v1038_v29 = vadd.f32 %v1037_v26, %v6361_v18  ;;  %v1039_v30 = vpop.f32.mrb[3].mxu1 }
 0x294   : > { %v814_v31 = vadd.f32 %v813_v28, %v6364_v20  ;;  %v1040_v54 = vadd.f32 %v1039_v30, %v6364_v20 }
 0x295   : > { %v846_v56 = vpack.c.bf16 %v812_v53, %v808_v27  ;;  %v6374_v62 = vpack.c.bf16 %v1038_v29, %v1034_v23 }
 0x296   : > { %v6376_v63 = vpack.c.bf16 %v814_v31, %v810_v32  ;;  %v6378_v16 = vpack.c.bf16 %v1040_v54, %v1036_v25 }
 0x297   : > { %895 = vst.msk [vmem:[#allocation2] sm:$0xff] %vm894_vm0, %v846_v56  ;;  %1120 = vst.msk [vmem:[#allocation4] sm:$0xff] %vm894_vm0, %v6374_v62  ;;  %858 = vrot.lane.b32.xlu0 %v846_v56, %s5605_s29 }
 0x298   : > { %951 = vst.msk [vmem:[#allocation3] sm:$0xff] %vm894_vm0, %v6376_v63  ;;  %v817_v17 = vpop.f32.mrb[4].mxu0  ;;  %1176 = vst.msk [vmem:[#allocation5] sm:$0xff] %vm894_vm0, %v6378_v16  ;;  %v1043_v19 = vpop.f32.mrb[4].mxu1 }
 0x299   : > { %v819_v21 = vpop.f32.mrb[5].mxu0  ;;  %v1044_v22 = vadd.f32 %v1043_v19, %v6361_v18  ;;  %v1045_v23 = vpop.f32.mrb[5].mxu1  ;;  %v818_v26 = vadd.f32 %v817_v17, %v6361_v18 }
 0x29a   : > { %v821_v61 = vpop.f32.mrb[6].mxu0  ;;  %v1046_v24 = vadd.f32 %v1045_v23, %v6364_v20  ;;  %v1047_v25 = vpop.f32.mrb[6].mxu1  ;;  %v820_v30 = vadd.f32 %v819_v21, %v6364_v20 }
 0x29b   : > { %v822_v27 = vadd.f32 %v821_v61, %v6361_v18  ;;  %v823_v53 = vpop.f32.mrb[7].mxu0  ;;  %870 = vrot.lane.b32.xlu0 %v846_v56, %s5606_s11  ;;  %v1048_v28 = vadd.f32 %v1047_v25, %v6361_v18  ;;  %v1049_v29 = vpop.f32.mrb[7].mxu1 }
 0x29c   : > { %v824_v32 = vadd.f32 %v823_v53, %v6364_v20  ;;  %v1050_v31 = vadd.f32 %v1049_v29, %v6364_v20 }
 0x29d   : > { %v6397_v54 = vpack.c.bf16 %v822_v27, %v818_v26  ;;  %v1074_v19 = vpack.c.bf16 %v1048_v28, %v1044_v22 }
 0x29e   : > { %v6399_v23 = vpack.c.bf16 %v824_v32, %v820_v30  ;;  %v6401_v17 = vpack.c.bf16 %v1050_v31, %v1046_v24 }
 0x29f   : > { %896 = vst.msk [vmem:[#allocation2 + $0x8] sm:$0xff] %vm894_vm0, %v6397_v54  ;;  %1121 = vst.msk [vmem:[#allocation4 + $0x8] sm:$0xff] %vm894_vm0, %v1074_v19  ;;  %872 = vrot.lane.b32.xlu1 %v6397_v54, %s5606_s11  ;;  %882 = vrot.lane.b32.xlu0 %v846_v56, %s5607_s1 }
 0x2a0   : > { %952 = vst.msk [vmem:[#allocation3 + $0x8] sm:$0xff] %vm894_vm0, %v6399_v23  ;;  %1177 = vst.msk [vmem:[#allocation5 + $0x8] sm:$0xff] %vm894_vm0, %v6401_v17  ;;  %v827_v21 = vpop.f32.mrb[8].mxu0  ;;  %v1053_v22 = vpop.f32.mrb[8].mxu1 }
 0x2a1   : > { %v828_v61 = vadd.f32 %v827_v21, %v6361_v18  ;;  %v829_v24 = vpop.f32.mrb[9].mxu0  ;;  %v1054_v25 = vadd.f32 %v1053_v22, %v6361_v18  ;;  %v1055_v26 = vpop.f32.mrb[9].mxu1 }
 0x2a2   : > { %v830_v27 = vadd.f32 %v829_v24, %v6364_v20  ;;  %v831_v53 = vpop.f32.mrb[10].mxu0  ;;  %v1056_v28 = vadd.f32 %v1055_v26, %v6364_v20  ;;  %v1057_v56 = vpop.f32.mrb[10].mxu1 }
 0x2a3   : > { %884 = vrot.lane.b32.xlu1 %v6397_v54, %s5607_s1  ;;  %1084 = vrot.lane.b32.xlu0 %v6374_v62, %s5605_s29  ;;  %v832_v29 = vadd.f32 %v831_v53, %v6361_v18  ;;  %v833_v30 = vpop.f32.mrb[11].mxu0  ;;  %v1058_v32 = vadd.f32 %v1057_v56, %v6361_v18  ;;  %v1059_v31 = vpop.f32.mrb[11].mxu1 }
 0x2a4   : > { %v834_v21 = vadd.f32 %v833_v30, %v6364_v20  ;;  %v1060_v22 = vadd.f32 %v1059_v31, %v6364_v20 }
 0x2a5   : > { %v850_v24 = vpack.c.bf16 %v832_v29, %v828_v61  ;;  %v1076_v60 = vpack.c.bf16 %v1058_v32, %v1054_v25 }
 0x2a6   : > { %v851_v26 = vpack.c.bf16 %v834_v21, %v830_v27  ;;  %v6425_v58 = vpack.c.bf16 %v1060_v22, %v1056_v28 }
 0x2a7   : > { %1086 = vrot.lane.b32.xlu1 %v1074_v19, %s5605_s29  ;;  %1096 = vrot.lane.b32.xlu0 %v6374_v62, %s5606_s11  ;;  %897 = vst.msk [vmem:[#allocation2 + $0x10] sm:$0xff] %vm894_vm0, %v850_v24  ;;  %1122 = vst.msk [vmem:[#allocation4 + $0x10] sm:$0xff] %vm894_vm0, %v1076_v60 }
 0x2a8   : > { %953 = vst.msk [vmem:[#allocation3 + $0x10] sm:$0xff] %vm894_vm0, %v851_v26  ;;  %v837_v53 = vpop.f32.mrb[12].mxu0  ;;  %1178 = vst.msk [vmem:[#allocation5 + $0x10] sm:$0xff] %vm894_vm0, %v6425_v58  ;;  %v1063_v61 = vpop.f32.mrb[12].mxu1 }
 0x2a9   : > { %v838_v25 = vadd.f32 %v837_v53, %v6361_v18  ;;  %v839_v27 = vpop.f32.mrb[13].mxu0  ;;  %v1064_v28 = vadd.f32 %v1063_v61, %v6361_v18  ;;  %v1065_v56 = vpop.f32.mrb[13].mxu1 }
 0x2aa   : > { %v840_v29 = vadd.f32 %v839_v27, %v6364_v20  ;;  %v841_v30 = vpop.f32.mrb[14].mxu0  ;;  %v1066_v32 = vadd.f32 %v1065_v56, %v6364_v20  ;;  %v1067_v31 = vpop.f32.mrb[14].mxu1 }
 0x2ab   : > { %1098 = vrot.lane.b32.xlu1 %v1074_v19, %s5606_s11  ;;  %1108 = vrot.lane.b32.xlu0 %v6374_v62, %s5607_s1  ;;  %v842_v21 = vadd.f32 %v841_v30, %v6361_v18  ;;  %v843_v22 = vpop.f32.mrb[15].mxu0  ;;  %v1068_v53 = vadd.f32 %v1067_v31, %v6361_v18  ;;  %v1069_v59 = vpop.f32.mrb[15].mxu1 }
 0x2ac   : > { %v844_v61 = vadd.f32 %v843_v22, %v6364_v20  ;;  %v1070_v57 = vadd.f32 %v1069_v59, %v6364_v20 }
 0x2ad   : > { %v852_v27 = vpack.c.bf16 %v842_v21, %v838_v25  ;;  %v1078_v51 = vpack.c.bf16 %v1068_v53, %v1064_v28 }
 0x2ae   : > { %v853_v52 = vpack.c.bf16 %v844_v61, %v840_v29  ;;  %v1079_v56 = vpack.c.bf16 %v1070_v57, %v1066_v32 }
 0x2af   : > { %1110 = vrot.lane.b32.xlu1 %v1074_v19, %s5607_s1  ;;  %915 = vrot.lane.b32.xlu0 %v6376_v63, %s5605_s29  ;;  %898 = vst.msk [vmem:[#allocation2 + $0x18] sm:$0xff] %vm894_vm0, %v852_v27  ;;  %1123 = vst.msk [vmem:[#allocation4 + $0x18] sm:$0xff] %vm894_vm0, %v1078_v51 }
 0x2b0   : > { %954 = vst.msk [vmem:[#allocation3 + $0x18] sm:$0xff] %vm894_vm0, %v853_v52  ;;  %1179 = vst.msk [vmem:[#allocation5 + $0x18] sm:$0xff] %vm894_vm0, %v1079_v56 }
 0x2b3   : > { %917 = vrot.lane.b32.xlu1 %v6399_v23, %s5605_s29  ;;  %927 = vrot.lane.b32.xlu0 %v6376_v63, %s5606_s11 }
 0x2b7   : > { %929 = vrot.lane.b32.xlu1 %v6399_v23, %s5606_s11  ;;  %939 = vrot.lane.b32.xlu0 %v6376_v63, %s5607_s1 }
 0x2bb   : > { %941 = vrot.lane.b32.xlu1 %v6399_v23, %s5607_s1  ;;  %1140 = vrot.lane.b32.xlu0 %v6378_v16, %s5605_s29 }
 0x2bf   : > { %1142 = vrot.lane.b32.xlu1 %v6401_v17, %s5605_s29  ;;  %1152 = vrot.lane.b32.xlu0 %v6378_v16, %s5606_s11 }
 0x2c3   : > { %1154 = vrot.lane.b32.xlu1 %v6401_v17, %s5606_s11  ;;  %1164 = vrot.lane.b32.xlu0 %v6378_v16, %s5607_s1 }
 0x2c7   : > { %1166 = vrot.lane.b32.xlu1 %v6401_v17, %s5607_s1  ;;  %860 = vrot.lane.b32.xlu0 %v6397_v54, %s5605_s29 }
 0x2cb   : > { %862 = vrot.lane.b32.xlu1 %v850_v24, %s5605_s29  ;;  %874 = vrot.lane.b32.xlu0 %v850_v24, %s5606_s11 }
 0x2cf   : > { %864 = vrot.lane.b32.xlu1 %v852_v27, %s5605_s29  ;;  %886 = vrot.lane.b32.xlu0 %v850_v24, %s5607_s1 }
 0x2d3   : > { %876 = vrot.lane.b32.xlu1 %v852_v27, %s5606_s11  ;;  %1088 = vrot.lane.b32.xlu0 %v1076_v60, %s5605_s29 }
 0x2d7   : > { %888 = vrot.lane.b32.xlu1 %v852_v27, %s5607_s1  ;;  %1100 = vrot.lane.b32.xlu0 %v1076_v60, %s5606_s11 }
 0x2db   : > { %1090 = vrot.lane.b32.xlu1 %v1078_v51, %s5605_s29  ;;  %1112 = vrot.lane.b32.xlu0 %v1076_v60, %s5607_s1 }
 0x2df   : > { %1102 = vrot.lane.b32.xlu1 %v1078_v51, %s5606_s11  ;;  %919 = vrot.lane.b32.xlu0 %v851_v26, %s5605_s29 }
 0x2e3   : > { %1114 = vrot.lane.b32.xlu1 %v1078_v51, %s5607_s1  ;;  %931 = vrot.lane.b32.xlu0 %v851_v26, %s5606_s11 }
 0x2e7   : > { %921 = vrot.lane.b32.xlu1 %v853_v52, %s5605_s29  ;;  %943 = vrot.lane.b32.xlu0 %v851_v26, %s5607_s1 }
 0x2eb   : > { %933 = vrot.lane.b32.xlu1 %v853_v52, %s5606_s11  ;;  %1144 = vrot.lane.b32.xlu0 %v6425_v58, %s5605_s29 }
 0x2ef   : > { %945 = vrot.lane.b32.xlu1 %v853_v52, %s5607_s1  ;;  %1156 = vrot.lane.b32.xlu0 %v6425_v58, %s5606_s11 }
 0x2f3   : > { %1146 = vrot.lane.b32.xlu1 %v1079_v56, %s5605_s29  ;;  %1168 = vrot.lane.b32.xlu0 %v6425_v58, %s5607_s1 }
 0x2f7   : > { %1158 = vrot.lane.b32.xlu1 %v1079_v56, %s5606_s11 }
 0x2fb   : > { %1170 = vrot.lane.b32.xlu1 %v1079_v56, %s5607_s1 }
 0x309   : > { %v859_v51 = vpop.permute.xlu0 %858 }
 0x30a   : > { %899 = vst.msk [vmem:[#allocation2 + $0x20] sm:$0xff] %vm894_vm0, %v859_v51 }
 0x30d   : > { %v871_v57 = vpop.permute.xlu0 %870 }
 0x30e   : > { %903 = vst.msk [vmem:[#allocation2 + $0x40] sm:$0xff] %vm894_vm0, %v871_v57 }
 0x311   : > { %v873_v59 = vpop.permute.xlu1 %872  ;;  %v883_v52 = vpop.permute.xlu0 %882 }
 0x312   : > { %904 = vst.msk [vmem:[#allocation2 + $0x48] sm:$0xff] %vm894_vm0, %v873_v59  ;;  %907 = vst.msk [vmem:[#allocation2 + $0x60] sm:$0xff] %vm894_vm0, %v883_v52 }
 0x315   : > { %v885_v60 = vpop.permute.xlu1 %884  ;;  %v1085_v18 = vpop.permute.xlu0 %1084 }
 0x316   : > { %908 = vst.msk [vmem:[#allocation2 + $0x68] sm:$0xff] %vm894_vm0, %v885_v60  ;;  %1124 = vst.msk [vmem:[#allocation4 + $0x20] sm:$0xff] %vm894_vm0, %v1085_v18 }
 0x319   : > { %v1087_v58 = vpop.permute.xlu1 %1086  ;;  %v1097_v20 = vpop.permute.xlu0 %1096 }
 0x31a   : > { %1125 = vst.msk [vmem:[#allocation4 + $0x28] sm:$0xff] %vm894_vm0, %v1087_v58  ;;  %1128 = vst.msk [vmem:[#allocation4 + $0x40] sm:$0xff] %vm894_vm0, %v1097_v20 }
 0x31d   : > { %v1099_v62 = vpop.permute.xlu1 %1098  ;;  %v1109_v63 = vpop.permute.xlu0 %1108 }
 0x31e   : > { %1129 = vst.msk [vmem:[#allocation4 + $0x48] sm:$0xff] %vm894_vm0, %v1099_v62  ;;  %1132 = vst.msk [vmem:[#allocation4 + $0x60] sm:$0xff] %vm894_vm0, %v1109_v63 }
 0x321   : > { %v1111_v16 = vpop.permute.xlu1 %1110  ;;  %v916_v54 = vpop.permute.xlu0 %915 }
 0x322   : > { %1133 = vst.msk [vmem:[#allocation4 + $0x68] sm:$0xff] %vm894_vm0, %v1111_v16  ;;  %955 = vst.msk [vmem:[#allocation3 + $0x20] sm:$0xff] %vm894_vm0, %v916_v54 }
 0x325   : > { %v918_v19 = vpop.permute.xlu1 %917  ;;  %v928_v23 = vpop.permute.xlu0 %927 }
 0x326   : > { %956 = vst.msk [vmem:[#allocation3 + $0x28] sm:$0xff] %vm894_vm0, %v918_v19  ;;  %959 = vst.msk [vmem:[#allocation3 + $0x40] sm:$0xff] %vm894_vm0, %v928_v23 }
 0x329   : > { %v930_v17 = vpop.permute.xlu1 %929  ;;  %v940_v24 = vpop.permute.xlu0 %939 }
 0x32a   : > { %960 = vst.msk [vmem:[#allocation3 + $0x48] sm:$0xff] %vm894_vm0, %v930_v17  ;;  %963 = vst.msk [vmem:[#allocation3 + $0x60] sm:$0xff] %vm894_vm0, %v940_v24 }
 0x32d   : > { %v942_v26 = vpop.permute.xlu1 %941  ;;  %v1141_v25 = vpop.permute.xlu0 %1140 }
 0x32e   : > { %964 = vst.msk [vmem:[#allocation3 + $0x68] sm:$0xff] %vm894_vm0, %v942_v26  ;;  %1180 = vst.msk [vmem:[#allocation5 + $0x20] sm:$0xff] %vm894_vm0, %v1141_v25 }
 0x331   : > { %v1143_v28 = vpop.permute.xlu1 %1142  ;;  %v1153_v29 = vpop.permute.xlu0 %1152 }
 0x332   : > { %1181 = vst.msk [vmem:[#allocation5 + $0x28] sm:$0xff] %vm894_vm0, %v1143_v28  ;;  %1184 = vst.msk [vmem:[#allocation5 + $0x40] sm:$0xff] %vm894_vm0, %v1153_v29 }
 0x335   : > { %v1155_v30 = vpop.permute.xlu1 %1154  ;;  %v1165_v32 = vpop.permute.xlu0 %1164 }
 0x336   : > { %1185 = vst.msk [vmem:[#allocation5 + $0x48] sm:$0xff] %vm894_vm0, %v1155_v30  ;;  %1188 = vst.msk [vmem:[#allocation5 + $0x60] sm:$0xff] %vm894_vm0, %v1165_v32 }
 0x339   : > { %v1167_v31 = vpop.permute.xlu1 %1166  ;;  %v861_v21 = vpop.permute.xlu0 %860 }
 0x33a   : > { %1189 = vst.msk [vmem:[#allocation5 + $0x68] sm:$0xff] %vm894_vm0, %v1167_v31  ;;  %900 = vst.msk [vmem:[#allocation2 + $0x28] sm:$0xff] %vm894_vm0, %v861_v21 }
 0x33d   : > { %v863_v22 = vpop.permute.xlu1 %862  ;;  %v875_v53 = vpop.permute.xlu0 %874 }
 0x33e   : > { %901 = vst.msk [vmem:[#allocation2 + $0x30] sm:$0xff] %vm894_vm0, %v863_v22  ;;  %905 = vst.msk [vmem:[#allocation2 + $0x50] sm:$0xff] %vm894_vm0, %v875_v53 }
 0x341   : > { %v865_v61 = vpop.permute.xlu1 %864  ;;  %v887_v27 = vpop.permute.xlu0 %886 }
 0x342   : > { %902 = vst.msk [vmem:[#allocation2 + $0x38] sm:$0xff] %vm894_vm0, %v865_v61  ;;  %909 = vst.msk [vmem:[#allocation2 + $0x70] sm:$0xff] %vm894_vm0, %v887_v27 }
 0x345   : > { %v877_v56 = vpop.permute.xlu1 %876  ;;  %v1089_v51 = vpop.permute.xlu0 %1088 }
 0x346   : > { %906 = vst.msk [vmem:[#allocation2 + $0x58] sm:$0xff] %vm894_vm0, %v877_v56  ;;  %1126 = vst.msk [vmem:[#allocation4 + $0x30] sm:$0xff] %vm894_vm0, %v1089_v51 }
 0x349   : > { %v889_v57 = vpop.permute.xlu1 %888  ;;  %v1101_v59 = vpop.permute.xlu0 %1100 }
 0x34a   : > { %910 = vst.msk [vmem:[#allocation2 + $0x78] sm:$0xff] %vm894_vm0, %v889_v57  ;;  %1130 = vst.msk [vmem:[#allocation4 + $0x50] sm:$0xff] %vm894_vm0, %v1101_v59 }
 0x34d   : > { %v1091_v52 = vpop.permute.xlu1 %1090  ;;  %v1113_v60 = vpop.permute.xlu0 %1112 }
 0x34e   : > { %1127 = vst.msk [vmem:[#allocation4 + $0x38] sm:$0xff] %vm894_vm0, %v1091_v52  ;;  %1134 = vst.msk [vmem:[#allocation4 + $0x70] sm:$0xff] %vm894_vm0, %v1113_v60 }
 0x351   : > { %v1103_v18 = vpop.permute.xlu1 %1102  ;;  %v920_v58 = vpop.permute.xlu0 %919 }
 0x352   : > { %1131 = vst.msk [vmem:[#allocation4 + $0x58] sm:$0xff] %vm894_vm0, %v1103_v18  ;;  %957 = vst.msk [vmem:[#allocation3 + $0x30] sm:$0xff] %vm894_vm0, %v920_v58 }
 0x355   : > { %v1115_v20 = vpop.permute.xlu1 %1114  ;;  %v932_v62 = vpop.permute.xlu0 %931 }
 0x356   : > { %1135 = vst.msk [vmem:[#allocation4 + $0x78] sm:$0xff] %vm894_vm0, %v1115_v20  ;;  %961 = vst.msk [vmem:[#allocation3 + $0x50] sm:$0xff] %vm894_vm0, %v932_v62 }
 0x359   : > { %v922_v63 = vpop.permute.xlu1 %921  ;;  %v944_v16 = vpop.permute.xlu0 %943 }
 0x35a   : > { %958 = vst.msk [vmem:[#allocation3 + $0x38] sm:$0xff] %vm894_vm0, %v922_v63  ;;  %965 = vst.msk [vmem:[#allocation3 + $0x70] sm:$0xff] %vm894_vm0, %v944_v16 }
 0x35d   : > { %v934_v54 = vpop.permute.xlu1 %933  ;;  %v1145_v19 = vpop.permute.xlu0 %1144 }
 0x35e   : > { %962 = vst.msk [vmem:[#allocation3 + $0x58] sm:$0xff] %vm894_vm0, %v934_v54  ;;  %1182 = vst.msk [vmem:[#allocation5 + $0x30] sm:$0xff] %vm894_vm0, %v1145_v19 }
 0x361   : > { %v946_v23 = vpop.permute.xlu1 %945  ;;  %v1157_v17 = vpop.permute.xlu0 %1156 }
 0x362   : > { %966 = vst.msk [vmem:[#allocation3 + $0x78] sm:$0xff] %vm894_vm0, %v946_v23  ;;  %1186 = vst.msk [vmem:[#allocation5 + $0x50] sm:$0xff] %vm894_vm0, %v1157_v17 }
 0x365   : > { %v1147_v24 = vpop.permute.xlu1 %1146  ;;  %v1169_v26 = vpop.permute.xlu0 %1168 }
 0x366   : > { %1183 = vst.msk [vmem:[#allocation5 + $0x38] sm:$0xff] %vm894_vm0, %v1147_v24  ;;  %1190 = vst.msk [vmem:[#allocation5 + $0x70] sm:$0xff] %vm894_vm0, %v1169_v26 }
 0x369   : > { %v1159_v25 = vpop.permute.xlu1 %1158 }
 0x36a   : > { %1187 = vst.msk [vmem:[#allocation5 + $0x58] sm:$0xff] %vm894_vm0, %v1159_v25 }
 0x36d   : > { %v1171_v28 = vpop.permute.xlu1 %1170 }
 0x36e   : > { %1191 = vst.msk [vmem:[#allocation5 + $0x78] sm:$0xff] %vm894_vm0, %v1171_v28 }
 0x36f PF: > { %s7510_s10 = sld [smem:[#allocation34_spill]]  ;;  %v6554_v29 = vcombine.low %v6116_v0, %v6118_v1  ;;  %v6558_v30 = vcombine.low %v6120_v2, %v6122_v3  ;;  %v1205_v32 = vld [vmem:[#allocation2] sm:$0xff]  ;;  %vm1366_vm1 = vcmask 261120   ;;  %v1206_v31 = vld [vmem:[#allocation2 + $0x8] sm:$0xff]  ;;  %v6571_v1 = vcombine.low %v6124_v4, %v6126_v5  ;;  %v1207_v22 = vld [vmem:[#allocation2 + $0x10] sm:$0xff]  ;;  %s5608_s21 = smov 64  }
 0x370   : > { %4744 = vmatprep.subr.msk.bf16.mxu1 %vm1366_vm1, %v1205_v32  ;;  %v1374_v0 = vsel %vm1366_vm1, %v1205_v32, 0  ;;  %v6582_v3 = vcombine.low %v6128_v6, %v6130_v7  ;;  %v1377_v21 = vsel %vm1366_vm1, %v1206_v31, 0  ;;  %v6589_v4 = vcombine.low %v6132_v8, %v6134_v9  ;;  %v1211_v61 = vld [vmem:[#allocation2 + $0x30] sm:$0xff]  ;;  %v1212_v56 = vld [vmem:[#allocation2 + $0x38] sm:$0xff]  ;;  %v1217_v60 = vld [vmem:[#allocation2 + $0x60] sm:$0xff]  ;;  %s5609_s22 = smov 96  }
 0x371   : > { %4424 = vmatprep.subr.bf16.mxu0 %v6554_v29  ;;  %4445 = vmatpush3.bf16.xpose.msra.mxu1 %v1374_v0  ;;  %v6596_v5 = vcombine.low %v6136_v10, %v6138_v11  ;;  %v1380_v6 = vsel %vm1366_vm1, %v1207_v22, 0  ;;  %v6603_v7 = vcombine.low %v6140_v12, %v6142_v13  ;;  %v6609_v8 = vcombine.low %v6144_v14, %v6146_v15  ;;  %v1208_v10 = vld [vmem:[#allocation2 + $0x18] sm:$0xff]  ;;  %v1209_v12 = vld [vmem:[#allocation2 + $0x20] sm:$0xff]  ;;  %v1210_v14 = vld [vmem:[#allocation2 + $0x28] sm:$0xff]  ;;  %s5610_s13 = smov 32   ;;  %s7558_s16 = sld [smem:[#allocation35_spill]] }
 0x372   : > { %4425 = vmatpush3.bf16.msra.mxu0 %v6554_v29  ;;  %4745 = vmatprep.subr.msk.bf16.mxu1 %vm1366_vm1, %v1206_v31  ;;  %v1383_v11 = vsel %vm1366_vm1, %v1208_v10, 0  ;;  %v1213_v13 = vld [vmem:[#allocation2 + $0x40] sm:$0xff]  ;;  %v1441_v15 = vsel %vm1366_vm1, %v1209_v12, 0  ;;  %v1444_v53 = vsel %vm1366_vm1, %v1210_v14, 0  ;;  %v1447_v27 = vsel %vm1366_vm1, %v1211_v61, 0  ;;  %v1214_v25 = vld [vmem:[#allocation2 + $0x48] sm:$0xff] }
 0x373   : > { %4426 = vmatprep.subr.bf16.mxu0 %v6558_v30  ;;  %v1450_v51 = vsel %vm1366_vm1, %v1212_v56, 0  ;;  %v1237_v57 = vlaneseq  ;;  %v1508_v26 = vsel %vm1366_vm1, %v1213_v13, 0  ;;  %v1511_v28 = vsel %vm1366_vm1, %v1214_v25, 0  ;;  %v1215_v32 = vld [vmem:[#allocation2 + $0x50] sm:$0xff]  ;;  %v1216_v0 = vld [vmem:[#allocation2 + $0x58] sm:$0xff]  ;;  %s3896_s0 = sshll.u32 %s6317_s24, 4  ;;  %s7285_s0 = int_to_ptr.vmem [resolvable:$true] %s3896_s0 }
 0x374   : > { %v1514_v31 = vsel %vm1366_vm1, %v1215_v32, 0  ;;  %vm1635_vm2 = vcmask 523264   ;;  %s7561_s11 = sld [smem:[#allocation99_spill]]  ;;  %p7562_p1 = scmp.ne.s32.totalorder %s7442_s19, 0 }
 0x375   : > { %s4139_s5 = sshll.u32 %s7510_s10, 5  ;;  %v6629_v59 = vshrl.u32 %v1237_v57, 7 }
 0x376   : > { %s1193_s7 = sshra.s32 %s4139_s5, 3  ;;  %4427 = vmatpush3.bf16.msra.mxu0 %v6558_v30  ;;  %s5442_s5 = scalar_lea.vmem %s7285_s0, 512 }
 0x377   : > { %s4140_s9 = sshll.u32 %s1193_s7, 2  ;;  %4428 = vmatprep.subr.bf16.mxu0 %v6571_v1  ;;  %v1239_v52 = vsub.s32 0, %v6629_v59  ;;  %s4242_s14 = sshll.u32 %s7558_s16, 3 }
 0x378   : > { %s6564_s26 = scalar_lea.vmem %s6078_s25, %s4140_s9 [#allocation6]  ;;  %s4241_s25 = sshll.u32 %s7510_s10, 2 }
 0x379   : > { %v6574_v2 = vld [vmem:[%s6564_s26] sm:$0xff]   ;;  %4447 = vmatpush3.bf16.xpose.msra.mxu1 %v1377_v21  ;;  %v6613_v9 = vld [vmem:[%s6564_s26 + $0x8] sm:$0xff]   ;;  %v6636_v18 = vrot.slane %v6312_v55, %v1239_v52  ;;  %v1517_v21 = vsel %vm1366_vm1, %v1216_v0, 0  ;;  %s3893_s8 = sadd.s32 %s4242_s14, %s4241_s25  ;;  %s7292_s10 = scalar_lea.sflag [#allocation8], %s541_s20 }
 0x37a   : > { %4440 = vmatprep.mubr.bf16.mxu0 %v6574_v2  ;;  %4429 = vmatpush3.bf16.msra.mxu0 %v6571_v1  ;;  %s4243_s2 = sshll.u32 %s3893_s8, 7  ;;  %p5443_p7 = scmp.ne.s32.totalorder %s7285_s0, %s5442_s5 }
 0x37b   : > { %4430 = vmatprep.subr.bf16.mxu0 %v6582_v3  ;;  %4746 = vmatprep.subr.msk.bf16.mxu1 %vm1366_vm1, %v1207_v22  ;;  %s7283_s1 = scalar_lea.hbm %s7561_s11, %s4243_s2  ;;  %s5612_s7 = smov [#allocation23]  }
 0x37c   : > { %p5444_p9 = pnand %p5443_p7, %p7562_p1  ;;  %s5446_s9 = sshll.u32 %s5612_s7, 4  ;;  %s5447_s9 = int_to_ptr.vmem [resolvable:$false] %s5446_s9 }
 0x37d   : > { %s5448_s26 = scalar_lea.vmem %s5447_s9, 1024  ;;  %p5449_p11 = scmp.lt.s32.totalorder %s7285_s0, %s5447_s9 }
 0x37e   : > { %4431 = vmatpush3.bf16.msra.mxu0 %v6582_v3  ;;  %p5445_p6 = pneg %p5444_p9  ;;  %p5450_p5 = scmp.lt.s32.totalorder %s5448_s26, %s5442_s5 }
 0x37f   : > { %4432 = vmatprep.subr.bf16.mxu0 %v6589_v4 }
 0x380   : > { %p5451_p8 = por %p5450_p5, %p5449_p11 }
 0x381   : > { %4449 = vmatpush3.bf16.xpose.msra.mxu1 %v1380_v6 }
 0x382   : > { %4433 = vmatpush3.bf16.msra.mxu0 %v6589_v4  ;;  %4747 = vmatprep.subr.msk.bf16.mxu1 %vm1366_vm1, %v1208_v10  ;;  %v1575_v10 = vsel %vm1366_vm1, %v1217_v60, 0  ;;  %p5452_p12 = pnand %p5451_p8, %p5445_p6 }
 0x383   : > { %4434 = vmatprep.subr.bf16.mxu0 %v6596_v5 }
 0x386   : > { %4435 = vmatpush3.bf16.msra.mxu0 %v6596_v5 }
 0x387   : > { %4436 = vmatprep.subr.bf16.mxu0 %v6603_v7 }
 0x389   : > { %4451 = vmatpush3.bf16.xpose.msra.mxu1 %v1383_v11 }
 0x38a   : > { %4437 = vmatpush3.bf16.msra.mxu0 %v6603_v7  ;;  %4752 = vmatprep.subr.msk.bf16.mxu1 %vm1366_vm1, %v1213_v13  ;;  %v1218_v13 = vld [vmem:[#allocation2 + $0x68] sm:$0xff] }
 0x38b   : > { %4438 = vmatprep.subr.bf16.mxu0 %v6609_v8 }
 0x38e   : > { %4439 = vmatpush3.bf16.msra.mxu0 %v6609_v8 }
 0x38f   : > { %4748 = vmatprep.subr.msk.bf16.mxu0 %vm1366_vm1, %v1209_v12 }
 0x391   : > { %4441 = vmatmul.mubr.bf16.vlgmr.msra.gmra.mrb[0].mxu0 %v6613_v9 }
 0x397   : > { %4457 = vmatpush3.bf16.xpose.msra.mxu0 %v1441_v15  ;;  %v1578_v15 = vsel %vm1366_vm1, %v1218_v13, 0 }
 0x398   : > { %4749 = vmatprep.subr.msk.bf16.mxu0 %vm1366_vm1, %v1210_v14 }
 0x39f   : > { %4459 = vmatpush3.bf16.xpose.msra.mxu0 %v1444_v53  ;;  %v1219_v53 = vld [vmem:[#allocation2 + $0x70] sm:$0xff] }
 0x3a0   : > { %4750 = vmatprep.subr.msk.bf16.mxu0 %vm1366_vm1, %v1211_v61  ;;  %v1581_v61 = vsel %vm1366_vm1, %v1219_v53, 0 }
 0x3a7   : > { %4461 = vmatpush3.bf16.xpose.msra.mxu0 %v1447_v27  ;;  %v1220_v27 = vld [vmem:[#allocation2 + $0x78] sm:$0xff] }
 0x3a8   : > { %4751 = vmatprep.subr.msk.bf16.mxu0 %vm1366_vm1, %v1212_v56  ;;  %v1584_v56 = vsel %vm1366_vm1, %v1220_v27, 0 }
 0x3af   : > { %4463 = vmatpush3.bf16.xpose.msra.mxu0 %v1450_v51 }
 0x3b0   : > { %4756 = vmatprep.subr.msk.bf16.mxu0 %vm1366_vm1, %v1217_v60 }
 0x464   : > { %v4442_v58 = vpop.f32.mrb[0].mxu0 }
 0x465   : > { %v1335_v20 = vpop.f32.mrb[1].mxu0  ;;  %v1344_v63 = vadd.f32 %v4442_v58, %v6636_v18 }
 0x466   : > { %v4443_v62 = vpop.f32.mrb[2].mxu0  ;;  %v1336_v19 = vadd.f32 %v1335_v20, %v6636_v18 }
 0x467   : > { %v1347_v16 = vadd.f32 %v4443_v62, %v6636_v18  ;;  %v1338_v54 = vpop.f32.mrb[3].mxu0 }
 0x468   : > { %v1339_v23 = vadd.f32 %v1338_v54, %v6636_v18 }
 0x469   : > { %v1351_v17 = vpack.c.bf16 %v1347_v16, %v1344_v63 }
 0x46a   : > { %v1350_v24 = vpack.c.bf16 %v1339_v23, %v1336_v19 }
 0x46c   : > { %1358 = vrot.lane.b32.xlu1 %v1350_v24, %s5608_s21  ;;  %1354 = vrot.lane.b32.xlu0 %v1350_v24, %s5609_s22 }
 0x46d   : > { %4452 = vmatprep.mubr.msk.bf16.mxu1 %vm1366_vm1, %v1350_v24 }
 0x46e   : > { %4453 = vmatmul.mubr.msk.bf16.vlgmr.msra.gmra.mrb[0].mxu1 %vm1366_vm1, %v1351_v17 }
 0x46f   : > { %4469 = vmatpush3.bf16.xpose.msra.mxu1 %v1508_v26 }
 0x470   : > { %1360 = vrot.lane.b32.xlu1 %v1351_v17, %s5608_s21  ;;  %1356 = vrot.lane.b32.xlu0 %v1351_v17, %s5609_s22 }
 0x471   : > { %4753 = vmatprep.subr.msk.bf16.mxu1 %vm1366_vm1, %v1214_v25 }
 0x474   : > { %1364 = vrot.lane.b32.xlu1 %v1351_v17, %s5610_s13  ;;  %1362 = vrot.lane.b32.xlu0 %v1350_v24, %s5610_s13 }
 0x477   : > { %4471 = vmatpush3.bf16.xpose.msra.mxu1 %v1511_v28 }
 0x478   : > { %4754 = vmatprep.subr.msk.bf16.mxu1 %vm1366_vm1, %v1215_v32 }
 0x47f   : > { %4473 = vmatpush3.bf16.xpose.msra.mxu1 %v1514_v31 }
 0x480   : > { %4755 = vmatprep.subr.msk.bf16.mxu1 %vm1366_vm1, %v1216_v0 }
 0x487   : > { %4475 = vmatpush3.bf16.xpose.msra.mxu1 %v1517_v21 }
 0x4de   : > { %v1359_v22 = vpop.permute.xlu1 %1358  ;;  %v1355_v6 = vpop.permute.xlu0 %1354 }
 0x4df   : > { %4464 = vmatprep.mubr.msk.bf16.mxu0 %vm1366_vm1, %v1355_v6  ;;  %4476 = vmatprep.mubr.msk.bf16.mxu1 %vm1366_vm1, %v1359_v22 }
 0x4e2   : > { %v1361_v11 = vpop.permute.xlu1 %1360  ;;  %v1357_v12 = vpop.permute.xlu0 %1356 }
 0x4e3   : > { %4465 = vmatmul.mubr.msk.bf16.vlgmr.msra.gmra.mrb[4].mxu0 %vm1366_vm1, %v1357_v12  ;;  %4477 = vmatmul.mubr.msk.bf16.vlgmr.msra.gmra.mrb[4].mxu1 %vm1366_vm1, %v1361_v11 }
 0x4e4   : > { %4481 = vmatpush3.bf16.xpose.msra.mxu0 %v1575_v10 }
 0x4e5   : > { %4757 = vmatprep.subr.msk.bf16.mxu0 %vm1366_vm1, %v1218_v13 }
 0x4e6   : > { %v1363_v14 = vpop.permute.xlu0 %1362  ;;  %v1365_v51 = vpop.permute.xlu1 %1364 }
 0x4e7   : > { %4488 = vmatprep.mubr.msk.bf16.mxu0 %vm1366_vm1, %v1363_v14 }
 0x4ec   : > { %4483 = vmatpush3.bf16.xpose.msra.mxu0 %v1578_v15 }
 0x4ed   : > { %4758 = vmatprep.subr.msk.bf16.mxu0 %vm1366_vm1, %v1219_v53 }
 0x4f4   : > { %4485 = vmatpush3.bf16.xpose.msra.mxu0 %v1581_v61 }
 0x4f5   : > { %4759 = vmatprep.subr.msk.bf16.mxu0 %vm1366_vm1, %v1220_v27 }
 0x4fc   : > { %4487 = vmatpush3.bf16.xpose.msra.mxu0 %v1584_v56 }
 0x503   : > { %4489 = vmatmul.mubr.msk.bf16.vlgmr.msra.gmra.mrb[8].mxu0 %vm1366_vm1, %v1365_v51 }
 0x541   : > { %v4454_v57 = vpop.f32.mrb[0].mxu1 }
 0x542   : > { %v1419_v60 = vpop.f32.mrb[1].mxu1  ;;  %v1642_v16 = vsel %vm1635_vm2, %v4454_v57, -inf }
 0x543   : > { %v4455_v58 = vpop.f32.mrb[2].mxu1  ;;  %v1636_v20 = vsel %vm1635_vm2, %v1419_v60, -inf }
 0x544   : > { %1637 = vmax.xlane.f32.xlu0 %v1636_v20  ;;  %v1422_v62 = vpop.f32.mrb[3].mxu1  ;;  %v1645_v54 = vsel %vm1635_vm2, %v4455_v58, -inf }
 0x545   : > { %v1639_v63 = vsel %vm1635_vm2, %v1422_v62, -inf }
 0x546   : > { %1640 = vmax.xlane.f32.xlu1 %v1639_v63 }
 0x548   : > { %1643 = vmax.xlane.f32.xlu0 %v1642_v16 }
 0x54c   : > { %1646 = vmax.xlane.f32.xlu0 %v1645_v54 }
 0x5b6   : > { %v6674_v19 = vpop.f32.mrb[4].mxu0  ;;  %v6676_v23 = vpop.f32.mrb[4].mxu1 }
 0x5b7   : > { %v6678_v17 = vpop.f32.mrb[5].mxu0  ;;  %v6680_v24 = vpop.f32.mrb[5].mxu1  ;;  %v1654_v21 = vsel %vm1635_vm2, %v6674_v19, -inf  ;;  %v1666_v11 = vsel %vm1635_vm2, %v6676_v23, -inf }
 0x5b8   : > { %v6682_v26 = vpop.f32.mrb[6].mxu0  ;;  %v6684_v25 = vpop.f32.mrb[6].mxu1  ;;  %v1648_v28 = vsel %vm1635_vm2, %v6678_v17, -inf  ;;  %v1660_v6 = vsel %vm1635_vm2, %v6680_v24, -inf }
 0x5b9   : > { %v6688_v32 = vpop.f32.mrb[7].mxu0  ;;  %1649 = vmax.xlane.f32.xlu1 %v1648_v28  ;;  %v6690_v31 = vpop.f32.mrb[7].mxu1  ;;  %v1657_v22 = vsel %vm1635_vm2, %v6682_v26, -inf  ;;  %v1669_v12 = vsel %vm1635_vm2, %v6684_v25, -inf }
 0x5ba   : > { %v1651_v0 = vsel %vm1635_vm2, %v6688_v32, -inf  ;;  %v1663_v10 = vsel %vm1635_vm2, %v6690_v31, -inf }
 0x5bb   : > { %1652 = vmax.xlane.f32.xlu0 %v1651_v0 }
 0x5bd   : > { %1655 = vmax.xlane.f32.xlu1 %v1654_v21 }
 0x5bf   : > { %1658 = vmax.xlane.f32.xlu0 %v1657_v22 }
 0x5c1   : > { %1661 = vmax.xlane.f32.xlu1 %v1660_v6 }
 0x5c3   : > { %1664 = vmax.xlane.f32.xlu0 %v1663_v10 }
 0x5c5   : > { %1667 = vmax.xlane.f32.xlu1 %v1666_v11 }
 0x5c7   : > { %1670 = vmax.xlane.f32.xlu0 %v1669_v12 }
 0x5d1   : > { %v1638_v13 = vpop.xlane.xlu0 %1637 }
 0x5d2   : > { %v1684_v14 = vsub.f32 %v1419_v60, %v1638_v13 }
 0x5d3   : > { %v1641_v15 = vpop.xlane.xlu1 %1640 }
 0x5d4   : > { %v1700_v53 = vmul.f32 1.442695, %v1684_v14  ;;  %v1685_v61 = vsub.f32 %v1422_v62, %v1641_v15 }
 0x5d5   : > { %v1644_v27 = vpop.xlane.xlu0 %1643 }
 0x5d6   : > { %4990 = vpow2.f32 %v1700_v53  ;;  %v1702_v56 = vmul.f32 1.442695, %v1685_v61  ;;  %v1686_v51 = vsub.f32 %v4454_v57, %v1644_v27  ;;  %v6706_v20 = vpop.f32.mrb[8].mxu0  ;;  %v1221_v61 = vld [vmem:[#allocation3] sm:$0xff]  ;;  %v1222_v27 = vld [vmem:[#allocation3 + $0x8] sm:$0xff] }
 0x5d7   : > { %v6708_v63 = vpop.f32.mrb[9].mxu0  ;;  %v1678_v22 = vsel %vm1635_vm2, %v6706_v20, -inf  ;;  %4492 = vmatprep.subr.bf16.mxu1 %v1221_v61 }
 0x5d8   : > { %4992 = vpow2.f32 %v1702_v56  ;;  %v1704_v16 = vmul.f32 1.442695, %v1686_v51  ;;  %v6710_v54 = vpop.f32.mrb[10].mxu0  ;;  %v1672_v28 = vsel %vm1635_vm2, %v6708_v63, -inf  ;;  %4493 = vmatpush3.bf16.msra.mxu1 %v1221_v61  ;;  %v1223_v56 = vld [vmem:[#allocation3 + $0x10] sm:$0xff]  ;;  %v1224_v51 = vld [vmem:[#allocation3 + $0x18] sm:$0xff] }
 0x5d9   : > { %v6714_v0 = vpop.f32.mrb[11].mxu0  ;;  %v1647_v60 = vpop.xlane.xlu0 %1646  ;;  %1673 = vmax.xlane.f32.xlu1 %v1672_v28  ;;  %v1681_v6 = vsel %vm1635_vm2, %v6710_v54, -inf  ;;  %4494 = vmatprep.subr.bf16.mxu1 %v1222_v27 }
 0x5da   : > { %4994 = vpow2.f32 %v1704_v16  ;;  %v1687_v62 = vsub.f32 %v4455_v58, %v1647_v60  ;;  %v1675_v57 = vsel %vm1635_vm2, %v6714_v0, -inf }
 0x5db   : > { %1676 = vmax.xlane.f32.xlu0 %v1675_v57 }
 0x5dc   : > { %v1706_v21 = vmul.f32 1.442695, %v1687_v62  ;;  %4495 = vmatpush3.bf16.msra.mxu1 %v1222_v27 }
 0x5dd   : > { %1679 = vmax.xlane.f32.xlu1 %v1678_v22  ;;  %4496 = vmatprep.subr.bf16.mxu1 %v1223_v56 }
 0x5de   : > { %4996 = vpow2.f32 %v1706_v21 }
 0x5df   : > { %1682 = vmax.xlane.f32.xlu0 %v1681_v6 }
 0x5e0   : > { %v6722_v10 = vpop.eup %4990  ;;  %4497 = vmatpush3.bf16.msra.mxu1 %v1223_v56 }
 0x5e1   : > { %v1732_v11 = vsel %vm1635_vm2, %v6722_v10, 0.0  ;;  %4498 = vmatprep.subr.bf16.mxu1 %v1224_v51 }
 0x5e2   : > { %v6726_v58 = vpop.eup %4992  ;;  %1733 = vadd.xlane.f32.xlu1 %v1732_v11 }
 0x5e3   : > { %v1735_v12 = vsel %vm1635_vm2, %v6726_v58, 0.0 }
 0x5e4   : > { %v6730_v13 = vpop.eup %4994  ;;  %1736 = vadd.xlane.f32.xlu0 %v1735_v12  ;;  %4499 = vmatpush3.bf16.msra.mxu1 %v1224_v51 }
 0x5e5   : > { %v1738_v14 = vsel %vm1635_vm2, %v6730_v13, 0.0 }
 0x5e6   : > { %1739 = vadd.xlane.f32.xlu1 %v1738_v14 }
 0x5e8   : > { %v6734_v15 = vpop.eup %4996 }
 0x5e9   : > { %v1741_v53 = vsel %vm1635_vm2, %v6734_v15, 0.0 }
 0x5ea   : > { %1742 = vadd.xlane.f32.xlu0 %v1741_v53 }
 0x646   : > { %v1650_v16 = vpop.xlane.xlu1 %1649 }
 0x647   : > { %v1688_v28 = vsub.f32 %v6678_v17, %v1650_v16 }
 0x648   : > { %v1653_v60 = vpop.xlane.xlu0 %1652 }
 0x649   : > { %v1708_v62 = vmul.f32 1.442695, %v1688_v28  ;;  %v1689_v57 = vsub.f32 %v6688_v32, %v1653_v60 }
 0x64a   : > { %v1656_v21 = vpop.xlane.xlu1 %1655 }
 0x64b   : > { %4998 = vpow2.f32 %v1708_v62  ;;  %v1710_v22 = vmul.f32 1.442695, %v1689_v57  ;;  %v1690_v6 = vsub.f32 %v6674_v19, %v1656_v21 }
 0x64c   : > { %v1659_v11 = vpop.xlane.xlu0 %1658 }
 0x64d   : > { %5000 = vpow2.f32 %v1710_v22  ;;  %v1712_v12 = vmul.f32 1.442695, %v1690_v6  ;;  %v1691_v14 = vsub.f32 %v6682_v26, %v1659_v11 }
 0x64e   : > { %v1662_v53 = vpop.xlane.xlu1 %1661 }
 0x64f   : > { %5002 = vpow2.f32 %v1712_v12  ;;  %v1714_v61 = vmul.f32 1.442695, %v1691_v14  ;;  %v1692_v27 = vsub.f32 %v6680_v24, %v1662_v53 }
 0x650   : > { %v1665_v17 = vpop.xlane.xlu0 %1664 }
 0x651   : > { %5004 = vpow2.f32 %v1714_v61  ;;  %v1716_v56 = vmul.f32 1.442695, %v1692_v27  ;;  %v1693_v32 = vsub.f32 %v6690_v31, %v1665_v17 }
 0x652   : > { %v1668_v51 = vpop.xlane.xlu1 %1667 }
 0x653   : > { %5006 = vpow2.f32 %v1716_v56  ;;  %v1718_v16 = vmul.f32 1.442695, %v1693_v32  ;;  %v1694_v19 = vsub.f32 %v6676_v23, %v1668_v51 }
 0x654   : > { %v1671_v28 = vpop.xlane.xlu0 %1670 }
 0x655   : > { %v6745_v60 = vpop.eup %4998  ;;  %5008 = vpow2.f32 %v1718_v16  ;;  %v1720_v26 = vmul.f32 1.442695, %v1694_v19  ;;  %v1695_v62 = vsub.f32 %v6684_v25, %v1671_v28 }
 0x656   : > { %v1744_v24 = vsel %vm1635_vm2, %v6745_v60, 0.0 }
 0x657   : > { %v6750_v57 = vpop.eup %5000  ;;  %5010 = vpow2.f32 %v1720_v26  ;;  %v1722_v21 = vmul.f32 1.442695, %v1695_v62  ;;  %1745 = vadd.xlane.f32.xlu1 %v1744_v24  ;;  %v1225_v26 = vld [vmem:[#allocation3 + $0x20] sm:$0xff] }
 0x658   : > { %v1747_v31 = vsel %vm1635_vm2, %v6750_v57, 0.0  ;;  %4504 = vmatprep.subr.bf16.mxu1 %v1225_v26 }
 0x659   : > { %v6754_v22 = vpop.eup %5002  ;;  %5012 = vpow2.f32 %v1722_v21  ;;  %1748 = vadd.xlane.f32.xlu0 %v1747_v31 }
 0x65a   : > { %v1750_v23 = vsel %vm1635_vm2, %v6754_v22, 0.0 }
 0x65b   : > { %v6758_v6 = vpop.eup %5004  ;;  %1751 = vadd.xlane.f32.xlu1 %v1750_v23 }
 0x65c   : > { %v1753_v25 = vsel %vm1635_vm2, %v6758_v6, 0.0 }
 0x65d   : > { %v6762_v11 = vpop.eup %5006  ;;  %1754 = vadd.xlane.f32.xlu0 %v1753_v25 }
 0x65e   : > { %v1756_v12 = vsel %vm1635_vm2, %v6762_v11, 0.0 }
 0x65f   : > { %v6766_v14 = vpop.eup %5008  ;;  %1757 = vadd.xlane.f32.xlu1 %v1756_v12 }
 0x660   : > { %v1759_v53 = vsel %vm1635_vm2, %v6766_v14, 0.0 }
 0x661   : > { %v6770_v61 = vpop.eup %5010  ;;  %1760 = vadd.xlane.f32.xlu0 %v1759_v53 }
 0x662   : > { %v1762_v27 = vsel %vm1635_vm2, %v6770_v61, 0.0 }
 0x663   : > { %v6774_v17 = vpop.eup %5012  ;;  %1763 = vadd.xlane.f32.xlu1 %v1762_v27 }
 0x664   : > { %v1765_v56 = vsel %vm1635_vm2, %v6774_v17, 0.0 }
 0x665   : > { %1766 = vadd.xlane.f32.xlu0 %v1765_v56 }
 0x666   : > { %v1674_v32 = vpop.xlane.xlu1 %1673 }
 0x667   : > { %v1696_v51 = vsub.f32 %v6708_v63, %v1674_v32 }
 0x668   : > { %v1677_v16 = vpop.xlane.xlu0 %1676 }
 0x669   : > { %v1724_v19 = vmul.f32 1.442695, %v1696_v51  ;;  %v1697_v28 = vsub.f32 %v6714_v0, %v1677_v16 }
 0x66a   : > { %v1680_v62 = vpop.xlane.xlu1 %1679 }
 0x66b   : > { %5014 = vpow2.f32 %v1724_v19  ;;  %v1726_v24 = vmul.f32 1.442695, %v1697_v28  ;;  %v1698_v21 = vsub.f32 %v6706_v20, %v1680_v62 }
 0x66c   : > { %v1683_v31 = vpop.xlane.xlu0 %1682 }
 0x66d   : > { %5016 = vpow2.f32 %v1726_v24  ;;  %v1728_v23 = vmul.f32 1.442695, %v1698_v21  ;;  %v1699_v25 = vsub.f32 %v6710_v54, %v1683_v31 }
 0x66f   : > { %5018 = vpow2.f32 %v1728_v23  ;;  %v1730_v12 = vmul.f32 1.442695, %v1699_v25  ;;  %v1734_v53 = vpop.xlane.xlu1 %1733 }
 0x670   : > { %5020 = vrcp.f32 %v1734_v53 }
 0x671   : > { %5022 = vpow2.f32 %v1730_v12  ;;  %v1737_v63 = vpop.xlane.xlu0 %1736 }
 0x672   : > { %5024 = vrcp.f32 %v1737_v63 }
 0x673   : > { %v1740_v0 = vpop.xlane.xlu1 %1739 }
 0x674   : > { %5026 = vrcp.f32 %v1740_v0 }
 0x675   : > { %v6782_v27 = vpop.eup %5014 }
 0x676   : > { %v1768_v56 = vsel %vm1635_vm2, %v6782_v27, 0.0 }
 0x677   : > { %v6786_v20 = vpop.eup %5016  ;;  %1769 = vadd.xlane.f32.xlu1 %v1768_v56  ;;  %v1743_v32 = vpop.xlane.xlu0 %1742  ;;  %v1226_v56 = vld [vmem:[#allocation3 + $0x28] sm:$0xff] }
 0x678   : > { %5028 = vrcp.f32 %v1743_v32  ;;  %v1771_v54 = vsel %vm1635_vm2, %v6786_v20, 0.0  ;;  %v1227_v32 = vld [vmem:[#allocation3 + $0x30] sm:$0xff] }
 0x679   : > { %v6790_v51 = vpop.eup %5018  ;;  %1772 = vadd.xlane.f32.xlu0 %v1771_v54 }
 0x67a   : > { %v5021_v16 = vpop.eup %5020  ;;  %v1774_v19 = vsel %vm1635_vm2, %v6790_v51, 0.0 }
 0x67b   : > { %v6794_v28 = vpop.eup %5022  ;;  %1775 = vadd.xlane.f32.xlu1 %v1774_v19  ;;  %v1796_v21 = vmul.f32 %v5021_v16, %v6722_v10  ;;  %v1228_v10 = vld [vmem:[#allocation3 + $0x38] sm:$0xff] }
 0x67c   : > { %v5025_v62 = vpop.eup %5024  ;;  %v1777_v24 = vsel %vm1635_vm2, %v6794_v28, 0.0 }
 0x67d   : > { %1778 = vadd.xlane.f32.xlu0 %v1777_v24  ;;  %v1797_v31 = vmul.f32 %v5025_v62, %v6726_v58  ;;  %v1229_v58 = vld [vmem:[#allocation3 + $0x40] sm:$0xff] }
 0x67e   : > { %v5027_v25 = vpop.eup %5026 }
 0x67f   : > { %v1812_v23 = vpack.c.bf16 %v1797_v31, %v1796_v21  ;;  %v1798_v53 = vmul.f32 %v5027_v25, %v6730_v13  ;;  %v6806_v13 = vcombine.low %v6190_v37, %v6192_v38 }
 0x681   : > { %4500 = vmatprep.mubr.msk.bf16.mxu1 %vm1635_vm2, %v1812_v23  ;;  %4540 = vmatprep.subr.bf16.mxu0 %v6806_v13 }
 0x682   : > { %v5029_v12 = vpop.eup %5028  ;;  %4541 = vmatpush3.bf16.msra.mxu0 %v6806_v13 }
 0x683   : > { %v1799_v63 = vmul.f32 %v5029_v12, %v6734_v15 }
 0x685   : > { %v1813_v0 = vpack.c.bf16 %v1799_v63, %v1798_v53 }
 0x687   : > { %4501 = vmatmul.mubr.msk.bf16.vlgmr.msra.gmra.mrb[8].mxu1 %vm1635_vm2, %v1813_v0 }
 0x688   : > { %4505 = vmatpush3.bf16.msra.mxu1 %v1225_v26 }
 0x689   : > { %4506 = vmatprep.subr.bf16.mxu1 %v1226_v56 }
 0x68c   : > { %4507 = vmatpush3.bf16.msra.mxu1 %v1226_v56 }
 0x68d   : > { %4508 = vmatprep.subr.bf16.mxu1 %v1227_v32 }
 0x690   : > { %4509 = vmatpush3.bf16.msra.mxu1 %v1227_v32 }
 0x691   : > { %4510 = vmatprep.subr.bf16.mxu1 %v1228_v10 }
 0x694   : > { %4511 = vmatpush3.bf16.msra.mxu1 %v1228_v10 }
 0x695   : > { %4516 = vmatprep.subr.bf16.mxu1 %v1229_v58 }
 0x6e4   : > { %v1746_v15 = vpop.xlane.xlu1 %1745 }
 0x6e5   : > { %5030 = vrcp.f32 %v1746_v15  ;;  %v1230_v15 = vld [vmem:[#allocation3 + $0x48] sm:$0xff] }
 0x6e6   : > { %v1749_v26 = vpop.xlane.xlu0 %1748 }
 0x6e7   : > { %5032 = vrcp.f32 %v1749_v26  ;;  %v1231_v26 = vld [vmem:[#allocation3 + $0x50] sm:$0xff] }
 0x6e8   : > { %v1752_v54 = vpop.xlane.xlu1 %1751 }
 0x6e9   : > { %5034 = vrcp.f32 %v1752_v54  ;;  %v1232_v54 = vld [vmem:[#allocation3 + $0x58] sm:$0xff] }
 0x6ea   : > { %v1755_v16 = vpop.xlane.xlu0 %1754 }
 0x6eb   : > { %5036 = vrcp.f32 %v1755_v16 }
 0x6ec   : > { %v1758_v19 = vpop.xlane.xlu1 %1757 }
 0x6ed   : > { %5038 = vrcp.f32 %v1758_v19 }
 0x6ee   : > { %v1761_v62 = vpop.xlane.xlu0 %1760 }
 0x6ef   : > { %v5031_v24 = vpop.eup %5030  ;;  %5040 = vrcp.f32 %v1761_v62 }
 0x6f0   : > { %v1800_v37 = vmul.f32 %v5031_v24, %v6745_v60  ;;  %v1764_v0 = vpop.xlane.xlu1 %1763 }
 0x6f1   : > { %v5033_v21 = vpop.eup %5032 }
 0x6f2   : > { %v1801_v38 = vmul.f32 %v5033_v21, %v6750_v57  ;;  %v1767_v23 = vpop.xlane.xlu0 %1766 }
 0x6f3   : > { %v5035_v31 = vpop.eup %5034  ;;  %5042 = vrcp.f32 %v1767_v23 }
 0x6f4   : > { %v1814_v25 = vpack.c.bf16 %v1801_v38, %v1800_v37  ;;  %v1802_v53 = vmul.f32 %v5035_v31, %v6754_v22  ;;  %5044 = vrcp.f32 %v1764_v0  ;;  %v1234_v37 = vld [vmem:[#allocation3 + $0x68] sm:$0xff] }
 0x6f5   : > { %v5037_v12 = vpop.eup %5036 }
 0x6f6   : > { %v1803_v63 = vmul.f32 %v5037_v12, %v6758_v6  ;;  %4512 = vmatprep.mubr.msk.bf16.mxu1 %vm1635_vm2, %v1814_v25 }
 0x6f7   : > { %v5039_v56 = vpop.eup %5038 }
 0x6f8   : > { %v1815_v32 = vpack.c.bf16 %v1803_v63, %v1802_v53  ;;  %v1804_v60 = vmul.f32 %v5039_v56, %v6762_v11  ;;  %v1233_v11 = vld [vmem:[#allocation3 + $0x60] sm:$0xff] }
 0x6f9   : > { %v5041_v10 = vpop.eup %5040 }
 0x6fa   : > { %4513 = vmatmul.mubr.msk.bf16.vlgmr.msra.gmra.mrb[12].mxu1 %vm1635_vm2, %v1815_v32  ;;  %v1805_v57 = vmul.f32 %v5041_v10, %v6766_v14 }
 0x6fb   : > { %4517 = vmatpush3.bf16.msra.mxu1 %v1229_v58 }
 0x6fc   : > { %4518 = vmatprep.subr.bf16.mxu1 %v1230_v15  ;;  %v1816_v22 = vpack.c.bf16 %v1805_v57, %v1804_v60 }
 0x6fd   : > { %v5043_v6 = vpop.eup %5042 }
 0x6fe   : > { %4524 = vmatprep.mubr.msk.bf16.mxu1 %vm1635_vm2, %v1816_v22  ;;  %v5045_v16 = vpop.eup %5044  ;;  %v1807_v19 = vmul.f32 %v5043_v6, %v6774_v17  ;;  %v1235_v17 = vld [vmem:[#allocation3 + $0x70] sm:$0xff] }
 0x6ff   : > { %4519 = vmatpush3.bf16.msra.mxu1 %v1230_v15  ;;  %v1806_v14 = vmul.f32 %v5045_v16, %v6770_v61  ;;  %v1236_v61 = vld [vmem:[#allocation3 + $0x78] sm:$0xff]  ;;  %v6857_v15 = vcombine.low %v6186_v35, %v6188_v36  ;;  %v6872_v36 = vcombine.low %v6202_v43, %v6204_v44  ;;  %v1201_v16 = vunpack.c.l.bf16 %v6574_v2 }
 0x700   : > { %4520 = vmatprep.subr.bf16.mxu1 %v1231_v26 }
 0x701   : > { %v1817_v21 = vpack.c.bf16 %v1807_v19, %v1806_v14 }
 0x703   : > { %4521 = vmatpush3.bf16.msra.mxu1 %v1231_v26 }
 0x704   : > { %v1770_v62 = vpop.xlane.xlu1 %1769  ;;  %4522 = vmatprep.subr.bf16.mxu1 %v1232_v54 }
 0x705   : > { %5046 = vrcp.f32 %v1770_v62 }
 0x706   : > { %v1773_v58 = vpop.xlane.xlu0 %1772 }
 0x707   : > { %5048 = vrcp.f32 %v1773_v58  ;;  %4523 = vmatpush3.bf16.msra.mxu1 %v1232_v54 }
 0x708   : > { %v1776_v24 = vpop.xlane.xlu1 %1775  ;;  %4528 = vmatprep.subr.bf16.mxu1 %v1233_v11 }
 0x709   : > { %5050 = vrcp.f32 %v1776_v24 }
 0x70a   : > { %4525 = vmatmul.mubr.msk.bf16.vlgmr.msra.gmra.mrb[16].mxu1 %vm1635_vm2, %v1817_v21  ;;  %v1779_v38 = vpop.xlane.xlu0 %1778 }
 0x70b   : > { %5052 = vrcp.f32 %v1779_v38  ;;  %4529 = vmatpush3.bf16.msra.mxu1 %v1233_v11  ;;  %v1202_v11 = vunpack.c.h.bf16 %v6574_v2 }
 0x70c   : > { %4530 = vmatprep.subr.bf16.mxu1 %v1234_v37 }
 0x70f   : > { %v5047_v31 = vpop.eup %5046  ;;  %4531 = vmatpush3.bf16.msra.mxu1 %v1234_v37 }
 0x710   : > { %4532 = vmatprep.subr.bf16.mxu1 %v1235_v17  ;;  %v1808_v25 = vmul.f32 %v5047_v31, %v6782_v27 }
 0x711   : > { %v5049_v23 = vpop.eup %5048 }
 0x712   : > { %v1809_v12 = vmul.f32 %v5049_v23, %v6786_v20 }
 0x713   : > { %v5051_v53 = vpop.eup %5050  ;;  %4533 = vmatpush3.bf16.msra.mxu1 %v1235_v17  ;;  %v1203_v17 = vunpack.c.l.bf16 %v6613_v9 }
 0x714   : > { %4534 = vmatprep.subr.bf16.mxu1 %v1236_v61  ;;  %v1818_v63 = vpack.c.bf16 %v1809_v12, %v1808_v25  ;;  %v1810_v56 = vmul.f32 %v5051_v53, %v6790_v51 }
 0x715   : > { %v5053_v0 = vpop.eup %5052 }
 0x716   : > { %v1811_v32 = vmul.f32 %v5053_v0, %v6794_v28  ;;  %4536 = vmatprep.mubr.msk.bf16.mxu1 %vm1635_vm2, %v1818_v63 }
 0x717   : > { %4535 = vmatpush3.bf16.msra.mxu1 %v1236_v61  ;;  %v1204_v61 = vunpack.c.h.bf16 %v6613_v9 }
 0x718   : > { %v1819_v10 = vpack.c.bf16 %v1811_v32, %v1810_v56  ;;  %4572 = vmatprep.subr.bf16.mxu1 %v6554_v29 }
 0x71a   : > { %4537 = vmatmul.mubr.msk.bf16.vlgmr.msra.gmra.mrb[20].mxu1 %vm1635_vm2, %v1819_v10 }
 0x71b   : > { %4573 = vmatpush3.bf16.msra.mxu1 %v6554_v29  ;;  %v6846_v29 = vcombine.low %v6194_v39, %v6196_v40 }
 0x71c   : > { %4574 = vmatprep.subr.bf16.mxu1 %v6558_v30 }
 0x71d   : > { %4542 = vmatprep.subr.bf16.mxu0 %v6846_v29 }
 0x71e   : > { %4543 = vmatpush3.bf16.msra.mxu0 %v6846_v29 }
 0x71f   : > { %4575 = vmatpush3.bf16.msra.mxu1 %v6558_v30  ;;  %v6852_v30 = vcombine.low %v6182_v33, %v6184_v34  ;;  %v6866_v33 = vcombine.low %v6198_v41, %v6200_v42  ;;  %v6879_v41 = vcombine.low %v6206_v45, %v6208_v46  ;;  %v6886_v42 = vcombine.low %v6210_v47, %v6212_v48 }
 0x720   : > { %4576 = vmatprep.subr.bf16.mxu1 %v6571_v1  ;;  %v2326_v47 = vsub.s32 1, %v6629_v59 }
 0x721   : > { %4548 = vmatprep.subr.bf16.mxu0 %v6852_v30 }
 0x722   : > { %v6898_v48 = vrot.slane %v6312_v55, %v2326_v47 }
 0x723   : > { %4577 = vmatpush3.bf16.msra.mxu1 %v6571_v1 }
 0x724   : > { %4578 = vmatprep.subr.bf16.mxu1 %v6582_v3 }
 0x727   : > { %4579 = vmatpush3.bf16.msra.mxu1 %v6582_v3 }
 0x728   : > { %4580 = vmatprep.subr.bf16.mxu1 %v6589_v4 }
 0x72b   : > { %4581 = vmatpush3.bf16.msra.mxu1 %v6589_v4 }
 0x72c   : > { %4582 = vmatprep.subr.bf16.mxu1 %v6596_v5 }
 0x72f   : > { %4583 = vmatpush3.bf16.msra.mxu1 %v6596_v5 }
 0x730   : > { %4584 = vmatprep.subr.bf16.mxu1 %v6603_v7 }
 0x733   : > { %4585 = vmatpush3.bf16.msra.mxu1 %v6603_v7 }
 0x734   : > { %4586 = vmatprep.subr.bf16.mxu1 %v6609_v8 }
 0x737   : > { %4587 = vmatpush3.bf16.msra.mxu1 %v6609_v8 }
 0x75a   : > { %v4502_v1 = vpop.f32.mrb[8].mxu1 }
 0x75b   : > { %v1860_v3 = vpop.f32.mrb[9].mxu1 }
 0x75c   : > { %v4503_v4 = vpop.f32.mrb[10].mxu1 }
 0x75d   : > { %v2041_v5 = vpack.c.bf16 %v4503_v4, %v4502_v1  ;;  %v1863_v7 = vpop.f32.mrb[11].mxu1 }
 0x75e   : > { %v2040_v8 = vpack.c.bf16 %v1863_v7, %v1860_v3 }
 0x7cd   : > { %v4514_v27 = vpop.f32.mrb[12].mxu1 }
 0x7ce   : > { %v1915_v20 = vpop.f32.mrb[13].mxu1 }
 0x7cf   : > { %v4515_v39 = vpop.f32.mrb[14].mxu1 }
 0x7d0   : > { %v2043_v40 = vpack.c.bf16 %v4515_v39, %v4514_v27  ;;  %v1918_v51 = vpop.f32.mrb[15].mxu1  ;;  %v2397_v39 = vld [vmem:[#allocation4] sm:$0xff] }
 0x7d1   : > { %v2042_v28 = vpack.c.bf16 %v1918_v51, %v1915_v20  ;;  %v2503_v51 = vsel %vm1366_vm1, %v2397_v39, 0 }
 0x7d3   : > { %4544 = vmatprep.mubr.msk.bf16.mxu0 %vm1366_vm1, %v2042_v28 }
 0x7d4   : > { %4545 = vmatmul.mubr.msk.bf16.vlgmr.msra.gmra.mrb[12].mxu0 %vm1366_vm1, %v2043_v40  ;;  %v2398_v40 = vld [vmem:[#allocation4 + $0x8] sm:$0xff] }
 0x7d5   : > { %4549 = vmatpush3.bf16.msra.mxu0 %v6852_v30  ;;  %4552 = vmatprep.mubr.msk.bf16.mxu0 %vm1366_vm1, %v2040_v8  ;;  %v2506_v28 = vsel %vm1366_vm1, %v2398_v40, 0 }
 0x7d6   : > { %4550 = vmatprep.subr.bf16.mxu0 %v6857_v15 }
 0x7d9   : > { %4551 = vmatpush3.bf16.msra.mxu0 %v6857_v15 }
 0x7da   : > { %4556 = vmatprep.subr.bf16.mxu0 %v6866_v33 }
 0x7dd   : > { %v4526_v34 = vpop.f32.mrb[16].mxu1 }
 0x7de   : > { %v1970_v35 = vpop.f32.mrb[17].mxu1 }
 0x7df   : > { %v4527_v60 = vpop.f32.mrb[18].mxu1 }
 0x7e0   : > { %v2045_v57 = vpack.c.bf16 %v4527_v60, %v4526_v34  ;;  %v1973_v22 = vpop.f32.mrb[19].mxu1  ;;  %4553 = vmatmul.mubr.msk.bf16.vlgmr.msra.gmra.mrb[12].mxu0 %vm1366_vm1, %v2041_v5  ;;  %v2399_v34 = vld [vmem:[#allocation4 + $0x10] sm:$0xff] }
 0x7e1   : > { %v2044_v26 = vpack.c.bf16 %v1973_v22, %v1970_v35  ;;  %4557 = vmatpush3.bf16.msra.mxu0 %v6866_v33  ;;  %v2509_v35 = vsel %vm1366_vm1, %v2399_v34, 0 }
 0x7e2   : > { %4558 = vmatprep.subr.bf16.mxu0 %v6872_v36 }
 0x7e3   : > { %4560 = vmatprep.mubr.msk.bf16.mxu0 %vm1366_vm1, %v2044_v26 }
 0x7e5   : > { %4559 = vmatpush3.bf16.msra.mxu0 %v6872_v36 }
 0x7e6   : > { %4564 = vmatprep.subr.bf16.mxu0 %v6879_v41 }
 0x7ec   : > { %4561 = vmatmul.mubr.msk.bf16.vlgmr.msra.gmra.mrb[12].mxu0 %vm1366_vm1, %v2045_v57 }
 0x7ed   : > { %v4538_v43 = vpop.f32.mrb[20].mxu1  ;;  %4565 = vmatpush3.bf16.msra.mxu0 %v6879_v41 }
 0x7ee   : > { %v2025_v44 = vpop.f32.mrb[21].mxu1  ;;  %4566 = vmatprep.subr.bf16.mxu0 %v6886_v42 }
 0x7ef   : > { %v4539_v45 = vpop.f32.mrb[22].mxu1 }
 0x7f0   : > { %v2047_v46 = vpack.c.bf16 %v4539_v45, %v4538_v43  ;;  %v2028_v6 = vpop.f32.mrb[23].mxu1 }
 0x7f1   : > { %v2046_v54 = vpack.c.bf16 %v2028_v6, %v2025_v44  ;;  %4567 = vmatpush3.bf16.msra.mxu0 %v6886_v42 }
 0x7f2   : > { %4760 = vmatprep.subr.msk.bf16.mxu0 %vm1366_vm1, %v2397_v39 }
 0x7f3   : > { %4568 = vmatprep.mubr.msk.bf16.mxu0 %vm1366_vm1, %v2046_v54 }
 0x7f8   : > { %4569 = vmatmul.mubr.msk.bf16.vlgmr.msra.gmra.mrb[12].mxu0 %vm1366_vm1, %v2047_v46 }
 0x7fa   : > { %4593 = vmatpush3.bf16.xpose.msra.mxu0 %v2503_v51 }
 0x7fb   : > { %4761 = vmatprep.subr.msk.bf16.mxu0 %vm1366_vm1, %v2398_v40  ;;  %v2404_v40 = vld [vmem:[#allocation4 + $0x38] sm:$0xff] }
 0x7fc   : > { %v2579_v51 = vsel %vm1366_vm1, %v2404_v40, 0 }
 0x802   : > { %4595 = vmatpush3.bf16.xpose.msra.mxu0 %v2506_v28  ;;  %v2409_v28 = vld [vmem:[#allocation4 + $0x60] sm:$0xff] }
 0x803   : > { %4762 = vmatprep.subr.msk.bf16.mxu0 %vm1366_vm1, %v2399_v34 }
 0x80a   : > { %4597 = vmatpush3.bf16.xpose.msra.mxu0 %v2509_v35 }
 0x8cb   : > { %v4570_v19 = vpop.f32.mrb[12].mxu0 }
 0x8cc   : > { %v2305_v62 = vpop.f32.mrb[13].mxu0  ;;  %v2330_v21 = vadd.f32 %v4570_v19, %v6898_v48 }
 0x8cd   : > { %v2328_v14 = vadd.f32 %v6898_v48, %v2305_v62  ;;  %v4571_v58 = vpop.f32.mrb[14].mxu0  ;;  %v2383_v62 = vsub.s32 3, %v6629_v59 }
 0x8ce   : > { %v2308_v24 = vpop.f32.mrb[15].mxu0  ;;  %v2331_v31 = vadd.f32 %v4571_v58, %v6898_v48  ;;  %v2334_v25 = vadd.f32 %v2330_v21, %v1203_v17 }
 0x8cf   : > { %v2329_v37 = vadd.f32 %v6898_v48, %v2308_v24  ;;  %v2332_v38 = vadd.f32 %v2328_v14, %v1201_v16  ;;  %v2391_v14 = vsub.s32 4, %v6629_v59 }
 0x8d0   : > { %v2335_v2 = vadd.f32 %v2331_v31, %v1204_v61 }
 0x8d1   : > { %2336 = vadd.xlane.f32.xlu1 %v2332_v38  ;;  %v2333_v23 = vadd.f32 %v2329_v37, %v1202_v11  ;;  %v2384_v11 = vrot.slane %v6312_v55, %v2383_v62  ;;  %v2392_v17 = vrot.slane %v6312_v55, %v2391_v14  ;;  %v2408_v62 = vld [vmem:[#allocation4 + $0x58] sm:$0xff] }
 0x8d3   : > { %2338 = vadd.xlane.f32.xlu0 %v2333_v23 }
 0x8d5   : > { %2340 = vadd.xlane.f32.xlu1 %v2334_v25 }
 0x8d7   : > { %2342 = vadd.xlane.f32.xlu0 %v2335_v2 }
 0x95e   : > { %v2337_v12 = vpop.xlane.xlu1 %2336 }
 0x95f   : > { %v2345_v53 = vmul.f32 0.0078125, %v2337_v12 }
 0x960   : > { %v2339_v63 = vpop.xlane.xlu0 %2338 }
 0x961   : > { %v2349_v0 = vsub.f32 %v2332_v38, %v2345_v53  ;;  %v2346_v56 = vmul.f32 0.0078125, %v2339_v63 }
 0x962   : > { %v2341_v32 = vpop.xlane.xlu1 %2340 }
 0x963   : > { %v2350_v10 = vsub.f32 %v2333_v23, %v2346_v56  ;;  %v2347_v1 = vmul.f32 0.0078125, %v2341_v32  ;;  %v2353_v3 = vmul.f32 %v2349_v0, %v2349_v0 }
 0x964   : > { %v2343_v4 = vpop.xlane.xlu0 %2342 }
 0x965   : > { %v2351_v5 = vsub.f32 %v2334_v25, %v2347_v1  ;;  %v2348_v7 = vmul.f32 0.0078125, %v2343_v4  ;;  %2357 = vadd.xlane.f32.xlu1 %v2353_v3  ;;  %v2354_v8 = vmul.f32 %v2350_v10, %v2350_v10  ;;  %v2400_v3 = vld [vmem:[#allocation4 + $0x18] sm:$0xff] }
 0x966   : > { %4763 = vmatprep.subr.msk.bf16.mxu0 %vm1366_vm1, %v2400_v3  ;;  %v2512_v4 = vsel %vm1366_vm1, %v2400_v3, 0 }
 0x967   : > { %v2352_v9 = vsub.f32 %v2335_v2, %v2348_v7  ;;  %2359 = vadd.xlane.f32.xlu0 %v2354_v8  ;;  %v2355_v27 = vmul.f32 %v2351_v5, %v2351_v5  ;;  %4599 = vmatpush3.bf16.xpose.msra.mxu0 %v2512_v4  ;;  %v2402_v7 = vld [vmem:[#allocation4 + $0x28] sm:$0xff]  ;;  %v2405_v8 = vld [vmem:[#allocation4 + $0x40] sm:$0xff] }
 0x968   : > { %4768 = vmatprep.subr.msk.bf16.mxu0 %vm1366_vm1, %v2405_v8 }
 0x969   : > { %2361 = vadd.xlane.f32.xlu1 %v2355_v27  ;;  %v2356_v20 = vmul.f32 %v2352_v9, %v2352_v9  ;;  %v2573_v27 = vsel %vm1366_vm1, %v2402_v7, 0 }
 0x96b   : > { %2363 = vadd.xlane.f32.xlu0 %v2356_v20  ;;  %v2403_v20 = vld [vmem:[#allocation4 + $0x30] sm:$0xff] }
 0x96c   : > { %v2576_v39 = vsel %vm1366_vm1, %v2403_v20, 0 }
 0x9f2   : > { %v2358_v60 = vpop.xlane.xlu1 %2357 }
 0x9f3   : > { %v2365_v57 = vmul.f32 0.0078125, %v2358_v60 }
 0x9f4   : > { %v2360_v22 = vpop.xlane.xlu0 %2359 }
 0x9f5   : > { %v2369_v26 = vadd.f32 1e-05, %v2365_v57  ;;  %v2366_v43 = vmul.f32 0.0078125, %v2360_v22 }
 0x9f6   : > { %v2362_v44 = vpop.xlane.xlu1 %2361 }
 0x9f7   : > { %5054 = vrsqrt.f32 %v2369_v26  ;;  %v2370_v45 = vadd.f32 1e-05, %v2366_v43  ;;  %v2367_v46 = vmul.f32 0.0078125, %v2362_v44 }
 0x9f8   : > { %v2364_v6 = vpop.xlane.xlu0 %2363 }
 0x9f9   : > { %5056 = vrsqrt.f32 %v2370_v45  ;;  %v2371_v54 = vadd.f32 1e-05, %v2367_v46  ;;  %v2368_v16 = vmul.f32 0.0078125, %v2364_v6  ;;  %v2637_v6 = vsel %vm1366_vm1, %v2405_v8, 0 }
 0x9fb   : > { %5058 = vrsqrt.f32 %v2371_v54  ;;  %v2372_v19 = vadd.f32 1e-05, %v2368_v16  ;;  %v2406_v54 = vld [vmem:[#allocation4 + $0x48] sm:$0xff]  ;;  %v2407_v16 = vld [vmem:[#allocation4 + $0x50] sm:$0xff] }
 0x9fd   : > { %5060 = vrsqrt.f32 %v2372_v19  ;;  %v2643_v19 = vsel %vm1366_vm1, %v2407_v16, 0 }
 0xa01   : > { %v5055_v58 = vpop.eup %5054 }
 0xa02   : > { %v2377_v24 = vmul.f32 %v5055_v58, %v2349_v0 }
 0xa03   : > { %v5057_v21 = vpop.eup %5056 }
 0xa04   : > { %v2378_v37 = vmul.f32 %v5057_v21, %v2350_v10  ;;  %v2385_v38 = vmul.f32 %v2384_v11, %v2377_v24  ;;  %v2704_v24 = vsel %vm1366_vm1, %v2409_v28, 0  ;;  %v2410_v21 = vld [vmem:[#allocation4 + $0x68] sm:$0xff] }
 0xa05   : > { %v5059_v31 = vpop.eup %5058 }
 0xa06   : > { %v2379_v23 = vmul.f32 %v5059_v31, %v2351_v5  ;;  %v2386_v61 = vmul.f32 %v2384_v11, %v2378_v37  ;;  %v6918_v12 = vadd.f32 %v2392_v17, %v2385_v38  ;;  %v2401_v5 = vld [vmem:[#allocation4 + $0x20] sm:$0xff]  ;;  %v2707_v31 = vsel %vm1366_vm1, %v2410_v21, 0 }
 0xa07   : > { %v5061_v25 = vpop.eup %5060  ;;  %4764 = vmatprep.subr.msk.bf16.mxu1 %vm1366_vm1, %v2401_v5 }
 0xa08   : > { %v2380_v2 = vmul.f32 %v5061_v25, %v2352_v9  ;;  %v6920_v53 = vadd.f32 %v2392_v17, %v2386_v61  ;;  %v2387_v63 = vmul.f32 %v2384_v11, %v2379_v23  ;;  %v2570_v9 = vsel %vm1366_vm1, %v2401_v5, 0  ;;  %v2411_v23 = vld [vmem:[#allocation4 + $0x70] sm:$0xff]  ;;  %v2412_v25 = vld [vmem:[#allocation4 + $0x78] sm:$0xff] }
 0xa09   : > { %v2710_v61 = vsel %vm1366_vm1, %v2411_v23, 0 }
 0xa0a   : > { %v2429_v56 = vpack.c.bf16 %v6920_v53, %v6918_v12  ;;  %v2388_v32 = vmul.f32 %v2384_v11, %v2380_v2  ;;  %v6924_v0 = vadd.f32 %v2392_v17, %v2387_v63  ;;  %v2646_v11 = vsel %vm1366_vm1, %v2408_v62, 0 }
 0xa0b   : > { %v2713_v2 = vsel %vm1366_vm1, %v2412_v25, 0 }
 0xa0c   : > { %4588 = vmatprep.mubr.bf16.mxu1 %v2429_v56  ;;  %v6926_v10 = vadd.f32 %v2392_v17, %v2388_v32 }
 0xa0e   : > { %v2430_v1 = vpack.c.bf16 %v6926_v10, %v6924_v0 }
 0xa10   : > { %4589 = vmatmul.mubr.bf16.vlgmr.msra.gmra.mrb[24].mxu1 %v2430_v1 }
 0xa11   : > { %4605 = vmatpush3.bf16.xpose.msra.mxu1 %v2570_v9 }
 0xa12   : > { %4765 = vmatprep.subr.msk.bf16.mxu1 %vm1366_vm1, %v2402_v7 }
 0xa19   : > { %4607 = vmatpush3.bf16.xpose.msra.mxu1 %v2573_v27 }
 0xa1a   : > { %4766 = vmatprep.subr.msk.bf16.mxu1 %vm1366_vm1, %v2403_v20 }
 0xa21   : > { %4609 = vmatpush3.bf16.xpose.msra.mxu1 %v2576_v39 }
 0xa22   : > { %4767 = vmatprep.subr.msk.bf16.mxu1 %vm1366_vm1, %v2404_v40 }
 0xa29   : > { %4611 = vmatpush3.bf16.xpose.msra.mxu1 %v2579_v51 }
 0xa2a   : > { %4772 = vmatprep.subr.msk.bf16.mxu1 %vm1366_vm1, %v2409_v28 }
 0xae3   : > { %v4590_v34 = vpop.f32.mrb[24].mxu1 }
 0xae4   : > { %v2465_v35 = vpop.f32.mrb[25].mxu1  ;;  %v2474_v57 = vadd.f32 %v4590_v34, %v6636_v18 }
 0xae5   : > { %v4591_v60 = vpop.f32.mrb[26].mxu1  ;;  %v2466_v43 = vadd.f32 %v2465_v35, %v6636_v18 }
 0xae6   : > { %v2477_v22 = vadd.f32 %v4591_v60, %v6636_v18  ;;  %v2468_v26 = vpop.f32.mrb[27].mxu1 }
 0xae7   : > { %v2469_v44 = vadd.f32 %v2468_v26, %v6636_v18  ;;  %v2640_v18 = vsel %vm1366_vm1, %v2406_v54, 0 }
 0xae8   : > { %v2481_v45 = vpack.c.bf16 %v2477_v22, %v2474_v57 }
 0xae9   : > { %v2480_v46 = vpack.c.bf16 %v2469_v44, %v2466_v43 }
 0xaea   : > { %2486 = vrot.lane.b32.xlu0 %v2481_v45, %s5609_s22 }
 0xaeb   : > { %2484 = vrot.lane.b32.xlu1 %v2480_v46, %s5609_s22  ;;  %4600 = vmatprep.mubr.msk.bf16.mxu0 %vm1366_vm1, %v2480_v46 }
 0xaec   : > { %4601 = vmatmul.mubr.msk.bf16.vlgmr.msra.gmra.mrb[16].mxu0 %vm1366_vm1, %v2481_v45 }
 0xaed   : > { %4617 = vmatpush3.bf16.xpose.msra.mxu0 %v2637_v6 }
 0xaee   : > { %2492 = vrot.lane.b32.xlu0 %v2480_v46, %s5610_s13  ;;  %4769 = vmatprep.subr.msk.bf16.mxu0 %vm1366_vm1, %v2406_v54 }
 0xaef   : > { %2488 = vrot.lane.b32.xlu1 %v2480_v46, %s5608_s21 }
 0xaf3   : > { %2490 = vrot.lane.b32.xlu1 %v2481_v45, %s5608_s21 }
 0xaf5   : > { %4619 = vmatpush3.bf16.xpose.msra.mxu0 %v2640_v18 }
 0xaf6   : > { %4770 = vmatprep.subr.msk.bf16.mxu0 %vm1366_vm1, %v2407_v16 }
 0xaf7   : > { %2494 = vrot.lane.b32.xlu1 %v2481_v45, %s5610_s13 }
 0xafd   : > { %4621 = vmatpush3.bf16.xpose.msra.mxu0 %v2643_v19 }
 0xafe   : > { %4771 = vmatprep.subr.msk.bf16.mxu0 %vm1366_vm1, %v2408_v62 }
 0xb05   : > { %4623 = vmatpush3.bf16.xpose.msra.mxu0 %v2646_v11 }
 0xb5c   : > { %v2487_v14 = vpop.permute.xlu0 %2486 }
 0xb5d   : > { %v2485_v58 = vpop.permute.xlu1 %2484 }
 0xb5e   : > { %4612 = vmatprep.mubr.msk.bf16.mxu1 %vm1366_vm1, %v2485_v58 }
 0xb5f   : > { %4613 = vmatmul.mubr.msk.bf16.vlgmr.msra.gmra.mrb[28].mxu1 %vm1366_vm1, %v2487_v14 }
 0xb60   : > { %4629 = vmatpush3.bf16.xpose.msra.mxu1 %v2704_v24  ;;  %v2493_v37 = vpop.permute.xlu0 %2492 }
 0xb61   : > { %4636 = vmatprep.mubr.msk.bf16.mxu1 %vm1366_vm1, %v2493_v37  ;;  %v2489_v38 = vpop.permute.xlu1 %2488  ;;  %4773 = vmatprep.subr.msk.bf16.mxu1 %vm1366_vm1, %v2410_v21 }
 0xb62   : > { %4624 = vmatprep.mubr.msk.bf16.mxu0 %vm1366_vm1, %v2489_v38 }
 0xb65   : > { %v2491_v17 = vpop.permute.xlu1 %2490 }
 0xb66   : > { %4625 = vmatmul.mubr.msk.bf16.vlgmr.msra.gmra.mrb[20].mxu0 %vm1366_vm1, %v2491_v17 }
 0xb68   : > { %4631 = vmatpush3.bf16.xpose.msra.mxu1 %v2707_v31 }
 0xb69   : > { %4774 = vmatprep.subr.msk.bf16.mxu1 %vm1366_vm1, %v2411_v23  ;;  %v2495_v63 = vpop.permute.xlu1 %2494 }
 0xb70   : > { %4633 = vmatpush3.bf16.xpose.msra.mxu1 %v2710_v61 }
 0xb71   : > { %4775 = vmatprep.subr.msk.bf16.mxu1 %vm1366_vm1, %v2412_v25 }
 0xb78   : > { %4635 = vmatpush3.bf16.xpose.msra.mxu1 %v2713_v2 }
 0xb7f   : > { %4637 = vmatmul.mubr.msk.bf16.vlgmr.msra.gmra.mrb[32].mxu1 %vm1366_vm1, %v2495_v63 }
 0xbbf   : > { %v6974_v56 = vpop.f32.mrb[16].mxu0 }
 0xbc0   : > { %v2548_v32 = vpop.f32.mrb[17].mxu0  ;;  %v2770_v60 = vsel %vm1635_vm2, %v6974_v56, -inf }
 0xbc1   : > { %v6976_v1 = vpop.f32.mrb[18].mxu0  ;;  %v2764_v51 = vsel %vm1635_vm2, %v2548_v32, -inf }
 0xbc2   : > { %v6978_v3 = vpop.f32.mrb[19].mxu0  ;;  %v2773_v26 = vsel %vm1635_vm2, %v6976_v1, -inf }
 0xbc3   : > { %v2767_v57 = vsel %vm1635_vm2, %v6978_v3, -inf }
 0xc32   : > { %v4614_v4 = vpop.f32.mrb[28].mxu1 }
 0xc33   : > { %v2615_v5 = vpop.f32.mrb[29].mxu1  ;;  %v2782_v20 = vsel %vm1635_vm2, %v4614_v4, -inf }
 0xc34   : > { %v4615_v7 = vpop.f32.mrb[30].mxu1  ;;  %v2776_v8 = vsel %vm1635_vm2, %v2615_v5, -inf }
 0xc35   : > { %2777 = vmax.xlane.f32.xlu0 %v2776_v8  ;;  %v2618_v9 = vpop.f32.mrb[31].mxu1  ;;  %v2785_v35 = vsel %vm1635_vm2, %v4615_v7, -inf }
 0xc36   : > { %v2779_v27 = vsel %vm1635_vm2, %v2618_v9, -inf }
 0xc37   : > { %2780 = vmax.xlane.f32.xlu1 %v2779_v27 }
 0xc39   : > { %2783 = vmax.xlane.f32.xlu0 %v2782_v20  ;;  %v6983_v39 = vpop.f32.mrb[20].mxu0 }
 0xc3a   : > { %v6985_v40 = vpop.f32.mrb[21].mxu0  ;;  %v2794_v43 = vsel %vm1635_vm2, %v6983_v39, -inf }
 0xc3b   : > { %2765 = vmax.xlane.f32.xlu1 %v2764_v51  ;;  %v6988_v28 = vpop.f32.mrb[22].mxu0  ;;  %v2788_v22 = vsel %vm1635_vm2, %v6985_v40, -inf }
 0xc3c   : > { %v6990_v34 = vpop.f32.mrb[23].mxu0  ;;  %v2797_v45 = vsel %vm1635_vm2, %v6988_v28, -inf }
 0xc3d   : > { %2786 = vmax.xlane.f32.xlu0 %v2785_v35  ;;  %v2791_v44 = vsel %vm1635_vm2, %v6990_v34, -inf }
 0xc3f   : > { %2771 = vmax.xlane.f32.xlu1 %v2770_v60 }
 0xc41   : > { %2768 = vmax.xlane.f32.xlu0 %v2767_v57 }
 0xc43   : > { %2789 = vmax.xlane.f32.xlu1 %v2788_v22 }
 0xc45   : > { %2774 = vmax.xlane.f32.xlu0 %v2773_v26 }
 0xc47   : > { %2795 = vmax.xlane.f32.xlu1 %v2794_v43 }
 0xc49   : > { %2792 = vmax.xlane.f32.xlu0 %v2791_v44 }
 0xc4d   : > { %2798 = vmax.xlane.f32.xlu0 %v2797_v45 }
 0xc52   : > { %v7007_v46 = vpop.f32.mrb[32].mxu1 }
 0xc53   : > { %v7009_v6 = vpop.f32.mrb[33].mxu1  ;;  %v2806_v62 = vsel %vm1635_vm2, %v7007_v46, -inf }
 0xc54   : > { %v7011_v54 = vpop.f32.mrb[34].mxu1  ;;  %v2800_v18 = vsel %vm1635_vm2, %v7009_v6, -inf }
 0xc55   : > { %v7015_v16 = vpop.f32.mrb[35].mxu1  ;;  %2801 = vmax.xlane.f32.xlu1 %v2800_v18  ;;  %v2809_v11 = vsel %vm1635_vm2, %v7011_v54, -inf }
 0xc56   : > { %v2803_v19 = vsel %vm1635_vm2, %v7015_v16, -inf }
 0xc57   : > { %2804 = vmax.xlane.f32.xlu0 %v2803_v19 }
 0xc59   : > { %2807 = vmax.xlane.f32.xlu1 %v2806_v62 }
 0xc5b   : > { %2810 = vmax.xlane.f32.xlu0 %v2809_v11 }
 0xcc2   : > { %v2778_v14 = vpop.xlane.xlu0 %2777 }
 0xcc3   : > { %v2816_v58 = vsub.f32 %v2615_v5, %v2778_v14 }
 0xcc4   : > { %v2781_v24 = vpop.xlane.xlu1 %2780 }
 0xcc5   : > { %v2836_v21 = vmul.f32 1.442695, %v2816_v58  ;;  %v2817_v37 = vsub.f32 %v2618_v9, %v2781_v24 }
 0xcc6   : > { %v2784_v38 = vpop.xlane.xlu0 %2783 }
 0xcc7   : > { %5062 = vpow2.f32 %v2836_v21  ;;  %v2838_v17 = vmul.f32 1.442695, %v2817_v37  ;;  %v2818_v31 = vsub.f32 %v4614_v4, %v2784_v38 }
 0xcc8   : > { %v2766_v23 = vpop.xlane.xlu1 %2765 }
 0xcc9   : > { %5064 = vpow2.f32 %v2838_v17  ;;  %v2840_v61 = vmul.f32 1.442695, %v2818_v31  ;;  %v2812_v25 = vsub.f32 %v2548_v32, %v2766_v23 }
 0xcca   : > { %v2787_v2 = vpop.xlane.xlu0 %2786 }
 0xccb   : > { %5066 = vpow2.f32 %v2840_v61  ;;  %v2828_v63 = vmul.f32 1.442695, %v2812_v25  ;;  %v2819_v8 = vsub.f32 %v4615_v7, %v2787_v2 }
 0xccc   : > { %v2772_v27 = vpop.xlane.xlu1 %2771 }
 0xccd   : > { %5068 = vpow2.f32 %v2828_v63  ;;  %v2842_v20 = vmul.f32 1.442695, %v2819_v8  ;;  %v2814_v5 = vsub.f32 %v6974_v56, %v2772_v27 }
 0xcce   : > { %v2769_v51 = vpop.xlane.xlu0 %2768 }
 0xccf   : > { %5070 = vpow2.f32 %v2842_v20  ;;  %v2832_v9 = vmul.f32 1.442695, %v2814_v5  ;;  %v2813_v35 = vsub.f32 %v6978_v3, %v2769_v51 }
 0xcd0   : > { %v2790_v60 = vpop.xlane.xlu1 %2789 }
 0xcd1   : > { %v7025_v4 = vpop.eup %5062  ;;  %5072 = vpow2.f32 %v2832_v9  ;;  %v2830_v57 = vmul.f32 1.442695, %v2813_v35  ;;  %v2820_v32 = vsub.f32 %v6985_v40, %v2790_v60 }
 0xcd2   : > { %v2775_v22 = vpop.xlane.xlu0 %2774  ;;  %v2872_v7 = vsel %vm1635_vm2, %v7025_v4, 0.0 }
 0xcd3   : > { %v7030_v26 = vpop.eup %5064  ;;  %5074 = vpow2.f32 %v2830_v57  ;;  %v2844_v56 = vmul.f32 1.442695, %v2820_v32  ;;  %v2815_v43 = vsub.f32 %v6976_v1, %v2775_v22  ;;  %2873 = vadd.xlane.f32.xlu1 %v2872_v7 }
 0xcd4   : > { %v2796_v44 = vpop.xlane.xlu1 %2795  ;;  %v2875_v3 = vsel %vm1635_vm2, %v7030_v26, 0.0 }
 0xcd5   : > { %v7035_v45 = vpop.eup %5066  ;;  %5076 = vpow2.f32 %v2844_v56  ;;  %v2834_v18 = vmul.f32 1.442695, %v2815_v43  ;;  %v2822_v40 = vsub.f32 %v6983_v39, %v2796_v44  ;;  %2876 = vadd.xlane.f32.xlu0 %v2875_v3  ;;  %v2417_v56 = vld [vmem:[#allocation5 + $0x20] sm:$0xff] }
 0xcd6   : > { %v2793_v19 = vpop.xlane.xlu0 %2792  ;;  %v2878_v62 = vsel %vm1635_vm2, %v7035_v45, 0.0  ;;  %4652 = vmatprep.subr.bf16.mxu1 %v2417_v56 }
 0xcd7   : > { %v7040_v11 = vpop.eup %5068  ;;  %5078 = vpow2.f32 %v2834_v18  ;;  %v2848_v1 = vmul.f32 1.442695, %v2822_v40  ;;  %v2821_v14 = vsub.f32 %v6990_v34, %v2793_v19  ;;  %2879 = vadd.xlane.f32.xlu1 %v2878_v62  ;;  %4653 = vmatpush3.bf16.msra.mxu1 %v2417_v56  ;;  %v2418_v40 = vld [vmem:[#allocation5 + $0x28] sm:$0xff]  ;;  %v2419_v19 = vld [vmem:[#allocation5 + $0x30] sm:$0xff] }
 0xcd8   : > { %v2860_v39 = vsel %vm1635_vm2, %v7040_v11, 0.0  ;;  %4654 = vmatprep.subr.bf16.mxu1 %v2418_v40 }
 0xcd9   : > { %v7043_v58 = vpop.eup %5070  ;;  %5080 = vpow2.f32 %v2848_v1  ;;  %v2846_v24 = vmul.f32 1.442695, %v2821_v14  ;;  %v2414_v14 = vld [vmem:[#allocation5 + $0x8] sm:$0xff] }
 0xcda   : > { %v2799_v21 = vpop.xlane.xlu0 %2798  ;;  %v2881_v37 = vsel %vm1635_vm2, %v7043_v58, 0.0 }
 0xcdb   : > { %v7049_v38 = vpop.eup %5072  ;;  %5082 = vpow2.f32 %v2846_v24  ;;  %v2823_v17 = vsub.f32 %v6988_v28, %v2799_v21  ;;  %2861 = vadd.xlane.f32.xlu1 %v2860_v39  ;;  %2882 = vadd.xlane.f32.xlu0 %v2881_v37  ;;  %v2420_v21 = vld [vmem:[#allocation5 + $0x38] sm:$0xff] }
 0xcdc   : > { %v2866_v23 = vsel %vm1635_vm2, %v7049_v38, 0.0  ;;  %4655 = vmatpush3.bf16.msra.mxu1 %v2418_v40 }
 0xcdd   : > { %v7052_v34 = vpop.eup %5074  ;;  %v2850_v31 = vmul.f32 1.442695, %v2823_v17  ;;  %4656 = vmatprep.subr.bf16.mxu1 %v2419_v19 }
 0xcde   : > { %v2863_v61 = vsel %vm1635_vm2, %v7052_v34, 0.0 }
 0xcdf   : > { %v7058_v25 = vpop.eup %5076  ;;  %5084 = vpow2.f32 %v2850_v31  ;;  %2867 = vadd.xlane.f32.xlu1 %v2866_v23  ;;  %2864 = vadd.xlane.f32.xlu0 %v2863_v61  ;;  %v2415_v31 = vld [vmem:[#allocation5 + $0x10] sm:$0xff]  ;;  %v2416_v61 = vld [vmem:[#allocation5 + $0x18] sm:$0xff] }
 0xce0   : > { %v2884_v28 = vsel %vm1635_vm2, %v7058_v25, 0.0  ;;  %4657 = vmatpush3.bf16.msra.mxu1 %v2419_v19 }
 0xce1   : > { %v7060_v2 = vpop.eup %5078  ;;  %4658 = vmatprep.subr.bf16.mxu1 %v2420_v21 }
 0xce2   : > { %v2802_v63 = vpop.xlane.xlu1 %2801  ;;  %v2869_v8 = vsel %vm1635_vm2, %v7060_v2, 0.0 }
 0xce3   : > { %v7066_v27 = vpop.eup %5080  ;;  %v2824_v20 = vsub.f32 %v7009_v6, %v2802_v63  ;;  %2885 = vadd.xlane.f32.xlu1 %v2884_v28  ;;  %2870 = vadd.xlane.f32.xlu0 %v2869_v8  ;;  %v7098_v63 = vld [vmem:[#allocation5 + $0x40] sm:$0xff] }
 0xce4   : > { %v2805_v5 = vpop.xlane.xlu0 %2804  ;;  %v2890_v57 = vsel %vm1635_vm2, %v7066_v27, 0.0  ;;  %4659 = vmatpush3.bf16.msra.mxu1 %v2420_v21  ;;  %v2425_v28 = vld [vmem:[#allocation5 + $0x60] sm:$0xff] }
 0xce5   : > { %v7069_v51 = vpop.eup %5082  ;;  %v2852_v9 = vmul.f32 1.442695, %v2824_v20  ;;  %v2825_v35 = vsub.f32 %v7015_v16, %v2805_v5  ;;  %4676 = vmatprep.subr.bf16.mxu1 %v2425_v28 }
 0xce6   : > { %v2808_v60 = vpop.xlane.xlu1 %2807  ;;  %v2887_v32 = vsel %vm1635_vm2, %v7069_v51, 0.0 }
 0xce7   : > { %5086 = vpow2.f32 %v2852_v9  ;;  %v2854_v22 = vmul.f32 1.442695, %v2825_v35  ;;  %v2826_v7 = vsub.f32 %v7007_v46, %v2808_v60  ;;  %2891 = vadd.xlane.f32.xlu1 %v2890_v57  ;;  %2888 = vadd.xlane.f32.xlu0 %v2887_v32  ;;  %v2413_v46 = vld [vmem:[#allocation5] sm:$0xff] }
 0xce8   : > { %v2811_v6 = vpop.xlane.xlu0 %2810  ;;  %4640 = vmatprep.subr.bf16.mxu0 %v2413_v46 }
 0xce9   : > { %v7077_v43 = vpop.eup %5084  ;;  %5088 = vpow2.f32 %v2854_v22  ;;  %v2856_v44 = vmul.f32 1.442695, %v2826_v7  ;;  %v2827_v16 = vsub.f32 %v7011_v54, %v2811_v6  ;;  %4641 = vmatpush3.bf16.msra.mxu0 %v2413_v46 }
 0xcea   : > { %v2893_v3 = vsel %vm1635_vm2, %v7077_v43, 0.0  ;;  %4642 = vmatprep.subr.bf16.mxu0 %v2414_v14 }
 0xceb   : > { %5090 = vpow2.f32 %v2856_v44  ;;  %v2858_v18 = vmul.f32 1.442695, %v2827_v16  ;;  %2894 = vadd.xlane.f32.xlu0 %v2893_v3 }
 0xced   : > { %5092 = vpow2.f32 %v2858_v18  ;;  %4643 = vmatpush3.bf16.msra.mxu0 %v2414_v14 }
 0xcee   : > { %4644 = vmatprep.subr.bf16.mxu0 %v2415_v31 }
 0xcf1   : > { %v7082_v62 = vpop.eup %5086  ;;  %4645 = vmatpush3.bf16.msra.mxu0 %v2415_v31 }
 0xcf2   : > { %v2896_v54 = vsel %vm1635_vm2, %v7082_v62, 0.0  ;;  %4646 = vmatprep.subr.bf16.mxu0 %v2416_v61 }
 0xcf3   : > { %v7086_v1 = vpop.eup %5088  ;;  %2897 = vadd.xlane.f32.xlu1 %v2896_v54 }
 0xcf4   : > { %v2899_v24 = vsel %vm1635_vm2, %v7086_v1, 0.0 }
 0xcf5   : > { %v7090_v39 = vpop.eup %5090  ;;  %2900 = vadd.xlane.f32.xlu0 %v2899_v24  ;;  %4647 = vmatpush3.bf16.msra.mxu0 %v2416_v61 }
 0xcf6   : > { %v2902_v37 = vsel %vm1635_vm2, %v7090_v39, 0.0  ;;  %4664 = vmatprep.subr.bf16.mxu0 %v7098_v63 }
 0xcf7   : > { %v7094_v17 = vpop.eup %5092  ;;  %2903 = vadd.xlane.f32.xlu1 %v2902_v37 }
 0xcf8   : > { %v2905_v23 = vsel %vm1635_vm2, %v7094_v17, 0.0 }
 0xcf9   : > { %2906 = vadd.xlane.f32.xlu0 %v2905_v23 }
 0xd60   : > { %v2874_v8 = vpop.xlane.xlu1 %2873 }
 0xd61   : > { %5094 = vrcp.f32 %v2874_v8  ;;  %v2427_v8 = vld [vmem:[#allocation5 + $0x70] sm:$0xff] }
 0xd62   : > { %v2877_v20 = vpop.xlane.xlu0 %2876 }
 0xd63   : > { %5096 = vrcp.f32 %v2877_v20 }
 0xd64   : > { %v2880_v5 = vpop.xlane.xlu1 %2879 }
 0xd65   : > { %5098 = vrcp.f32 %v2880_v5 }
 0xd68   : > { %v2862_v9 = vpop.xlane.xlu1 %2861  ;;  %v2883_v35 = vpop.xlane.xlu0 %2882 }
 0xd69   : > { %5100 = vrcp.f32 %v2883_v35  ;;  %v2428_v35 = vld [vmem:[#allocation5 + $0x78] sm:$0xff] }
 0xd6a   : > { %5102 = vrcp.f32 %v2862_v9  ;;  %v2422_v9 = vld [vmem:[#allocation5 + $0x48] sm:$0xff] }
 0xd6b   : > { %v5095_v60 = vpop.eup %5094 }
 0xd6c   : > { %v2868_v57 = vpop.xlane.xlu1 %2867  ;;  %v2865_v32 = vpop.xlane.xlu0 %2864  ;;  %v2928_v7 = vmul.f32 %v5095_v60, %v7025_v4 }
 0xd6d   : > { %v5097_v22 = vpop.eup %5096  ;;  %5104 = vrcp.f32 %v2865_v32 }
 0xd6e   : > { %v2929_v6 = vmul.f32 %v5097_v22, %v7030_v26  ;;  %5106 = vrcp.f32 %v2868_v57  ;;  %v2426_v26 = vld [vmem:[#allocation5 + $0x68] sm:$0xff]  ;;  %v2423_v22 = vld [vmem:[#allocation5 + $0x50] sm:$0xff] }
 0xd6f   : > { %v5099_v3 = vpop.eup %5098 }
 0xd70   : > { %v2871_v56 = vpop.xlane.xlu0 %2870  ;;  %v2942_v44 = vpack.c.bf16 %v2929_v6, %v2928_v7  ;;  %v2886_v16 = vpop.xlane.xlu1 %2885  ;;  %v2930_v46 = vmul.f32 %v5099_v3, %v7035_v45 }
 0xd71   : > { %5108 = vrcp.f32 %v2871_v56 }
 0xd72   : > { %4660 = vmatprep.mubr.msk.bf16.mxu1 %vm1635_vm2, %v2942_v44  ;;  %5110 = vrcp.f32 %v2886_v16 }
 0xd73   : > { %v5101_v18 = vpop.eup %5100 }
 0xd74   : > { %v2889_v40 = vpop.xlane.xlu0 %2888  ;;  %v2931_v19 = vmul.f32 %v5101_v18, %v7043_v58  ;;  %v5103_v54 = vpop.eup %5102 }
 0xd75   : > { %5112 = vrcp.f32 %v2889_v40  ;;  %v2924_v24 = vmul.f32 %v5103_v54, %v7040_v11  ;;  %v2892_v45 = vpop.xlane.xlu1 %2891 }
 0xd76   : > { %v2943_v4 = vpack.c.bf16 %v2931_v19, %v2930_v46 }
 0xd77   : > { %v5105_v14 = vpop.eup %5104 }
 0xd78   : > { %4661 = vmatmul.mubr.msk.bf16.vlgmr.msra.gmra.mrb[36].mxu1 %vm1635_vm2, %v2943_v4  ;;  %v2925_v21 = vmul.f32 %v5105_v14, %v7052_v34  ;;  %v5107_v37 = vpop.eup %5106  ;;  %v2895_v31 = vpop.xlane.xlu0 %2894 }
 0xd79   : > { %4677 = vmatpush3.bf16.msra.mxu1 %v2425_v28  ;;  %v2926_v58 = vmul.f32 %v5107_v37, %v7049_v38  ;;  %5114 = vrcp.f32 %v2895_v31 }
 0xd7a   : > { %v2940_v23 = vpack.c.bf16 %v2925_v21, %v2924_v24  ;;  %4678 = vmatprep.subr.bf16.mxu1 %v2426_v26  ;;  %5116 = vrcp.f32 %v2892_v45 }
 0xd7b   : > { %v5109_v61 = vpop.eup %5108 }
 0xd7c   : > { %v2927_v20 = vmul.f32 %v5109_v61, %v7060_v2  ;;  %4648 = vmatprep.mubr.msk.bf16.mxu0 %vm1635_vm2, %v2940_v23  ;;  %v5111_v5 = vpop.eup %5110 }
 0xd7d   : > { %4679 = vmatpush3.bf16.msra.mxu1 %v2426_v26  ;;  %v2932_v60 = vmul.f32 %v5111_v5, %v7058_v25 }
 0xd7e   : > { %v2941_v11 = vpack.c.bf16 %v2927_v20, %v2926_v58  ;;  %4680 = vmatprep.subr.bf16.mxu1 %v2427_v8 }
 0xd7f   : > { %v5113_v34 = vpop.eup %5112 }
 0xd80   : > { %v2898_v28 = vpop.xlane.xlu1 %2897  ;;  %4649 = vmatmul.mubr.msk.bf16.vlgmr.msra.gmra.mrb[24].mxu0 %vm1635_vm2, %v2941_v11  ;;  %v2933_v38 = vmul.f32 %v5113_v34, %v7069_v51  ;;  %v2424_v51 = vld [vmem:[#allocation5 + $0x58] sm:$0xff] }
 0xd81   : > { %5118 = vrcp.f32 %v2898_v28  ;;  %4665 = vmatpush3.bf16.msra.mxu0 %v7098_v63  ;;  %4681 = vmatpush3.bf16.msra.mxu1 %v2427_v8 }
 0xd82   : > { %v2901_v2 = vpop.xlane.xlu0 %2900  ;;  %4666 = vmatprep.subr.bf16.mxu0 %v2422_v9  ;;  %v2944_v57 = vpack.c.bf16 %v2933_v38, %v2932_v60  ;;  %4682 = vmatprep.subr.bf16.mxu1 %v2428_v35 }
 0xd83   : > { %5120 = vrcp.f32 %v2901_v2  ;;  %v5115_v25 = vpop.eup %5114 }
 0xd84   : > { %v2904_v32 = vpop.xlane.xlu1 %2903  ;;  %4672 = vmatprep.mubr.msk.bf16.mxu0 %vm1635_vm2, %v2944_v57  ;;  %v5117_v6 = vpop.eup %5116  ;;  %v2935_v56 = vmul.f32 %v5115_v25, %v7077_v43  ;;  %v4207_v25 = vcombine.low %v6214_v49, %v6216_v50 }
 0xd85   : > { %5122 = vrcp.f32 %v2904_v32  ;;  %4667 = vmatpush3.bf16.msra.mxu0 %v2422_v9  ;;  %4683 = vmatpush3.bf16.msra.mxu1 %v2428_v35  ;;  %v2934_v16 = vmul.f32 %v5117_v6, %v7066_v27 }
 0xd86   : > { %v2907_v7 = vpop.xlane.xlu0 %2906  ;;  %4668 = vmatprep.subr.bf16.mxu0 %v2423_v22 }
 0xd87   : > { %5124 = vrcp.f32 %v2907_v7  ;;  %v2945_v46 = vpack.c.bf16 %v2935_v56, %v2934_v16  ;;  %v4208_v7 = vcombine.high %v6214_v49, %v6216_v50 }
 0xd89   : > { %4669 = vmatpush3.bf16.msra.mxu0 %v2423_v22  ;;  %3565 = vmatprep.subr.bf16.mxu1 %v4208_v7 }
 0xd8a   : > { %4670 = vmatprep.subr.bf16.mxu0 %v2424_v51 }
 0xd8b   : > { %v5119_v63 = vpop.eup %5118 }
 0xd8c   : > { %v2936_v3 = vmul.f32 %v5119_v63, %v7082_v62 }
 0xd8d   : > { %v5121_v44 = vpop.eup %5120  ;;  %4671 = vmatpush3.bf16.msra.mxu0 %v2424_v51  ;;  %v7511_v51 = vld [vmem:[#allocation42_spill] sm:$0xff] }
 0xd8e   : > { %v2937_v18 = vmul.f32 %v5121_v44, %v7086_v1  ;;  %4688 = vmatprep.subr.bf16.mxu0 %v6806_v13 }
 0xd8f   : > { %v5123_v40 = vpop.eup %5122 }
 0xd90   : > { %v2946_v19 = vpack.c.bf16 %v2937_v18, %v2936_v3  ;;  %4673 = vmatmul.mubr.msk.bf16.vlgmr.msra.gmra.mrb[28].mxu0 %vm1635_vm2, %v2945_v46  ;;  %v2938_v4 = vmul.f32 %v5123_v40, %v7090_v39 }
 0xd91   : > { %v5125_v54 = vpop.eup %5124  ;;  %4689 = vmatpush3.bf16.msra.mxu0 %v6806_v13 }
 0xd92   : > { %v2939_v43 = vmul.f32 %v5125_v54, %v7094_v17  ;;  %4684 = vmatprep.mubr.msk.bf16.mxu1 %vm1635_vm2, %v2946_v19  ;;  %4690 = vmatprep.subr.bf16.mxu0 %v6846_v29 }
 0xd94   : > { %v2947_v27 = vpack.c.bf16 %v2939_v43, %v2938_v4  ;;  %v7513_v43 = vld [vmem:[#allocation44_spill] sm:$0xff] }
 0xd95   : > { %4691 = vmatpush3.bf16.msra.mxu0 %v6846_v29 }
 0xd96   : > { %4685 = vmatmul.mubr.msk.bf16.vlgmr.msra.gmra.mrb[40].mxu1 %vm1635_vm2, %v2947_v27  ;;  %4696 = vmatprep.subr.bf16.mxu0 %v6852_v30  ;;  %v7514_v27 = vld [vmem:[#allocation43_spill] sm:$0xff] }
 0xd97   : > { %3566 = vmatpush1.bf16.msra.mxu1 %v4207_v25 }
 0xe4b   : > { %v4662_v62 = vpop.f32.mrb[36].mxu1 }
 0xe4c   : > { %v3043_v1 = vpop.f32.mrb[37].mxu1 }
 0xe4d   : > { %v4663_v14 = vpop.f32.mrb[38].mxu1 }
 0xe4e   : > { %v3171_v26 = vpack.c.bf16 %v4663_v14, %v4662_v62  ;;  %v3046_v39 = vpop.f32.mrb[39].mxu1  ;;  %v4212_v62 = vcombine.high %v7514_v27, %v7513_v43  ;;  %v7515_v14 = vld [vmem:[#allocation46_spill] sm:$0xff] }
 0xe4f   : > { %v3170_v24 = vpack.c.bf16 %v3046_v39, %v3043_v1  ;;  %v4211_v1 = vcombine.low %v7514_v27, %v7513_v43 }
 0xe51   : > { %4692 = vmatprep.mubr.msk.bf16.mxu0 %vm1366_vm1, %v3170_v24 }
 0xe52   : > { %4693 = vmatmul.mubr.msk.bf16.vlgmr.msra.gmra.mrb[32].mxu0 %vm1366_vm1, %v3171_v26  ;;  %v7516_v26 = vld [vmem:[#allocation45_spill] sm:$0xff] }
 0xe53   : > { %4697 = vmatpush3.bf16.msra.mxu0 %v6852_v30  ;;  %v4650_v13 = vpop.f32.mrb[24].mxu0  ;;  %v4214_v39 = vcombine.high %v7516_v26, %v7515_v14  ;;  %v4213_v24 = vcombine.low %v7516_v26, %v7515_v14 }
 0xe54   : > { %v2988_v17 = vpop.f32.mrb[25].mxu0  ;;  %4698 = vmatprep.subr.bf16.mxu0 %v6857_v15 }
 0xe55   : > { %v4651_v21 = vpop.f32.mrb[26].mxu0 }
 0xe56   : > { %v3169_v29 = vpack.c.bf16 %v4651_v21, %v4650_v13  ;;  %v2991_v37 = vpop.f32.mrb[27].mxu0  ;;  %v7517_v13 = vld [vmem:[#allocation48_spill] sm:$0xff] }
 0xe57   : > { %v3168_v31 = vpack.c.bf16 %v2991_v37, %v2988_v17  ;;  %4699 = vmatpush3.bf16.msra.mxu0 %v6857_v15  ;;  %v7518_v17 = vld [vmem:[#allocation47_spill] sm:$0xff]  ;;  %v7519_v37 = vld [vmem:[#allocation50_spill] sm:$0xff] }
 0xe58   : > { %4704 = vmatprep.subr.bf16.mxu0 %v6866_v33  ;;  %v4216_v21 = vcombine.high %v7518_v17, %v7517_v13 }
 0xe59   : > { %4700 = vmatprep.mubr.msk.bf16.mxu0 %vm1366_vm1, %v3168_v31  ;;  %v7520_v31 = vld [vmem:[#allocation49_spill] sm:$0xff] }
 0xe5e   : > { %4701 = vmatmul.mubr.msk.bf16.vlgmr.msra.gmra.mrb[32].mxu0 %vm1366_vm1, %v3169_v29  ;;  %v4215_v29 = vcombine.low %v7518_v17, %v7517_v13 }
 0xe5f   : > { %4705 = vmatpush3.bf16.msra.mxu0 %v6866_v33 }
 0xe60   : > { %4706 = vmatprep.subr.bf16.mxu0 %v6872_v36 }
 0xe63   : > { %v4674_v30 = vpop.f32.mrb[28].mxu0  ;;  %4707 = vmatpush3.bf16.msra.mxu0 %v6872_v36 }
 0xe64   : > { %v3098_v23 = vpop.f32.mrb[29].mxu0  ;;  %4712 = vmatprep.subr.bf16.mxu0 %v6879_v41 }
 0xe65   : > { %v4675_v61 = vpop.f32.mrb[30].mxu0 }
 0xe66   : > { %v3173_v45 = vpack.c.bf16 %v4675_v61, %v4674_v30  ;;  %v3101_v8 = vpop.f32.mrb[31].mxu0  ;;  %v4218_v30 = vcombine.high %v7520_v31, %v7519_v37  ;;  %v7521_v61 = vld [vmem:[#allocation52_spill] sm:$0xff] }
 0xe67   : > { %v3172_v15 = vpack.c.bf16 %v3101_v8, %v3098_v23  ;;  %v4217_v23 = vcombine.low %v7520_v31, %v7519_v37  ;;  %v7533_v31 = vld [vmem:[#allocation77_spill] sm:$0xff] }
 0xe69   : > { %v4686_v58 = vpop.f32.mrb[40].mxu1  ;;  %4708 = vmatprep.mubr.msk.bf16.mxu0 %vm1366_vm1, %v3172_v15 }
 0xe6a   : > { %v3153_v20 = vpop.f32.mrb[41].mxu1  ;;  %4709 = vmatmul.mubr.msk.bf16.vlgmr.msra.gmra.mrb[32].mxu0 %vm1366_vm1, %v3173_v45  ;;  %v7522_v45 = vld [vmem:[#allocation51_spill] sm:$0xff] }
 0xe6b   : > { %v4687_v5 = vpop.f32.mrb[42].mxu1  ;;  %4713 = vmatpush3.bf16.msra.mxu0 %v6879_v41  ;;  %v4220_v8 = vcombine.high %v7522_v45, %v7521_v61  ;;  %v4219_v15 = vcombine.low %v7522_v45, %v7521_v61  ;;  %v7537_v45 = vld [vmem:[#allocation79_spill] sm:$0xff] }
 0xe6c   : > { %v3175_v33 = vpack.c.bf16 %v4687_v5, %v4686_v58  ;;  %v3156_v11 = vpop.f32.mrb[43].mxu1  ;;  %4714 = vmatprep.subr.bf16.mxu0 %v6886_v42  ;;  %v7523_v58 = vld [vmem:[#allocation54_spill] sm:$0xff] }
 0xe6d   : > { %v3174_v34 = vpack.c.bf16 %v3156_v11, %v3153_v20  ;;  %v7524_v20 = vld [vmem:[#allocation53_spill] sm:$0xff] }
 0xe6e   : > { %v4222_v5 = vcombine.high %v7524_v20, %v7523_v58  ;;  %v4221_v11 = vcombine.low %v7524_v20, %v7523_v58  ;;  %v7539_v58 = vld [vmem:[#allocation63_spill] sm:$0xff]  ;;  %v7540_v20 = vld [vmem:[#allocation62_spill] sm:$0xff] }
 0xe6f   : > { %4716 = vmatprep.mubr.msk.bf16.mxu0 %vm1366_vm1, %v3174_v34  ;;  %4715 = vmatpush3.bf16.msra.mxu0 %v6886_v42  ;;  %v7525_v34 = vld [vmem:[#allocation73_spill] sm:$0xff] }
 0xe76   : > { %4717 = vmatmul.mubr.msk.bf16.vlgmr.msra.gmra.mrb[32].mxu0 %vm1366_vm1, %v3175_v33  ;;  %v5611_v33 = vmov 0  }
 0xe77   : > { %3597 = vmatprep.mubr.bf16.mxu1 %v5611_v33 }
 0xf49   : > { %v4718_v36 = vpop.f32.mrb[32].mxu0 }
 0xf4a   : > { %v3385_v28 = vpop.f32.mrb[33].mxu0  ;;  %v3406_v38 = vadd.f32 %v4718_v36, %v6898_v48  ;;  %v7526_v36 = vld [vmem:[#allocation72_spill] sm:$0xff] }
 0xf4b   : > { %v3404_v9 = vadd.f32 %v3385_v28, %v6898_v48  ;;  %v4719_v35 = vpop.f32.mrb[34].mxu0  ;;  %v4231_v28 = vcombine.low %v7526_v36, %v7525_v34  ;;  %v7543_v36 = vld [vmem:[#allocation65_spill] sm:$0xff] }
 0xf4c   : > { %v3388_v60 = vpop.f32.mrb[35].mxu0  ;;  %v3407_v57 = vadd.f32 %v4719_v35, %v6898_v48  ;;  %v3410_v42 = vadd.f32 %v3406_v38, %v6924_v0  ;;  %v7528_v35 = vld [vmem:[#allocation56_spill] sm:$0xff]  ;;  %v7529_v38 = vld [vmem:[#allocation75_spill] sm:$0xff] }
 0xf4d   : > { %v3405_v41 = vadd.f32 %v3388_v60, %v6898_v48  ;;  %v3408_v2 = vadd.f32 %v3404_v9, %v6918_v12  ;;  %v7512_v12 = vld [vmem:[#allocation41_spill] sm:$0xff]  ;;  %4396 = vmatprep.subr.bf16.mxu0 %v4231_v28  ;;  %v7544_v28 = vld [vmem:[#allocation64_spill] sm:$0xff] }
 0xf4e   : > { %v3411_v22 = vadd.f32 %v3407_v57, %v6926_v10  ;;  %v4210_v6 = vcombine.high %v7512_v12, %v7511_v51  ;;  %v4209_v48 = vcombine.low %v7512_v12, %v7511_v51  ;;  %v7527_v9 = vld [vmem:[#allocation57_spill] sm:$0xff]  ;;  %v7531_v57 = vld [vmem:[#allocation59_spill] sm:$0xff] }
 0xf4f   : > { %3412 = vadd.xlane.f32.xlu1 %v3408_v2  ;;  %v3409_v32 = vadd.f32 %v3405_v41, %v6920_v53  ;;  %v4223_v60 = vcombine.low %v7528_v35, %v7527_v9  ;;  %v7530_v41 = vld [vmem:[#allocation74_spill] sm:$0xff]  ;;  %v4227_v9 = vcombine.low %v7544_v28, %v7543_v36  ;;  %v7545_v35 = vld [vmem:[#allocation83_spill] sm:$0xff] }
 0xf50   : > { %3567 = vmatprep.subr.bf16.mxu1 %v4210_v6 }
 0xf51   : > { %3414 = vadd.xlane.f32.xlu0 %v3409_v32  ;;  %3568 = vmatpush1.bf16.msra.mxu1 %v4209_v48 }
 0xf52   : > { %3569 = vmatprep.subr.bf16.mxu1 %v4212_v62  ;;  %4397 = vmatpush3.bf16.msra.mxu0 %v4223_v60  ;;  %v7546_v60 = vld [vmem:[#allocation82_spill] sm:$0xff] }
 0xf53   : > { %3416 = vadd.xlane.f32.xlu1 %v3410_v42 }
 0xf55   : > { %3418 = vadd.xlane.f32.xlu0 %v3411_v22  ;;  %3570 = vmatpush1.bf16.msra.mxu1 %v4211_v1 }
 0xf56   : > { %3571 = vmatprep.subr.bf16.mxu1 %v4214_v39 }
 0xf59   : > { %3572 = vmatpush1.bf16.msra.mxu1 %v4213_v24 }
 0xf5a   : > { %3573 = vmatprep.subr.bf16.mxu1 %v4216_v21 }
 0xf5d   : > { %3574 = vmatpush1.bf16.msra.mxu1 %v4215_v29 }
 0xf5e   : > { %3575 = vmatprep.subr.bf16.mxu1 %v4218_v30  ;;  %v7534_v30 = vld [vmem:[#allocation76_spill] sm:$0xff] }
 0xf61   : > { %3576 = vmatpush1.bf16.msra.mxu1 %v4217_v23  ;;  %v7535_v23 = vld [vmem:[#allocation61_spill] sm:$0xff] }
 0xf62   : > { %3577 = vmatprep.subr.bf16.mxu1 %v4220_v8  ;;  %v7538_v8 = vld [vmem:[#allocation78_spill] sm:$0xff] }
 0xf65   : > { %3578 = vmatpush1.bf16.msra.mxu1 %v4219_v15  ;;  %v4234_v15 = vcombine.low %v7538_v8, %v7537_v45 }
 0xf66   : > { %3579 = vmatprep.subr.bf16.mxu1 %v4222_v5  ;;  %v4226_v5 = vcombine.low %v7540_v20, %v7539_v58 }
 0xf69   : > { %3580 = vmatpush1.bf16.msra.mxu1 %v4221_v11  ;;  %v7542_v11 = vld [vmem:[#allocation80_spill] sm:$0xff] }
 0xfdc   : > { %v3413_v53 = vpop.xlane.xlu1 %3412 }
 0xfdd   : > { %v3420_v0 = vmul.f32 0.0078125, %v3413_v53 }
 0xfde   : > { %v3415_v10 = vpop.xlane.xlu0 %3414 }
 0xfdf   : > { %v7166_v63 = vsub.f32 %v3408_v2, %v3420_v0  ;;  %v3421_v56 = vmul.f32 0.0078125, %v3415_v10  ;;  %v4232_v2 = vcombine.low %v7530_v41, %v7529_v38  ;;  %v4236_v38 = vcombine.low %v7546_v60, %v7545_v35  ;;  %v7547_v41 = vld [vmem:[#allocation67_spill] sm:$0xff] }
 0xfe0   : > { %v3417_v44 = vpop.xlane.xlu1 %3416 }
 0xfe1   : > { %v7168_v16 = vsub.f32 %v3409_v32, %v3421_v56  ;;  %v3422_v49 = vmul.f32 0.0078125, %v3417_v44  ;;  %v3428_v50 = vmul.f32 %v7166_v63, %v7166_v63  ;;  %v7532_v32 = vld [vmem:[#allocation58_spill] sm:$0xff]  ;;  %4398 = vmatprep.subr.bf16.mxu0 %v4232_v2 }
 0xfe2   : > { %v3419_v3 = vpop.xlane.xlu0 %3418  ;;  %v7548_v2 = vld [vmem:[#allocation66_spill] sm:$0xff] }
 0xfe3   : > { %v7172_v18 = vsub.f32 %v3410_v42, %v3422_v49  ;;  %v3423_v40 = vmul.f32 0.0078125, %v3419_v3  ;;  %3432 = vadd.xlane.f32.xlu1 %v3428_v50  ;;  %v3429_v46 = vmul.f32 %v7168_v16, %v7168_v16  ;;  %v4224_v42 = vcombine.low %v7532_v32, %v7531_v57  ;;  %v7549_v32 = vld [vmem:[#allocation85_spill] sm:$0xff] }
 0xfe4   : > { %v3458_v49 = vsub.s32 5, %v6629_v59  ;;  %v3466_v3 = vsub.s32 6, %v6629_v59  ;;  %v4228_v57 = vcombine.low %v7548_v2, %v7547_v41 }
 0xfe5   : > { %v7176_v19 = vsub.f32 %v3411_v22, %v3423_v40  ;;  %3434 = vadd.xlane.f32.xlu0 %v3429_v46  ;;  %v3430_v54 = vmul.f32 %v7172_v18, %v7172_v18  ;;  %4399 = vmatpush3.bf16.msra.mxu0 %v4224_v42  ;;  %v7550_v42 = vld [vmem:[#allocation84_spill] sm:$0xff] }
 0xfe6   : > { %v3459_v50 = vrot.slane %v6312_v55, %v3458_v49  ;;  %v3467_v27 = vrot.slane %v6312_v55, %v3466_v3 }
 0xfe7   : > { %3436 = vadd.xlane.f32.xlu1 %v3430_v54  ;;  %v3431_v4 = vmul.f32 %v7176_v19, %v7176_v19 }
 0xfe9   : > { %3438 = vadd.xlane.f32.xlu0 %v3431_v4 }
0x1070   : > { %v3433_v22 = vpop.xlane.xlu1 %3432 }
0x1071   : > { %v3440_v7 = vmul.f32 0.0078125, %v3433_v22  ;;  %v4237_v22 = vcombine.low %v7550_v42, %v7549_v32 }
0x1072   : > { %v3435_v25 = vpop.xlane.xlu0 %3434 }
0x1073   : > { %v3444_v51 = vadd.f32 1e-05, %v3440_v7  ;;  %v3441_v12 = vmul.f32 0.0078125, %v3435_v25  ;;  %v7551_v7 = vld [vmem:[#allocation69_spill] sm:$0xff]  ;;  %v7552_v25 = vld [vmem:[#allocation68_spill] sm:$0xff] }
0x1074   : > { %v3437_v6 = vpop.xlane.xlu1 %3436 }
0x1075   : > { %5126 = vrsqrt.f32 %v3444_v51  ;;  %v3445_v48 = vadd.f32 1e-05, %v3441_v12  ;;  %v3442_v53 = vmul.f32 0.0078125, %v3437_v6  ;;  %v4229_v51 = vcombine.low %v7552_v25, %v7551_v7  ;;  %v7553_v12 = vld [vmem:[#allocation87_spill] sm:$0xff]  ;;  %v7554_v6 = vld [vmem:[#allocation86_spill] sm:$0xff] }
0x1076   : > { %v3439_v0 = vpop.xlane.xlu0 %3438 }
0x1077   : > { %5128 = vrsqrt.f32 %v3445_v48  ;;  %v3446_v10 = vadd.f32 1e-05, %v3442_v53  ;;  %v3443_v56 = vmul.f32 0.0078125, %v3439_v0  ;;  %v4238_v48 = vcombine.low %v7554_v6, %v7553_v12  ;;  %v7555_v53 = vld [vmem:[#allocation71_spill] sm:$0xff]  ;;  %v7556_v0 = vld [vmem:[#allocation70_spill] sm:$0xff] }
0x1079   : > { %5130 = vrsqrt.f32 %v3446_v10  ;;  %v3447_v44 = vadd.f32 1e-05, %v3443_v56  ;;  %v4230_v10 = vcombine.low %v7556_v0, %v7555_v53  ;;  %v7557_v56 = vld [vmem:[#allocation55_spill] sm:$0xff] }
0x107a   : > { %v3482_v49 = vrot.slane %v7557_v56, %v2326_v47 }
0x107b   : > { %5132 = vrsqrt.f32 %v3447_v44  ;;  %v3478_v44 = vrot.slane %v7557_v56, %v1239_v52 }
0x107f   : > { %v5127_v40 = vpop.eup %5126 }
0x1080   : > { %v3452_v46 = vmul.f32 %v5127_v40, %v7166_v63 }
0x1081   : > { %v5129_v54 = vpop.eup %5128 }
0x1082   : > { %v3453_v4 = vmul.f32 %v5129_v54, %v7168_v16  ;;  %v3460_v43 = vmul.f32 %v3459_v50, %v3452_v46 }
0x1083   : > { %v5131_v62 = vpop.eup %5130 }
0x1084   : > { %v3461_v1 = vmul.f32 %v3459_v50, %v3453_v4  ;;  %v7220_v26 = vadd.f32 %v3467_v27, %v3460_v43  ;;  %v3454_v24 = vmul.f32 %v5131_v62, %v7172_v18  ;;  %v4233_v18 = vcombine.low %v7534_v30, %v7533_v31 }
0x1085   : > { %v5133_v14 = vpop.eup %5132 }
0x1086   : > { %v7222_v39 = vadd.f32 %v3467_v27, %v3461_v1  ;;  %v3455_v13 = vmul.f32 %v5133_v14, %v7176_v19  ;;  %v3462_v16 = vmul.f32 %v3459_v50, %v3454_v24  ;;  %v7536_v19 = vld [vmem:[#allocation60_spill] sm:$0xff]  ;;  %4400 = vmatprep.subr.bf16.mxu0 %v4233_v18 }
0x1087   : > { %v4225_v61 = vcombine.low %v7536_v19, %v7535_v23 }
0x1088   : > { %v3472_v63 = vpack.c.bf16 %v7222_v39, %v7220_v26  ;;  %v3463_v17 = vmul.f32 %v3459_v50, %v3455_v13  ;;  %v7230_v29 = vadd.f32 %v3467_v27, %v3462_v16 }
0x1089   : > { %4401 = vmatpush3.bf16.msra.mxu0 %v4225_v61 }
0x108a   : > { %3598 = vmatmul.mubr.bf16.vlgmr.msra.gmra.mrb[44].mxu1 %v3472_v63  ;;  %v7228_v21 = vadd.f32 %v3467_v27, %v3463_v17  ;;  %4402 = vmatprep.subr.bf16.mxu0 %v4234_v15 }
0x108b   : > { %3607 = vmatprep.mubr.bf16.mxu1 %v5611_v33  ;;  %v7541_v33 = vld [vmem:[#allocation81_spill] sm:$0xff] }
0x108c   : > { %v3473_v37 = vpack.c.bf16 %v7228_v21, %v7230_v29  ;;  %v4235_v34 = vcombine.low %v7542_v11, %v7541_v33 }
0x108d   : > { %4403 = vmatpush3.bf16.msra.mxu0 %v4226_v5 }
0x108e   : > { %4404 = vmatprep.subr.bf16.mxu0 %v4235_v34 }
0x1091   : > { %4405 = vmatpush3.bf16.msra.mxu0 %v4227_v9 }
0x1092   : > { %3608 = vmatmul.mubr.bf16.gmra.mrb[48].mxu1 %v3473_v37  ;;  %4406 = vmatprep.subr.bf16.mxu0 %v4236_v38 }
0x1095   : > { %4407 = vmatpush3.bf16.msra.mxu0 %v4228_v57 }
0x1096   : > { %4408 = vmatprep.subr.bf16.mxu0 %v4237_v22 }
0x1099   : > { %4409 = vmatpush3.bf16.msra.mxu0 %v4229_v51 }
0x109a   : > { %4410 = vmatprep.subr.bf16.mxu0 %v4238_v48 }
0x109d   : > { %4411 = vmatpush3.bf16.msra.mxu0 %v4230_v10 }
0x115d   : > { %v3599_v50 = vpop.f32.mrb[44].mxu1 }
0x115e   : > { %v3600_v3 = vadd.f32 %v3599_v50, %v3478_v44  ;;  %v3601_v40 = vpop.f32.mrb[45].mxu1 }
0x115f   : > { %v3602_v46 = vadd.f32 %v3601_v40, %v3482_v49  ;;  %v3603_v54 = vpop.f32.mrb[46].mxu1  ;;  %v3665_v40 = vsub.s32 2, %v6629_v59 }
0x1160   : > { %v3627_v4 = vmul.f32 0.70710677, %v3600_v3  ;;  %v3604_v43 = vadd.f32 %v3603_v54, %v3478_v44  ;;  %v3605_v27 = vpop.f32.mrb[47].mxu1  ;;  %v3618_v5 = vmul.f32 0.5, %v3600_v3 }
0x1161   : > { %v3628_v62 = vmul.f32 0.70710677, %v3602_v46  ;;  %v3606_v1 = vadd.f32 %v3605_v27, %v3482_v49  ;;  %v3619_v34 = vmul.f32 0.5, %v3602_v46  ;;  %v3666_v54 = vrot.slane %v6312_v55, %v3665_v40 }
0x1162   : > { %5134 = verf.f32 %v3627_v4  ;;  %v3629_v14 = vmul.f32 0.70710677, %v3604_v43  ;;  %v3620_v33 = vmul.f32 0.5, %v3604_v43 }
0x1163   : > { %5136 = verf.f32 %v3628_v62  ;;  %v3630_v24 = vmul.f32 0.70710677, %v3606_v1  ;;  %v3621_v36 = vmul.f32 0.5, %v3606_v1 }
0x1164   : > { %5138 = verf.f32 %v3629_v14 }
0x1165   : > { %5140 = verf.f32 %v3630_v24  ;;  %v3609_v52 = vpop.f32.mrb[48].mxu1 }
0x1166   : > { %v3610_v13 = vadd.f32 %v3609_v52, %v3478_v44  ;;  %v3611_v63 = vpop.f32.mrb[49].mxu1 }
0x1167   : > { %v3612_v47 = vadd.f32 %v3611_v63, %v3482_v49  ;;  %v3613_v17 = vpop.f32.mrb[50].mxu1 }
0x1168   : > { %v3631_v16 = vmul.f32 0.70710677, %v3610_v13  ;;  %v3614_v37 = vadd.f32 %v3613_v17, %v3478_v44  ;;  %v3615_v31 = vpop.f32.mrb[51].mxu1  ;;  %v3622_v51 = vmul.f32 0.5, %v3610_v13 }
0x1169   : > { %v3632_v30 = vmul.f32 0.70710677, %v3612_v47  ;;  %v3616_v18 = vadd.f32 %v3615_v31, %v3482_v49  ;;  %v3623_v48 = vmul.f32 0.5, %v3612_v47 }
0x116a   : > { %5142 = verf.f32 %v3631_v16  ;;  %v3633_v23 = vmul.f32 0.70710677, %v3614_v37  ;;  %v3624_v12 = vmul.f32 0.5, %v3614_v37 }
0x116b   : > { %5144 = verf.f32 %v3632_v30  ;;  %v3634_v19 = vmul.f32 0.70710677, %v3616_v18  ;;  %v3625_v53 = vmul.f32 0.5, %v3616_v18 }
0x116c   : > { %v5135_v61 = vpop.eup %5134  ;;  %5146 = verf.f32 %v3633_v23 }
0x116d   : > { %v5137_v45 = vpop.eup %5136  ;;  %v3643_v8 = vadd.f32 1.0, %v5135_v61  ;;  %5148 = verf.f32 %v3634_v19 }
0x116e   : > { %v5139_v15 = vpop.eup %5138  ;;  %v3644_v58 = vadd.f32 1.0, %v5137_v45 }
0x116f   : > { %v5141_v20 = vpop.eup %5140  ;;  %v3645_v11 = vadd.f32 1.0, %v5139_v15  ;;  %v3651_v9 = vmul.f32 %v3643_v8, %v3618_v5 }
0x1170   : > { %v3646_v28 = vadd.f32 1.0, %v5141_v20  ;;  %v3652_v60 = vmul.f32 %v3644_v58, %v3619_v34 }
0x1171   : > { %v3653_v35 = vmul.f32 %v3645_v11, %v3620_v33 }
0x1172   : > { %v3654_v38 = vmul.f32 %v3646_v28, %v3621_v36 }
0x1173   : > { %v3659_v41 = vpack.c.bf16 %v3653_v35, %v3651_v9 }
0x1174   : > { %v5143_v2 = vpop.eup %5142  ;;  %v3660_v57 = vpack.c.bf16 %v3654_v38, %v3652_v60 }
0x1175   : > { %v5145_v32 = vpop.eup %5144  ;;  %v3647_v42 = vadd.f32 1.0, %v5143_v2 }
0x1176   : > { %v5147_v22 = vpop.eup %5146  ;;  %v3648_v7 = vadd.f32 1.0, %v5145_v32  ;;  %3795 = vmatprep.mubr.bf16.mxu0 %v3660_v57 }
0x1177   : > { %v5149_v25 = vpop.eup %5148  ;;  %v3649_v6 = vadd.f32 1.0, %v5147_v22  ;;  %3796 = vmatmul.mubr.bf16.vlgmr.msra.gmra.mrb[36].mxu0 %v3659_v41  ;;  %v3655_v10 = vmul.f32 %v3647_v42, %v3622_v51  ;;  %v3862_v42 = vsub.s32 7, %v6629_v59 }
0x1178   : > { %v3650_v0 = vadd.f32 1.0, %v5149_v25  ;;  %v3656_v44 = vmul.f32 %v3648_v7, %v3623_v48 }
0x1179   : > { %v3657_v56 = vmul.f32 %v3649_v6, %v3624_v12  ;;  %v3863_v12 = vrot.slane %v6312_v55, %v3862_v42 }
0x117a   : > { %v3658_v49 = vmul.f32 %v3650_v0, %v3625_v53 }
0x117b   : > { %v3661_v50 = vpack.c.bf16 %v3657_v56, %v3655_v10  ;;  %v7559_v56 = vld [vmem:[#allocation88_spill] sm:$0xff] }
0x117c   : > { %v3662_v3 = vpack.c.bf16 %v3658_v49, %v3656_v44 }
0x117e   : > { %3803 = vmatprep.mubr.bf16.mxu0 %v3662_v3 }
0x117f   : > { %3804 = vmatmul.mubr.bf16.gmra.mrb[40].mxu0 %v3661_v50 }
0x124a   : > { %v4412_v46 = vpop.f32.mrb[36].mxu0 }
0x124b   : > { %v4413_v4 = vpop.f32.mrb[37].mxu0 }
0x124c   : > { %v4414_v43 = vadd.f32 %v4413_v4, %v4412_v46  ;;  %v4415_v27 = vpop.f32.mrb[38].mxu0 }
0x124d   : > { %v4416_v62 = vpop.f32.mrb[39].mxu0 }
0x124e   : > { %v3798_v1 = vadd.f32 %v4414_v43, %v3666_v54  ;;  %v4417_v14 = vadd.f32 %v4416_v62, %v4415_v27 }
0x1250   : > { %v3801_v24 = vadd.f32 %v4417_v14, %v3666_v54  ;;  %v3812_v52 = vadd.f32 %v3798_v1, %v7220_v26 }
0x1252   : > { %3816 = vadd.xlane.f32.xlu1 %v3812_v52  ;;  %v4418_v13 = vpop.f32.mrb[40].mxu0  ;;  %v3813_v63 = vadd.f32 %v3801_v24, %v7222_v39 }
0x1253   : > { %v4419_v47 = vpop.f32.mrb[41].mxu0 }
0x1254   : > { %v4420_v17 = vadd.f32 %v4419_v47, %v4418_v13  ;;  %3818 = vadd.xlane.f32.xlu0 %v3813_v63  ;;  %v4421_v16 = vpop.f32.mrb[42].mxu0 }
0x1255   : > { %v4422_v37 = vpop.f32.mrb[43].mxu0 }
0x1256   : > { %v3806_v31 = vadd.f32 %v4420_v17, %v3666_v54  ;;  %v4423_v30 = vadd.f32 %v4422_v37, %v4421_v16 }
0x1258   : > { %v3809_v18 = vadd.f32 %v4423_v30, %v3666_v54  ;;  %v3814_v23 = vadd.f32 %v3806_v31, %v7230_v29 }
0x125a   : > { %3820 = vadd.xlane.f32.xlu1 %v3814_v23  ;;  %v3815_v19 = vadd.f32 %v3809_v18, %v7228_v21 }
0x125c   : > { %3822 = vadd.xlane.f32.xlu0 %v3815_v19 }
0x12df   : > { %v3817_v61 = vpop.xlane.xlu1 %3816 }
0x12e0   : > { %v3824_v26 = vmul.f32 0.0078125, %v3817_v61 }
0x12e1   : > { %v3819_v45 = vpop.xlane.xlu0 %3818 }
0x12e2   : > { %v3828_v8 = vsub.f32 %v3812_v52, %v3824_v26  ;;  %v3825_v15 = vmul.f32 0.0078125, %v3819_v45 }
0x12e4   : > { %v3829_v39 = vsub.f32 %v3813_v63, %v3825_v15  ;;  %v3832_v58 = vmul.f32 %v3828_v8, %v3828_v8 }
0x12e6   : > { %3836 = vadd.xlane.f32.xlu1 %v3832_v58  ;;  %v3833_v20 = vmul.f32 %v3829_v39, %v3829_v39 }
0x12e7   : > { %v3821_v5 = vpop.xlane.xlu1 %3820 }
0x12e8   : > { %v3826_v33 = vmul.f32 0.0078125, %v3821_v5  ;;  %3838 = vadd.xlane.f32.xlu0 %v3833_v20 }
0x12e9   : > { %v3823_v11 = vpop.xlane.xlu0 %3822 }
0x12ea   : > { %v3830_v34 = vsub.f32 %v3814_v23, %v3826_v33  ;;  %v3827_v36 = vmul.f32 0.0078125, %v3823_v11 }
0x12ec   : > { %v3831_v29 = vsub.f32 %v3815_v19, %v3827_v36  ;;  %v3834_v28 = vmul.f32 %v3830_v34, %v3830_v34 }
0x12ee   : > { %3840 = vadd.xlane.f32.xlu1 %v3834_v28  ;;  %v3835_v21 = vmul.f32 %v3831_v29, %v3831_v29 }
0x12f0   : > { %3842 = vadd.xlane.f32.xlu0 %v3835_v21 }
0x1373   : > { %v3837_v9 = vpop.xlane.xlu1 %3836 }
0x1374   : > { %v3844_v35 = vmul.f32 0.0078125, %v3837_v9 }
0x1375   : > { %v3839_v60 = vpop.xlane.xlu0 %3838 }
0x1376   : > { %v3848_v38 = vadd.f32 1e-05, %v3844_v35  ;;  %v3845_v41 = vmul.f32 0.0078125, %v3839_v60 }
0x1378   : > { %5150 = vrsqrt.f32 %v3848_v38  ;;  %v3849_v2 = vadd.f32 1e-05, %v3845_v41 }
0x137a   : > { %5152 = vrsqrt.f32 %v3849_v2 }
0x137b   : > { %v3841_v57 = vpop.xlane.xlu1 %3840 }
0x137c   : > { %v3846_v32 = vmul.f32 0.0078125, %v3841_v57 }
0x137d   : > { %v3843_v22 = vpop.xlane.xlu0 %3842 }
0x137e   : > { %v3850_v7 = vadd.f32 1e-05, %v3846_v32  ;;  %v3847_v25 = vmul.f32 0.0078125, %v3843_v22 }
0x1380   : > { %5154 = vrsqrt.f32 %v3850_v7  ;;  %v3851_v51 = vadd.f32 1e-05, %v3847_v25 }
0x1382   : > { %v5151_v6 = vpop.eup %5150  ;;  %5156 = vrsqrt.f32 %v3851_v51 }
0x1383   : > { %v3856_v48 = vmul.f32 %v5151_v6, %v3828_v8 }
0x1384   : > { %v5153_v53 = vpop.eup %5152 }
0x1385   : > { %v3864_v0 = vmul.f32 %v3863_v12, %v3856_v48  ;;  %v3857_v10 = vmul.f32 %v5153_v53, %v3829_v39 }
0x1387   : > { %v3872_v44 = vadd.f32 %v7559_v56, %v3864_v0  ;;  %v3865_v59 = vmul.f32 %v3863_v12, %v3857_v10 }
0x1389   : > { %3876 = vst [vmem:[%s6317_s24] sm:$0xff] %v3872_v44  ;;  %v3873_v49 = vadd.f32 %v7559_v56, %v3865_v59 }
0x138a   : > { %v5155_v50 = vpop.eup %5154 }
0x138b   : > { %3877 = vst [vmem:[%s6317_s24 + $0x8] sm:$0xff] %v3873_v49  ;;  %v3858_v55 = vmul.f32 %v5155_v50, %v3830_v34 }
0x138c   : > { %v5157_v3 = vpop.eup %5156 }
0x138d   : > { %v3866_v40 = vmul.f32 %v3863_v12, %v3858_v55  ;;  %v3859_v46 = vmul.f32 %v5157_v3, %v3831_v29 }
0x138f   : > { %v3874_v54 = vadd.f32 %v7559_v56, %v3866_v40  ;;  %v3867_v4 = vmul.f32 %v3863_v12, %v3859_v46 }
0x1391   : > { %3878 = vst [vmem:[%s6317_s24 + $0x10] sm:$0xff] %v3874_v54  ;;  %v3875_v43 = vadd.f32 %v7559_v56, %v3867_v4 }
0x1393   : > { %3879 = vst [vmem:[%s6317_s24 + $0x18] sm:$0xff] %v3875_v43 }
0x1394   : > { %5455 = shalt.err (!%p5452_p12)
}
0x1395   : > { %s5456_s20 = scalar_lea.hbm %s7283_s1, 512  ;;  %s5460_s22 = scalar_lea.hbm %s7561_s11, 2048 }
0x1396   : > { %p5457_p13 = scmp.ne.s32.totalorder %s7283_s1, %s5456_s20  ;;  %p5461_p2 = scmp.lt.u32.totalorder %s7283_s1, %s7561_s11 }
0x1397   : > { %p5462_p3 = scmp.lt.u32.totalorder %s5460_s22, %s5456_s20  ;;  %p5464_p7 = scmp.lt.u32.totalorder %s5456_s20, %s7283_s1 }
0x1398   : > { %p5458_p10 = pnand %p5457_p13, %p7562_p1 }
0x1399   : > { %p5463_p4 = por %p5462_p3, %p5461_p2 }
0x139a   : > { %p5459_p0 = pneg %p5458_p10 }
0x139b   : > { %p5465_p9 = por %p5464_p7, %p5463_p4 }
0x139d   : > { %p5466_p6 = pnand %p5465_p9, %p5459_p0 }
0x139f   : > { %5469 = shalt.err (!%p5466_p6)
}
0x13a0   : > { %s5613_s25 = smov 128   ;;  %s5614_s14 = smov 8  }
0x13a1   : > { %4812 = dma.vmem_to_hbm [thread:$0]  (%p7562_p1), %s7285_s0, 512, %s7283_s1, %s7292_s10, %s5613_s25, %s5613_s25, %s5614_s14  }
0x13a2 PF: > { %s7563_s28 = sld [smem:[#allocation32_spill]]  ;;  %p4867_p11 = scmp.ge.s32.totalorder %s5588_s23, 2 }
0x13a3   : > { %p7564_p5 = scmp.ne.s32.totalorder %s7443_s3, 0 }
0x13a5   : > { %p4847_p8 = pnand %p4867_p11, %p7564_p5 }
0x13a8   : > { %s3911_s8 = sand.u32 1, %s7563_s28  }
0x13a9   : > { %s3912_s2 = scalar_lea.sflag [#allocation8], %s3911_s8 }
0x13aa   : > { %5543 = dma.done.wait (!%p4847_p8), %s3912_s2, 512  }
0x13ab   : > { %5545 = vsyncadd (!%p4847_p8), %s3912_s2, 4294966784  ;;  %s33_s23 = sadd.s32 1, %s5588_s23   ;;  %s7565_s13 = sld [smem:[#allocation33_spill]] }
0x13ac   : > { %p30_p12 = scmp.ge.s32.totalorder %s33_s23, 6   ;;  %s7566_s19 = sld [smem:[#allocation36_spill]] }
0x13ad   : > { %s7567_s20 = sld [smem:[#allocation37_spill]]  ;;  %s7568_s21 = sld [smem:[#allocation39_spill]] }
0x13ae   : > { %s7569_s22 = sld [smem:[#allocation40_spill]]  ;;  %s7570_s14 = smov %s5556_s15 }
0x13af   : > { %s7571_s15 = smov %s5979_s30  ;;  %s7572_s16 = smov %s5564_s17 }
0x13b0   : > { %s7573_s17 = smov %s5568_s18  ;;  %s7574_s18 = smov %s5976_s27 }
0x13b1   :  { %32 = sbr.rel (!%p30_p12) target bundleno = 27 (0x1b), region = 155 }
0x13b8   :  { %3917 = vsyncpa [#allocation7], 1 }
0x13b9   :  { %3919 = vsyncpa [#allocation7 + $0x1], 1 }
0x13ba   :  { %3920 = vsyncpa [#allocation10], 1 }
0x13bb   :  { %3922 = vsyncpa [#allocation10 + $0x1], 1 }
0x13bc   :  { %3923 = vsyncpa [#allocation13], 1 }
0x13bd   :  { %3924 = vsyncpa [#allocation16], 1 }
0x13be   :  { %3925 = vsyncpa [#allocation19], 1 }
0x13bf   :  { %3926 = vsyncpa [#allocation22], 1 }
0x13c0   :  { %3927 = vsyncpa [#allocation8], 1 }
0x13c1   :  { %3929 = vsyncpa [#allocation8 + $0x1], 1 }

</bundles_post_ra>
